<compile_context>
chip_gen: v5e
topology: v5e:2x2
jax: 0.10.0
libtpu: 0.0.40
codegen_flags: <defaults>
</compile_context>

<pallas_src>
import functools

import jax
import jax.numpy as jnp
from jax.experimental import pallas as pl
from jax.experimental.pallas import tpu as pltpu


def _largest_divisor_leq(n, cap):
    cap = max(1, min(n, cap))
    for d in range(cap, 0, -1):
        if n % d == 0:
            return d
    return 1


# ---------------------------------------------------------------------------
# Fused  out = x @ w + b  GEMM, tiled over rows and output columns.
# K (the contraction dim, = E or H) stays a single full block; demo K is 128.
# TODO(synk): add a K grid axis + f32 VMEM accumulator for very large K.
# ---------------------------------------------------------------------------
def _linear_kernel(x_ref, w_ref, b_ref, o_ref):
    o_ref[...] = (
        jnp.dot(x_ref[...], w_ref[...], preferred_element_type=jnp.float32)
        + b_ref[...]
    ).astype(o_ref.dtype)


def linear(x, w, b, *, tm_cap=256, tn_cap=512):
    M, K = x.shape
    K2, N = w.shape
    assert K == K2 and b.shape == (1, N)
    tm = _largest_divisor_leq(M, tm_cap)
    tn = _largest_divisor_leq(N, tn_cap)
    return pl.pallas_call(
        _linear_kernel,
        out_shape=jax.ShapeDtypeStruct((M, N), jnp.float32),
        grid_spec=pltpu.PrefetchScalarGridSpec(
            num_scalar_prefetch=0,
            grid=(M // tm, N // tn),
            in_specs=[
                pl.BlockSpec((tm, K), lambda i, j: (i, 0)),
                pl.BlockSpec((K, tn), lambda i, j: (0, j)),
                pl.BlockSpec((1, tn), lambda i, j: (0, j)),
            ],
            out_specs=pl.BlockSpec((tm, tn), lambda i, j: (i, j)),
        ),
        compiler_params=pltpu.CompilerParams(
            dimension_semantics=("parallel", "parallel"),
        ),
    )(x, w, b)


# ---------------------------------------------------------------------------
# Sequential LSTM recurrence over precomputed input gates.
# gates_x[t] already contains x_t @ W_ih + (b_ih + b_hh); per step we only add
# h_prev @ W_hh and apply the gate nonlinearities (PyTorch gate order i,f,g,o).
# ---------------------------------------------------------------------------
def _lstm_recurrence_kernel(gx_ref, whh_ref, h_out_ref, h_sc, c_sc, *, t_chunk):
    t_blk = pl.program_id(1)

    @pl.when(t_blk == 0)
    def _():
        h_sc[...] = jnp.zeros_like(h_sc)
        c_sc[...] = jnp.zeros_like(c_sc)

    H = h_sc.shape[-1]
    w_hh = whh_ref[...]  # (H, 4H); loaded once per chunk, hoisted out of loop

    def step(i, carry):
        h, c = carry
        # Only the recurrent projection sits on the serial critical path.
        gates = gx_ref[i] + jnp.dot(h, w_hh, preferred_element_type=jnp.float32)
        i_g = jax.nn.sigmoid(gates[:, 0 * H:1 * H])
        f_g = jax.nn.sigmoid(gates[:, 1 * H:2 * H])
        g_g = jnp.tanh(gates[:, 2 * H:3 * H])
        o_g = jax.nn.sigmoid(gates[:, 3 * H:4 * H])
        c = f_g * c + i_g * g_g
        h = o_g * jnp.tanh(c)
        return h, c

    h_new, c_new = jax.lax.fori_loop(
        0, t_chunk, step, (h_sc[...], c_sc[...]), unroll=True
    )
    h_sc[...] = h_new
    c_sc[...] = c_new

    @pl.when(t_blk == pl.num_programs(1) - 1)
    def _():
        h_out_ref[...] = h_new.astype(h_out_ref.dtype)


def lstm_recurrence(gates_x, w_hh, *, t_chunk=None, b_tile=None):
    """gates_x: (S, B, 4H) time-major precomputed input gates. Returns h_last (B, H)."""
    S, B, G = gates_x.shape
    H = w_hh.shape[0]
    assert G == 4 * H

    if t_chunk is None:
        t_chunk = _largest_divisor_leq(S, 16)        # amortise per-grid-step overhead
    if b_tile is None:
        # >=2 batch tiles when B is large enough so v7x megacore can split them.
        b_tile = _largest_divisor_leq(B, max(8, B // 2))
    assert S % t_chunk == 0 and B % b_tile == 0

    kernel = functools.partial(_lstm_recurrence_kernel, t_chunk=t_chunk)

    return pl.pallas_call(
        kernel,
        out_shape=jax.ShapeDtypeStruct((B, H), jnp.float32),
        grid_spec=pltpu.PrefetchScalarGridSpec(
            num_scalar_prefetch=0,
            grid=(B // b_tile, S // t_chunk),         # (batch tiles, time chunks)
            in_specs=[
                # per-chunk precomputed input gates
                pl.BlockSpec((t_chunk, b_tile, 4 * H), lambda bb, tb: (tb, bb, 0)),
                # recurrent weights (same block every step -> stays resident)
                pl.BlockSpec((H, 4 * H), lambda bb, tb: (0, 0)),
            ],
            out_specs=pl.BlockSpec((b_tile, H), lambda bb, tb: (bb, 0)),
            scratch_shapes=[
                pltpu.VMEM((b_tile, H), jnp.float32),   # h state
                pltpu.VMEM((b_tile, H), jnp.float32),   # c state
            ],
        ),
        compiler_params=pltpu.CompilerParams(
            # batch tiles are independent (v7x megacore splits them);
            # the time axis is the serial recurrence.
            dimension_semantics=("parallel", "arbitrary"),
        ),
    )(gates_x, w_hh)


# ---------------------------------------------------------------------------
# Full model forward.
# ---------------------------------------------------------------------------
def lstm_model_forward(token_ids, params, *, t_chunk=None, b_tile=None):
    """token_ids: (B, S) int32. Returns logits (B, vocab_size)."""
    emb = params["embedding"]            # (V, E)
    w_ih = params["w_ih"]                # (E, 4H)
    w_hh = params["w_hh"]                # (H, 4H)
    b = params["b"]                      # (1, 4H)  (b_ih + b_hh folded)
    w_fc = params["w_fc"]                # (H, V)
    b_fc = params["b_fc"]                # (1, V)

    B, S = token_ids.shape
    E = emb.shape[1]
    H = w_hh.shape[0]

    # 1) embedding gather (plain-JAX glue), directly into time-major layout.
    x_tm = jnp.take(emb, token_ids.T, axis=0)                # (S, B, E)
    x_tm = x_tm.reshape(S * B, E)                            # (S*B, E)

    # 2) input projection hoisted out of the recurrence: ONE large tiled GEMM.
    gates_x = linear(x_tm, w_ih, b).reshape(S, B, 4 * H)     # (S, B, 4H)

    # 3) sequential recurrence: only h @ W_hh + gate math per step.
    h_last = lstm_recurrence(gates_x, w_hh, t_chunk=t_chunk, b_tile=b_tile)

    # 4) output projection as a separate kernel (W_fc not resident during the
    #    sequence).
    return linear(h_last, w_fc, b_fc)                        # (B, V)


# ---------------------------------------------------------------------------
# Pure-JAX reference matching torch LSTM semantics (gate order i, f, g, o).
# ---------------------------------------------------------------------------
def reference_forward(token_ids, params):
    x = jnp.take(params["embedding"], token_ids, axis=0)     # (B, S, E)
    H = params["w_hh"].shape[0]
    B = x.shape[0]

    def step(carry, x_t):
        h, c = carry
        gates = x_t @ params["w_ih"] + h @ params["w_hh"] + params["b"]
        i = jax.nn.sigmoid(gates[:, 0 * H:1 * H])
        f = jax.nn.sigmoid(gates[:, 1 * H:2 * H])
        g = jnp.tanh(gates[:, 2 * H:3 * H])
        o = jax.nn.sigmoid(gates[:, 3 * H:4 * H])
        c = f * c + i * g
        h = o * jnp.tanh(c)
        return (h, c), None

    init = (jnp.zeros((B, H), jnp.float32), jnp.zeros((B, H), jnp.float32))
    (h_last, _), _ = jax.lax.scan(step, init, jnp.transpose(x, (1, 0, 2)))
    return h_last @ params["w_fc"] + params["b_fc"]


def init_params(key, vocab_size, embed_size, hidden_size):
    ks = jax.random.split(key, 7)
    scale = 0.1
    return {
        "embedding": scale * jax.random.normal(ks[0], (vocab_size, embed_size), jnp.float32),
        # stored pre-transposed relative to torch: (in, 4H) so kernels do x @ W
        "w_ih": scale * jax.random.normal(ks[1], (embed_size, 4 * hidden_size), jnp.float32),
        "w_hh": scale * jax.random.normal(ks[2], (hidden_size, 4 * hidden_size), jnp.float32),
        # torch has b_ih + b_hh; fold them into one bias
        "b": (scale * jax.random.normal(ks[3], (1, 4 * hidden_size), jnp.float32)
              + scale * jax.random.normal(ks[4], (1, 4 * hidden_size), jnp.float32)),
        "w_fc": scale * jax.random.normal(ks[5], (hidden_size, vocab_size), jnp.float32),
        "b_fc": scale * jax.random.normal(ks[6], (1, vocab_size), jnp.float32),
    }


if __name__ == "__main__":
    vocab_size = 256
    embed_size = 128
    hidden_size = 128   # multiple of 128 -> lane-aligned gate slices
    seq_length = 8
    batch = 8           # multiple of 8 -> full f32 sublane

    key = jax.random.PRNGKey(0)
    k_param, k_tok = jax.random.split(key)
    params = init_params(k_param, vocab_size, embed_size, hidden_size)
    token_ids = jax.random.randint(
        k_tok, (batch, seq_length), 0, vocab_size, jnp.int32)

    fwd = jax.jit(lstm_model_forward)
    logits = jax.block_until_ready(fwd(token_ids, params))

    ref = reference_forward(token_ids, params)
    assert logits.shape == (batch, vocab_size)
    assert jnp.allclose(logits, ref, atol=1e-3, rtol=1e-3), "mismatch vs reference"

    print("KERNEL_OK")
</pallas_src>

<mosaic_0001>
module attributes {stable_mosaic.version = 11 : i64} {
  func.func @_lstm_recurrence_kernel(%arg0: i32, %arg1: i32, %arg2: memref<8x8x512xf32, #tpu.memory_space<vmem>>, %arg3: memref<128x512xf32, #tpu.memory_space<vmem>>, %arg4: memref<8x128xf32, #tpu.memory_space<vmem>>, %arg5: memref<8x128xf32, #tpu.memory_space<vmem>>, %arg6: memref<8x128xf32, #tpu.memory_space<vmem>>) attributes {dimension_semantics = [#tpu.dimension_semantics<parallel>, #tpu.dimension_semantics<arbitrary>], iteration_bounds = array<i64: 1, 1>, scalar_prefetch = 0 : i64, scratch_operands = 2 : i64, tpu.core_type = #tpu.core_type<tc>, window_params = [{transform_indices = @transform_0, window_bounds = array<i64: 8, 8, 512>}, {pipeline_mode = #tpu.pipeline_mode<synchronous>, transform_indices = @transform_1, window_bounds = array<i64: 128, 512>}, {transform_indices = @transform_2, window_bounds = array<i64: 8, 128>}]} {
    %c0_i32 = arith.constant 0 : i32
    %0 = arith.cmpi eq, %arg1, %c0_i32 : i32
    %1 = arith.extui %0 : i1 to i32
    %c0_i32_0 = arith.constant 0 : i32
    %2 = arith.cmpi ne, %1, %c0_i32_0 : i32
    scf.if %2 {
      %cst_60 = arith.constant 0.000000e+00 : f32
      %251 = vector.broadcast %cst_60 : f32 to vector<8x128xf32>
      %c0_61 = arith.constant 0 : index
      %c0_62 = arith.constant 0 : index
      %252 = vector.load %arg5[%c0_61, %c0_62] : memref<8x128xf32, #tpu.memory_space<vmem>>, vector<8x128xf32>
      tpu.vector_store %arg5[%c0_61, %c0_62], %251 {strides = array<i32>} : memref<8x128xf32, #tpu.memory_space<vmem>>, vector<8x128xf32>,
      %cst_63 = arith.constant 0.000000e+00 : f32
      %253 = vector.broadcast %cst_63 : f32 to vector<8x128xf32>
      %c0_64 = arith.constant 0 : index
      %c0_65 = arith.constant 0 : index
      %254 = vector.load %arg6[%c0_64, %c0_65] : memref<8x128xf32, #tpu.memory_space<vmem>>, vector<8x128xf32>
      tpu.vector_store %arg6[%c0_64, %c0_65], %253 {strides = array<i32>} : memref<8x128xf32, #tpu.memory_space<vmem>>, vector<8x128xf32>,
    } else {
    }
    %c0 = arith.constant 0 : index
    %c0_1 = arith.constant 0 : index
    %3 = vector.load %arg3[%c0, %c0_1] : memref<128x512xf32, #tpu.memory_space<vmem>>, vector<128x512xf32>
    %c0_2 = arith.constant 0 : index
    %c0_3 = arith.constant 0 : index
    %4 = vector.load %arg5[%c0_2, %c0_3] : memref<8x128xf32, #tpu.memory_space<vmem>>, vector<8x128xf32>
    %c0_4 = arith.constant 0 : index
    %c0_5 = arith.constant 0 : index
    %5 = vector.load %arg6[%c0_4, %c0_5] : memref<8x128xf32, #tpu.memory_space<vmem>>, vector<8x128xf32>
    %c0_i32_6 = arith.constant 0 : i32
    %6 = arith.index_cast %c0_i32_6 : i32 to index
    %c0_7 = arith.constant 0 : index
    %c0_8 = arith.constant 0 : index
    %7 = vector.load %arg2[%6, %c0_7, %c0_8] : memref<8x8x512xf32, #tpu.memory_space<vmem>>, vector<1x8x512xf32>
    %8 = vector.shape_cast %7 : vector<1x8x512xf32> to vector<8x512xf32>
    %cst = arith.constant dense<0.000000e+00> : vector<8x512xf32>
    %9 = tpu.matmul %4, %3, %cst {dimension_numbers = #tpu.dot_dimension_numbers<[1], [0], [0], [1], [0, 0, 1, 1], [], []>} : vector<8x128xf32>, vector<128x512xf32>, vector<8x512xf32> -> vector<8x512xf32>
    %10 = arith.addf %8, %9 : vector<8x512xf32>
    %11 = vector.extract_strided_slice %10 {offsets = [0, 0], sizes = [8, 128], strides = [1, 1]} : vector<8x512xf32> to vector<8x128xf32>
    %12 = arith.negf %11 : vector<8x128xf32>
    %13 = math.exp %12 : vector<8x128xf32>
    %cst_9 = arith.constant 1.000000e+00 : f32
    %14 = vector.broadcast %cst_9 : f32 to vector<8x128xf32>
    %15 = arith.addf %14, %13 : vector<8x128xf32>
    %16 = arith.divf %14, %15 : vector<8x128xf32>
    %17 = vector.extract_strided_slice %10 {offsets = [0, 128], sizes = [8, 128], strides = [1, 1]} : vector<8x512xf32> to vector<8x128xf32>
    %18 = arith.negf %17 : vector<8x128xf32>
    %19 = math.exp %18 : vector<8x128xf32>
    %cst_10 = arith.constant 1.000000e+00 : f32
    %20 = vector.broadcast %cst_10 : f32 to vector<8x128xf32>
    %21 = arith.addf %20, %19 : vector<8x128xf32>
    %22 = arith.divf %20, %21 : vector<8x128xf32>
    %23 = vector.extract_strided_slice %10 {offsets = [0, 256], sizes = [8, 128], strides = [1, 1]} : vector<8x512xf32> to vector<8x128xf32>
    %24 = math.tanh %23 : vector<8x128xf32>
    %25 = vector.extract_strided_slice %10 {offsets = [0, 384], sizes = [8, 128], strides = [1, 1]} : vector<8x512xf32> to vector<8x128xf32>
    %26 = arith.negf %25 : vector<8x128xf32>
    %27 = math.exp %26 : vector<8x128xf32>
    %cst_11 = arith.constant 1.000000e+00 : f32
    %28 = vector.broadcast %cst_11 : f32 to vector<8x128xf32>
    %29 = arith.addf %28, %27 : vector<8x128xf32>
    %30 = arith.divf %28, %29 : vector<8x128xf32>
    %31 = arith.mulf %22, %5 : vector<8x128xf32>
    %32 = arith.mulf %16, %24 : vector<8x128xf32>
    %33 = arith.addf %31, %32 : vector<8x128xf32>
    %34 = math.tanh %33 : vector<8x128xf32>
    %35 = arith.mulf %30, %34 : vector<8x128xf32>
    %c1_i32 = arith.constant 1 : i32
    %36 = arith.index_cast %c1_i32 : i32 to index
    %c0_12 = arith.constant 0 : index
    %c0_13 = arith.constant 0 : index
    %37 = vector.load %arg2[%36, %c0_12, %c0_13] : memref<8x8x512xf32, #tpu.memory_space<vmem>>, vector<1x8x512xf32>
    %38 = vector.shape_cast %37 : vector<1x8x512xf32> to vector<8x512xf32>
    %cst_14 = arith.constant dense<0.000000e+00> : vector<8x512xf32>
    %39 = tpu.matmul %35, %3, %cst_14 {dimension_numbers = #tpu.dot_dimension_numbers<[1], [0], [0], [1], [0, 0, 1, 1], [], []>} : vector<8x128xf32>, vector<128x512xf32>, vector<8x512xf32> -> vector<8x512xf32>
    %40 = arith.addf %38, %39 : vector<8x512xf32>
    %41 = vector.extract_strided_slice %40 {offsets = [0, 0], sizes = [8, 128], strides = [1, 1]} : vector<8x512xf32> to vector<8x128xf32>
    %42 = arith.negf %41 : vector<8x128xf32>
    %43 = math.exp %42 : vector<8x128xf32>
    %cst_15 = arith.constant 1.000000e+00 : f32
    %44 = vector.broadcast %cst_15 : f32 to vector<8x128xf32>
    %45 = arith.addf %44, %43 : vector<8x128xf32>
    %46 = arith.divf %44, %45 : vector<8x128xf32>
    %47 = vector.extract_strided_slice %40 {offsets = [0, 128], sizes = [8, 128], strides = [1, 1]} : vector<8x512xf32> to vector<8x128xf32>
    %48 = arith.negf %47 : vector<8x128xf32>
    %49 = math.exp %48 : vector<8x128xf32>
    %cst_16 = arith.constant 1.000000e+00 : f32
    %50 = vector.broadcast %cst_16 : f32 to vector<8x128xf32>
    %51 = arith.addf %50, %49 : vector<8x128xf32>
    %52 = arith.divf %50, %51 : vector<8x128xf32>
    %53 = vector.extract_strided_slice %40 {offsets = [0, 256], sizes = [8, 128], strides = [1, 1]} : vector<8x512xf32> to vector<8x128xf32>
    %54 = math.tanh %53 : vector<8x128xf32>
    %55 = vector.extract_strided_slice %40 {offsets = [0, 384], sizes = [8, 128], strides = [1, 1]} : vector<8x512xf32> to vector<8x128xf32>
    %56 = arith.negf %55 : vector<8x128xf32>
    %57 = math.exp %56 : vector<8x128xf32>
    %cst_17 = arith.constant 1.000000e+00 : f32
    %58 = vector.broadcast %cst_17 : f32 to vector<8x128xf32>
    %59 = arith.addf %58, %57 : vector<8x128xf32>
    %60 = arith.divf %58, %59 : vector<8x128xf32>
    %61 = arith.mulf %52, %33 : vector<8x128xf32>
    %62 = arith.mulf %46, %54 : vector<8x128xf32>
    %63 = arith.addf %61, %62 : vector<8x128xf32>
    %64 = math.tanh %63 : vector<8x128xf32>
    %65 = arith.mulf %60, %64 : vector<8x128xf32>
    %c2_i32 = arith.constant 2 : i32
    %66 = arith.index_cast %c2_i32 : i32 to index
    %c0_18 = arith.constant 0 : index
    %c0_19 = arith.constant 0 : index
    %67 = vector.load %arg2[%66, %c0_18, %c0_19] : memref<8x8x512xf32, #tpu.memory_space<vmem>>, vector<1x8x512xf32>
    %68 = vector.shape_cast %67 : vector<1x8x512xf32> to vector<8x512xf32>
    %cst_20 = arith.constant dense<0.000000e+00> : vector<8x512xf32>
    %69 = tpu.matmul %65, %3, %cst_20 {dimension_numbers = #tpu.dot_dimension_numbers<[1], [0], [0], [1], [0, 0, 1, 1], [], []>} : vector<8x128xf32>, vector<128x512xf32>, vector<8x512xf32> -> vector<8x512xf32>
    %70 = arith.addf %68, %69 : vector<8x512xf32>
    %71 = vector.extract_strided_slice %70 {offsets = [0, 0], sizes = [8, 128], strides = [1, 1]} : vector<8x512xf32> to vector<8x128xf32>
    %72 = arith.negf %71 : vector<8x128xf32>
    %73 = math.exp %72 : vector<8x128xf32>
    %cst_21 = arith.constant 1.000000e+00 : f32
    %74 = vector.broadcast %cst_21 : f32 to vector<8x128xf32>
    %75 = arith.addf %74, %73 : vector<8x128xf32>
    %76 = arith.divf %74, %75 : vector<8x128xf32>
    %77 = vector.extract_strided_slice %70 {offsets = [0, 128], sizes = [8, 128], strides = [1, 1]} : vector<8x512xf32> to vector<8x128xf32>
    %78 = arith.negf %77 : vector<8x128xf32>
    %79 = math.exp %78 : vector<8x128xf32>
    %cst_22 = arith.constant 1.000000e+00 : f32
    %80 = vector.broadcast %cst_22 : f32 to vector<8x128xf32>
    %81 = arith.addf %80, %79 : vector<8x128xf32>
    %82 = arith.divf %80, %81 : vector<8x128xf32>
    %83 = vector.extract_strided_slice %70 {offsets = [0, 256], sizes = [8, 128], strides = [1, 1]} : vector<8x512xf32> to vector<8x128xf32>
    %84 = math.tanh %83 : vector<8x128xf32>
    %85 = vector.extract_strided_slice %70 {offsets = [0, 384], sizes = [8, 128], strides = [1, 1]} : vector<8x512xf32> to vector<8x128xf32>
    %86 = arith.negf %85 : vector<8x128xf32>
    %87 = math.exp %86 : vector<8x128xf32>
    %cst_23 = arith.constant 1.000000e+00 : f32
    %88 = vector.broadcast %cst_23 : f32 to vector<8x128xf32>
    %89 = arith.addf %88, %87 : vector<8x128xf32>
    %90 = arith.divf %88, %89 : vector<8x128xf32>
    %91 = arith.mulf %82, %63 : vector<8x128xf32>
    %92 = arith.mulf %76, %84 : vector<8x128xf32>
    %93 = arith.addf %91, %92 : vector<8x128xf32>
    %94 = math.tanh %93 : vector<8x128xf32>
    %95 = arith.mulf %90, %94 : vector<8x128xf32>
    %c3_i32 = arith.constant 3 : i32
    %96 = arith.index_cast %c3_i32 : i32 to index
    %c0_24 = arith.constant 0 : index
    %c0_25 = arith.constant 0 : index
    %97 = vector.load %arg2[%96, %c0_24, %c0_25] : memref<8x8x512xf32, #tpu.memory_space<vmem>>, vector<1x8x512xf32>
    %98 = vector.shape_cast %97 : vector<1x8x512xf32> to vector<8x512xf32>
    %cst_26 = arith.constant dense<0.000000e+00> : vector<8x512xf32>
    %99 = tpu.matmul %95, %3, %cst_26 {dimension_numbers = #tpu.dot_dimension_numbers<[1], [0], [0], [1], [0, 0, 1, 1], [], []>} : vector<8x128xf32>, vector<128x512xf32>, vector<8x512xf32> -> vector<8x512xf32>
    %100 = arith.addf %98, %99 : vector<8x512xf32>
    %101 = vector.extract_strided_slice %100 {offsets = [0, 0], sizes = [8, 128], strides = [1, 1]} : vector<8x512xf32> to vector<8x128xf32>
    %102 = arith.negf %101 : vector<8x128xf32>
    %103 = math.exp %102 : vector<8x128xf32>
    %cst_27 = arith.constant 1.000000e+00 : f32
    %104 = vector.broadcast %cst_27 : f32 to vector<8x128xf32>
    %105 = arith.addf %104, %103 : vector<8x128xf32>
    %106 = arith.divf %104, %105 : vector<8x128xf32>
    %107 = vector.extract_strided_slice %100 {offsets = [0, 128], sizes = [8, 128], strides = [1, 1]} : vector<8x512xf32> to vector<8x128xf32>
    %108 = arith.negf %107 : vector<8x128xf32>
    %109 = math.exp %108 : vector<8x128xf32>
    %cst_28 = arith.constant 1.000000e+00 : f32
    %110 = vector.broadcast %cst_28 : f32 to vector<8x128xf32>
    %111 = arith.addf %110, %109 : vector<8x128xf32>
    %112 = arith.divf %110, %111 : vector<8x128xf32>
    %113 = vector.extract_strided_slice %100 {offsets = [0, 256], sizes = [8, 128], strides = [1, 1]} : vector<8x512xf32> to vector<8x128xf32>
    %114 = math.tanh %113 : vector<8x128xf32>
    %115 = vector.extract_strided_slice %100 {offsets = [0, 384], sizes = [8, 128], strides = [1, 1]} : vector<8x512xf32> to vector<8x128xf32>
    %116 = arith.negf %115 : vector<8x128xf32>
    %117 = math.exp %116 : vector<8x128xf32>
    %cst_29 = arith.constant 1.000000e+00 : f32
    %118 = vector.broadcast %cst_29 : f32 to vector<8x128xf32>
    %119 = arith.addf %118, %117 : vector<8x128xf32>
    %120 = arith.divf %118, %119 : vector<8x128xf32>
    %121 = arith.mulf %112, %93 : vector<8x128xf32>
    %122 = arith.mulf %106, %114 : vector<8x128xf32>
    %123 = arith.addf %121, %122 : vector<8x128xf32>
    %124 = math.tanh %123 : vector<8x128xf32>
    %125 = arith.mulf %120, %124 : vector<8x128xf32>
    %c4_i32 = arith.constant 4 : i32
    %126 = arith.index_cast %c4_i32 : i32 to index
    %c0_30 = arith.constant 0 : index
    %c0_31 = arith.constant 0 : index
    %127 = vector.load %arg2[%126, %c0_30, %c0_31] : memref<8x8x512xf32, #tpu.memory_space<vmem>>, vector<1x8x512xf32>
    %128 = vector.shape_cast %127 : vector<1x8x512xf32> to vector<8x512xf32>
    %cst_32 = arith.constant dense<0.000000e+00> : vector<8x512xf32>
    %129 = tpu.matmul %125, %3, %cst_32 {dimension_numbers = #tpu.dot_dimension_numbers<[1], [0], [0], [1], [0, 0, 1, 1], [], []>} : vector<8x128xf32>, vector<128x512xf32>, vector<8x512xf32> -> vector<8x512xf32>
    %130 = arith.addf %128, %129 : vector<8x512xf32>
    %131 = vector.extract_strided_slice %130 {offsets = [0, 0], sizes = [8, 128], strides = [1, 1]} : vector<8x512xf32> to vector<8x128xf32>
    %132 = arith.negf %131 : vector<8x128xf32>
    %133 = math.exp %132 : vector<8x128xf32>
    %cst_33 = arith.constant 1.000000e+00 : f32
    %134 = vector.broadcast %cst_33 : f32 to vector<8x128xf32>
    %135 = arith.addf %134, %133 : vector<8x128xf32>
    %136 = arith.divf %134, %135 : vector<8x128xf32>
    %137 = vector.extract_strided_slice %130 {offsets = [0, 128], sizes = [8, 128], strides = [1, 1]} : vector<8x512xf32> to vector<8x128xf32>
    %138 = arith.negf %137 : vector<8x128xf32>
    %139 = math.exp %138 : vector<8x128xf32>
    %cst_34 = arith.constant 1.000000e+00 : f32
    %140 = vector.broadcast %cst_34 : f32 to vector<8x128xf32>
    %141 = arith.addf %140, %139 : vector<8x128xf32>
    %142 = arith.divf %140, %141 : vector<8x128xf32>
    %143 = vector.extract_strided_slice %130 {offsets = [0, 256], sizes = [8, 128], strides = [1, 1]} : vector<8x512xf32> to vector<8x128xf32>
    %144 = math.tanh %143 : vector<8x128xf32>
    %145 = vector.extract_strided_slice %130 {offsets = [0, 384], sizes = [8, 128], strides = [1, 1]} : vector<8x512xf32> to vector<8x128xf32>
    %146 = arith.negf %145 : vector<8x128xf32>
    %147 = math.exp %146 : vector<8x128xf32>
    %cst_35 = arith.constant 1.000000e+00 : f32
    %148 = vector.broadcast %cst_35 : f32 to vector<8x128xf32>
    %149 = arith.addf %148, %147 : vector<8x128xf32>
    %150 = arith.divf %148, %149 : vector<8x128xf32>
    %151 = arith.mulf %142, %123 : vector<8x128xf32>
    %152 = arith.mulf %136, %144 : vector<8x128xf32>
    %153 = arith.addf %151, %152 : vector<8x128xf32>
    %154 = math.tanh %153 : vector<8x128xf32>
    %155 = arith.mulf %150, %154 : vector<8x128xf32>
    %c5_i32 = arith.constant 5 : i32
    %156 = arith.index_cast %c5_i32 : i32 to index
    %c0_36 = arith.constant 0 : index
    %c0_37 = arith.constant 0 : index
    %157 = vector.load %arg2[%156, %c0_36, %c0_37] : memref<8x8x512xf32, #tpu.memory_space<vmem>>, vector<1x8x512xf32>
    %158 = vector.shape_cast %157 : vector<1x8x512xf32> to vector<8x512xf32>
    %cst_38 = arith.constant dense<0.000000e+00> : vector<8x512xf32>
    %159 = tpu.matmul %155, %3, %cst_38 {dimension_numbers = #tpu.dot_dimension_numbers<[1], [0], [0], [1], [0, 0, 1, 1], [], []>} : vector<8x128xf32>, vector<128x512xf32>, vector<8x512xf32> -> vector<8x512xf32>
    %160 = arith.addf %158, %159 : vector<8x512xf32>
    %161 = vector.extract_strided_slice %160 {offsets = [0, 0], sizes = [8, 128], strides = [1, 1]} : vector<8x512xf32> to vector<8x128xf32>
    %162 = arith.negf %161 : vector<8x128xf32>
    %163 = math.exp %162 : vector<8x128xf32>
    %cst_39 = arith.constant 1.000000e+00 : f32
    %164 = vector.broadcast %cst_39 : f32 to vector<8x128xf32>
    %165 = arith.addf %164, %163 : vector<8x128xf32>
    %166 = arith.divf %164, %165 : vector<8x128xf32>
    %167 = vector.extract_strided_slice %160 {offsets = [0, 128], sizes = [8, 128], strides = [1, 1]} : vector<8x512xf32> to vector<8x128xf32>
    %168 = arith.negf %167 : vector<8x128xf32>
    %169 = math.exp %168 : vector<8x128xf32>
    %cst_40 = arith.constant 1.000000e+00 : f32
    %170 = vector.broadcast %cst_40 : f32 to vector<8x128xf32>
    %171 = arith.addf %170, %169 : vector<8x128xf32>
    %172 = arith.divf %170, %171 : vector<8x128xf32>
    %173 = vector.extract_strided_slice %160 {offsets = [0, 256], sizes = [8, 128], strides = [1, 1]} : vector<8x512xf32> to vector<8x128xf32>
    %174 = math.tanh %173 : vector<8x128xf32>
    %175 = vector.extract_strided_slice %160 {offsets = [0, 384], sizes = [8, 128], strides = [1, 1]} : vector<8x512xf32> to vector<8x128xf32>
    %176 = arith.negf %175 : vector<8x128xf32>
    %177 = math.exp %176 : vector<8x128xf32>
    %cst_41 = arith.constant 1.000000e+00 : f32
    %178 = vector.broadcast %cst_41 : f32 to vector<8x128xf32>
    %179 = arith.addf %178, %177 : vector<8x128xf32>
    %180 = arith.divf %178, %179 : vector<8x128xf32>
    %181 = arith.mulf %172, %153 : vector<8x128xf32>
    %182 = arith.mulf %166, %174 : vector<8x128xf32>
    %183 = arith.addf %181, %182 : vector<8x128xf32>
    %184 = math.tanh %183 : vector<8x128xf32>
    %185 = arith.mulf %180, %184 : vector<8x128xf32>
    %c6_i32 = arith.constant 6 : i32
    %186 = arith.index_cast %c6_i32 : i32 to index
    %c0_42 = arith.constant 0 : index
    %c0_43 = arith.constant 0 : index
    %187 = vector.load %arg2[%186, %c0_42, %c0_43] : memref<8x8x512xf32, #tpu.memory_space<vmem>>, vector<1x8x512xf32>
    %188 = vector.shape_cast %187 : vector<1x8x512xf32> to vector<8x512xf32>
    %cst_44 = arith.constant dense<0.000000e+00> : vector<8x512xf32>
    %189 = tpu.matmul %185, %3, %cst_44 {dimension_numbers = #tpu.dot_dimension_numbers<[1], [0], [0], [1], [0, 0, 1, 1], [], []>} : vector<8x128xf32>, vector<128x512xf32>, vector<8x512xf32> -> vector<8x512xf32>
    %190 = arith.addf %188, %189 : vector<8x512xf32>
    %191 = vector.extract_strided_slice %190 {offsets = [0, 0], sizes = [8, 128], strides = [1, 1]} : vector<8x512xf32> to vector<8x128xf32>
    %192 = arith.negf %191 : vector<8x128xf32>
    %193 = math.exp %192 : vector<8x128xf32>
    %cst_45 = arith.constant 1.000000e+00 : f32
    %194 = vector.broadcast %cst_45 : f32 to vector<8x128xf32>
    %195 = arith.addf %194, %193 : vector<8x128xf32>
    %196 = arith.divf %194, %195 : vector<8x128xf32>
    %197 = vector.extract_strided_slice %190 {offsets = [0, 128], sizes = [8, 128], strides = [1, 1]} : vector<8x512xf32> to vector<8x128xf32>
    %198 = arith.negf %197 : vector<8x128xf32>
    %199 = math.exp %198 : vector<8x128xf32>
    %cst_46 = arith.constant 1.000000e+00 : f32
    %200 = vector.broadcast %cst_46 : f32 to vector<8x128xf32>
    %201 = arith.addf %200, %199 : vector<8x128xf32>
    %202 = arith.divf %200, %201 : vector<8x128xf32>
    %203 = vector.extract_strided_slice %190 {offsets = [0, 256], sizes = [8, 128], strides = [1, 1]} : vector<8x512xf32> to vector<8x128xf32>
    %204 = math.tanh %203 : vector<8x128xf32>
    %205 = vector.extract_strided_slice %190 {offsets = [0, 384], sizes = [8, 128], strides = [1, 1]} : vector<8x512xf32> to vector<8x128xf32>
    %206 = arith.negf %205 : vector<8x128xf32>
    %207 = math.exp %206 : vector<8x128xf32>
    %cst_47 = arith.constant 1.000000e+00 : f32
    %208 = vector.broadcast %cst_47 : f32 to vector<8x128xf32>
    %209 = arith.addf %208, %207 : vector<8x128xf32>
    %210 = arith.divf %208, %209 : vector<8x128xf32>
    %211 = arith.mulf %202, %183 : vector<8x128xf32>
    %212 = arith.mulf %196, %204 : vector<8x128xf32>
    %213 = arith.addf %211, %212 : vector<8x128xf32>
    %214 = math.tanh %213 : vector<8x128xf32>
    %215 = arith.mulf %210, %214 : vector<8x128xf32>
    %c7_i32 = arith.constant 7 : i32
    %216 = arith.index_cast %c7_i32 : i32 to index
    %c0_48 = arith.constant 0 : index
    %c0_49 = arith.constant 0 : index
    %217 = vector.load %arg2[%216, %c0_48, %c0_49] : memref<8x8x512xf32, #tpu.memory_space<vmem>>, vector<1x8x512xf32>
    %218 = vector.shape_cast %217 : vector<1x8x512xf32> to vector<8x512xf32>
    %cst_50 = arith.constant dense<0.000000e+00> : vector<8x512xf32>
    %219 = tpu.matmul %215, %3, %cst_50 {dimension_numbers = #tpu.dot_dimension_numbers<[1], [0], [0], [1], [0, 0, 1, 1], [], []>} : vector<8x128xf32>, vector<128x512xf32>, vector<8x512xf32> -> vector<8x512xf32>
    %220 = arith.addf %218, %219 : vector<8x512xf32>
    %221 = vector.extract_strided_slice %220 {offsets = [0, 0], sizes = [8, 128], strides = [1, 1]} : vector<8x512xf32> to vector<8x128xf32>
    %222 = arith.negf %221 : vector<8x128xf32>
    %223 = math.exp %222 : vector<8x128xf32>
    %cst_51 = arith.constant 1.000000e+00 : f32
    %224 = vector.broadcast %cst_51 : f32 to vector<8x128xf32>
    %225 = arith.addf %224, %223 : vector<8x128xf32>
    %226 = arith.divf %224, %225 : vector<8x128xf32>
    %227 = vector.extract_strided_slice %220 {offsets = [0, 128], sizes = [8, 128], strides = [1, 1]} : vector<8x512xf32> to vector<8x128xf32>
    %228 = arith.negf %227 : vector<8x128xf32>
    %229 = math.exp %228 : vector<8x128xf32>
    %cst_52 = arith.constant 1.000000e+00 : f32
    %230 = vector.broadcast %cst_52 : f32 to vector<8x128xf32>
    %231 = arith.addf %230, %229 : vector<8x128xf32>
    %232 = arith.divf %230, %231 : vector<8x128xf32>
    %233 = vector.extract_strided_slice %220 {offsets = [0, 256], sizes = [8, 128], strides = [1, 1]} : vector<8x512xf32> to vector<8x128xf32>
    %234 = math.tanh %233 : vector<8x128xf32>
    %235 = vector.extract_strided_slice %220 {offsets = [0, 384], sizes = [8, 128], strides = [1, 1]} : vector<8x512xf32> to vector<8x128xf32>
    %236 = arith.negf %235 : vector<8x128xf32>
    %237 = math.exp %236 : vector<8x128xf32>
    %cst_53 = arith.constant 1.000000e+00 : f32
    %238 = vector.broadcast %cst_53 : f32 to vector<8x128xf32>
    %239 = arith.addf %238, %237 : vector<8x128xf32>
    %240 = arith.divf %238, %239 : vector<8x128xf32>
    %241 = arith.mulf %232, %213 : vector<8x128xf32>
    %242 = arith.mulf %226, %234 : vector<8x128xf32>
    %243 = arith.addf %241, %242 : vector<8x128xf32>
    %244 = math.tanh %243 : vector<8x128xf32>
    %245 = arith.mulf %240, %244 : vector<8x128xf32>
    %c8_i32 = arith.constant 8 : i32
    %c0_54 = arith.constant 0 : index
    %c0_55 = arith.constant 0 : index
    %246 = vector.load %arg5[%c0_54, %c0_55] : memref<8x128xf32, #tpu.memory_space<vmem>>, vector<8x128xf32>
    tpu.vector_store %arg5[%c0_54, %c0_55], %245 {strides = array<i32>} : memref<8x128xf32, #tpu.memory_space<vmem>>, vector<8x128xf32>,
    %c0_56 = arith.constant 0 : index
    %c0_57 = arith.constant 0 : index
    %247 = vector.load %arg6[%c0_56, %c0_57] : memref<8x128xf32, #tpu.memory_space<vmem>>, vector<8x128xf32>
    tpu.vector_store %arg6[%c0_56, %c0_57], %243 {strides = array<i32>} : memref<8x128xf32, #tpu.memory_space<vmem>>, vector<8x128xf32>,
    %c0_i32_58 = arith.constant 0 : i32
    %248 = arith.cmpi eq, %arg1, %c0_i32_58 : i32
    %249 = arith.extui %248 : i1 to i32
    %c0_i32_59 = arith.constant 0 : i32
    %250 = arith.cmpi ne, %249, %c0_i32_59 : i32
    scf.if %250 {
      %c0_60 = arith.constant 0 : index
      %c0_61 = arith.constant 0 : index
      %251 = vector.load %arg4[%c0_60, %c0_61] : memref<8x128xf32, #tpu.memory_space<vmem>>, vector<8x128xf32>
      tpu.vector_store %arg4[%c0_60, %c0_61], %245 {strides = array<i32>} : memref<8x128xf32, #tpu.memory_space<vmem>>, vector<8x128xf32>,
    } else {
    }
    return
  }
  func.func @transform_0(%arg0: i32, %arg1: i32) -> (i32, i32, i32) {
    %c0_i32 = arith.constant 0 : i32
    %c0_i32_0 = arith.constant 0 : i32
    return %arg1, %arg0, %c0_i32 : i32, i32, i32
  }
  func.func @transform_1(%arg0: i32, %arg1: i32) -> (i32, i32) {
    %c0_i32 = arith.constant 0 : i32
    %c0_i32_0 = arith.constant 0 : i32
    %c0_i32_1 = arith.constant 0 : i32
    return %c0_i32, %c0_i32_0 : i32, i32
  }
  func.func @transform_2(%arg0: i32, %arg1: i32) -> (i32, i32) {
    %c0_i32 = arith.constant 0 : i32
    %c0_i32_0 = arith.constant 0 : i32
    return %arg0, %c0_i32 : i32, i32
  }
}

module attributes {stable_mosaic.version = 11 : i64} {
  func.func @_linear_kernel(%arg0: i32, %arg1: i32, %arg2: memref<8x128xf32, #tpu.memory_space<vmem>>, %arg3: memref<128x256xf32, #tpu.memory_space<vmem>>, %arg4: memref<1x256xf32, #tpu.memory_space<vmem>>, %arg5: memref<8x256xf32, #tpu.memory_space<vmem>>) attributes {dimension_semantics = [#tpu.dimension_semantics<parallel>, #tpu.dimension_semantics<parallel>], iteration_bounds = array<i64: 1, 1>, scalar_prefetch = 0 : i64, scratch_operands = 0 : i64, tpu.core_type = #tpu.core_type<tc>, window_params = [{transform_indices = @transform_0, window_bounds = array<i64: 8, 128>}, {transform_indices = @transform_1, window_bounds = array<i64: 128, 256>}, {transform_indices = @transform_2, window_bounds = array<i64: 1, 256>}, {transform_indices = @transform_3, window_bounds = array<i64: 8, 256>}]} {
    %c0 = arith.constant 0 : index
    %c0_0 = arith.constant 0 : index
    %0 = vector.load %arg2[%c0, %c0_0] : memref<8x128xf32, #tpu.memory_space<vmem>>, vector<8x128xf32>
    %c0_1 = arith.constant 0 : index
    %c0_2 = arith.constant 0 : index
    %1 = vector.load %arg3[%c0_1, %c0_2] : memref<128x256xf32, #tpu.memory_space<vmem>>, vector<128x256xf32>
    %cst = arith.constant dense<0.000000e+00> : vector<8x256xf32>
    %2 = tpu.matmul %0, %1, %cst {dimension_numbers = #tpu.dot_dimension_numbers<[1], [0], [0], [1], [0, 0, 1, 1], [], []>} : vector<8x128xf32>, vector<128x256xf32>, vector<8x256xf32> -> vector<8x256xf32>
    %c0_3 = arith.constant 0 : index
    %c0_4 = arith.constant 0 : index
    %3 = vector.load %arg4[%c0_3, %c0_4] : memref<1x256xf32, #tpu.memory_space<vmem>>, vector<1x256xf32>
    %4 = vector.broadcast %3 : vector<1x256xf32> to vector<8x256xf32>
    %5 = arith.addf %2, %4 : vector<8x256xf32>
    %c0_5 = arith.constant 0 : index
    %c0_6 = arith.constant 0 : index
    %6 = vector.load %arg5[%c0_5, %c0_6] : memref<8x256xf32, #tpu.memory_space<vmem>>, vector<8x256xf32>
    tpu.vector_store %arg5[%c0_5, %c0_6], %5 {strides = array<i32>} : memref<8x256xf32, #tpu.memory_space<vmem>>, vector<8x256xf32>,
    return
  }
  func.func @transform_0(%arg0: i32, %arg1: i32) -> (i32, i32) {
    %c0_i32 = arith.constant 0 : i32
    %c0_i32_0 = arith.constant 0 : i32
    return %arg0, %c0_i32 : i32, i32
  }
  func.func @transform_1(%arg0: i32, %arg1: i32) -> (i32, i32) {
    %c0_i32 = arith.constant 0 : i32
    %c0_i32_0 = arith.constant 0 : i32
    return %c0_i32, %arg1 : i32, i32
  }
  func.func @transform_2(%arg0: i32, %arg1: i32) -> (i32, i32) {
    %c0_i32 = arith.constant 0 : i32
    %c0_i32_0 = arith.constant 0 : i32
    return %c0_i32, %arg1 : i32, i32
  }
  func.func @transform_3(%arg0: i32, %arg1: i32) -> (i32, i32) {
    %c0_i32 = arith.constant 0 : i32
    return %arg0, %arg1 : i32, i32
  }
}

module attributes {stable_mosaic.version = 11 : i64} {
  func.func @_linear_kernel(%arg0: i32, %arg1: i32, %arg2: memref<64x128xf32, #tpu.memory_space<vmem>>, %arg3: memref<128x512xf32, #tpu.memory_space<vmem>>, %arg4: memref<1x512xf32, #tpu.memory_space<vmem>>, %arg5: memref<64x512xf32, #tpu.memory_space<vmem>>) attributes {dimension_semantics = [#tpu.dimension_semantics<parallel>, #tpu.dimension_semantics<parallel>], iteration_bounds = array<i64: 1, 1>, scalar_prefetch = 0 : i64, scratch_operands = 0 : i64, tpu.core_type = #tpu.core_type<tc>, window_params = [{transform_indices = @transform_0, window_bounds = array<i64: 64, 128>}, {transform_indices = @transform_1, window_bounds = array<i64: 128, 512>}, {transform_indices = @transform_2, window_bounds = array<i64: 1, 512>}, {transform_indices = @transform_3, window_bounds = array<i64: 64, 512>}]} {
    %c0 = arith.constant 0 : index
    %c0_0 = arith.constant 0 : index
    %0 = vector.load %arg2[%c0, %c0_0] : memref<64x128xf32, #tpu.memory_space<vmem>>, vector<64x128xf32>
    %c0_1 = arith.constant 0 : index
    %c0_2 = arith.constant 0 : index
    %1 = vector.load %arg3[%c0_1, %c0_2] : memref<128x512xf32, #tpu.memory_space<vmem>>, vector<128x512xf32>
    %cst = arith.constant dense<0.000000e+00> : vector<64x512xf32>
    %2 = tpu.matmul %0, %1, %cst {dimension_numbers = #tpu.dot_dimension_numbers<[1], [0], [0], [1], [0, 0, 1, 1], [], []>} : vector<64x128xf32>, vector<128x512xf32>, vector<64x512xf32> -> vector<64x512xf32>
    %c0_3 = arith.constant 0 : index
    %c0_4 = arith.constant 0 : index
    %3 = vector.load %arg4[%c0_3, %c0_4] : memref<1x512xf32, #tpu.memory_space<vmem>>, vector<1x512xf32>
    %4 = vector.broadcast %3 : vector<1x512xf32> to vector<64x512xf32>
    %5 = arith.addf %2, %4 : vector<64x512xf32>
    %c0_5 = arith.constant 0 : index
    %c0_6 = arith.constant 0 : index
    %6 = vector.load %arg5[%c0_5, %c0_6] : memref<64x512xf32, #tpu.memory_space<vmem>>, vector<64x512xf32>
    tpu.vector_store %arg5[%c0_5, %c0_6], %5 {strides = array<i32>} : memref<64x512xf32, #tpu.memory_space<vmem>>, vector<64x512xf32>,
    return
  }
  func.func @transform_0(%arg0: i32, %arg1: i32) -> (i32, i32) {
    %c0_i32 = arith.constant 0 : i32
    %c0_i32_0 = arith.constant 0 : i32
    return %arg0, %c0_i32 : i32, i32
  }
  func.func @transform_1(%arg0: i32, %arg1: i32) -> (i32, i32) {
    %c0_i32 = arith.constant 0 : i32
    %c0_i32_0 = arith.constant 0 : i32
    return %c0_i32, %arg1 : i32, i32
  }
  func.func @transform_2(%arg0: i32, %arg1: i32) -> (i32, i32) {
    %c0_i32 = arith.constant 0 : i32
    %c0_i32_0 = arith.constant 0 : i32
    return %c0_i32, %arg1 : i32, i32
  }
  func.func @transform_3(%arg0: i32, %arg1: i32) -> (i32, i32) {
    %c0_i32 = arith.constant 0 : i32
    return %arg0, %arg1 : i32, i32
  }
}

</mosaic_0001>

<bundles_post_ra>
// kernel: lstm_model_forward.5
= control target key start
LH: loop header
LB: loop body
LE: loop exit
PB: predicated region body
PF: predicated region fallthrough
CT: control target
= control target key end

     0   :  { %s265_s0 = inlined_call_operand.vmem [shape: f32[8,128], index: 0, kind: input, shape index: {}]   ;;  %s266_s1 = inlined_call_operand.vmem [shape: f32[128,256], index: 1, kind: input, shape index: {}]   ;;  %s267_s2 = inlined_call_operand.vmem [shape: f32[1,256], index: 2, kind: input, shape index: {}]   ;;  %s268_s3 = inlined_call_operand.hbm [shape: f32[8,256], index: 3, kind: output, shape index: {}]  }
   0x1   :  { %v46_v0 = vld [vmem:[%s266_s1 + $0xf0] sm:$0xff]  ;;  %v47_v1 = vld [vmem:[%s266_s1 + $0xf8] sm:$0xff]  ;;  %v44_v2 = vld [vmem:[%s266_s1 + $0xe0] sm:$0xff] }
   0x2   :  { %54 = vmatpush.msra.mxu0 %v46_v0  ;;  %74 = vmatpush.msra.mxu1 %v47_v1  ;;  %v45_v3 = vld [vmem:[%s266_s1 + $0xe8] sm:$0xff]  ;;  %v42_v4 = vld [vmem:[%s266_s1 + $0xd0] sm:$0xff]  ;;  %v43_v5 = vld [vmem:[%s266_s1 + $0xd8] sm:$0xff] }
   0x3   :  { %v40_v6 = vld [vmem:[%s266_s1 + $0xc0] sm:$0xff]  ;;  %v41_v7 = vld [vmem:[%s266_s1 + $0xc8] sm:$0xff]  ;;  %v38_v8 = vld [vmem:[%s266_s1 + $0xb0] sm:$0xff] }
   0x4   :  { %55 = vmatpush.msra.mxu0 %v44_v2  ;;  %75 = vmatpush.msra.mxu1 %v45_v3  ;;  %v39_v9 = vld [vmem:[%s266_s1 + $0xb8] sm:$0xff]  ;;  %v36_v10 = vld [vmem:[%s266_s1 + $0xa0] sm:$0xff]  ;;  %v37_v11 = vld [vmem:[%s266_s1 + $0xa8] sm:$0xff] }
   0x5   :  { %v34_v12 = vld [vmem:[%s266_s1 + $0x90] sm:$0xff]  ;;  %v35_v13 = vld [vmem:[%s266_s1 + $0x98] sm:$0xff] }
   0x6   :  { %56 = vmatpush.msra.mxu0 %v42_v4  ;;  %76 = vmatpush.msra.mxu1 %v43_v5 }
   0x8   :  { %57 = vmatpush.msra.mxu0 %v40_v6  ;;  %77 = vmatpush.msra.mxu1 %v41_v7 }
   0xa   :  { %58 = vmatpush.msra.mxu0 %v38_v8  ;;  %78 = vmatpush.msra.mxu1 %v39_v9 }
   0xc   :  { %59 = vmatpush.msra.mxu0 %v36_v10  ;;  %79 = vmatpush.msra.mxu1 %v37_v11 }
   0xd   :  { %8 = vsyncpa [#allocation3], 0  ;;  %v32_v14 = vld [vmem:[%s266_s1 + $0x80] sm:$0xff]  ;;  %v33_v15 = vld [vmem:[%s266_s1 + $0x88] sm:$0xff]  ;;  %s139_s26 = smov [#allocation2]   ;;  %s103_s29 = sshll.u32 %s268_s3, 4  ;;  %s104_s29 = int_to_ptr.hbm [resolvable:$true] %s103_s29 }
   0xe   :  { %60 = vmatpush.msra.mxu0 %v34_v12  ;;  %80 = vmatpush.msra.mxu1 %v35_v13  ;;  %v30_v16 = vld [vmem:[%s266_s1 + $0x70] sm:$0xff]  ;;  %v31_v17 = vld [vmem:[%s266_s1 + $0x78] sm:$0xff]  ;;  %v28_v18 = vld [vmem:[%s266_s1 + $0x60] sm:$0xff]  ;;  %s101_s27 = sshll.u32 %s139_s26, 4  ;;  %s102_s27 = int_to_ptr.vmem [resolvable:$true] %s101_s27 }
   0xf   :  { %v29_v19 = vld [vmem:[%s266_s1 + $0x68] sm:$0xff]  ;;  %v26_v20 = vld [vmem:[%s266_s1 + $0x50] sm:$0xff]  ;;  %v27_v21 = vld [vmem:[%s266_s1 + $0x58] sm:$0xff] }
  0x10   :  { %61 = vmatpush.msra.mxu0 %v32_v14  ;;  %81 = vmatpush.msra.mxu1 %v33_v15  ;;  %v24_v22 = vld [vmem:[%s266_s1 + $0x40] sm:$0xff]  ;;  %v25_v23 = vld [vmem:[%s266_s1 + $0x48] sm:$0xff]  ;;  %v22_v24 = vld [vmem:[%s266_s1 + $0x30] sm:$0xff] }
  0x11   :  { %v23_v25 = vld [vmem:[%s266_s1 + $0x38] sm:$0xff]  ;;  %v20_v26 = vld [vmem:[%s266_s1 + $0x20] sm:$0xff]  ;;  %v21_v27 = vld [vmem:[%s266_s1 + $0x28] sm:$0xff] }
  0x12   :  { %62 = vmatpush.msra.mxu0 %v30_v16  ;;  %82 = vmatpush.msra.mxu1 %v31_v17  ;;  %v18_v28 = vld [vmem:[%s266_s1 + $0x10] sm:$0xff]  ;;  %v19_v29 = vld [vmem:[%s266_s1 + $0x18] sm:$0xff]  ;;  %v16_v30 = vld [vmem:[%s266_s1] sm:$0xff] }
  0x13   :  { %v17_v31 = vld [vmem:[%s266_s1 + $0x8] sm:$0xff]  ;;  %v15_v32 = vld [vmem:[%s265_s0] sm:$0xff] }
  0x14   :  { %63 = vmatpush.msra.mxu0 %v28_v18  ;;  %83 = vmatpush.msra.mxu1 %v29_v19  ;;  %v48_v33 = vld [vmem:[%s267_s2] sm:$0x3] }
  0x15   :  { %v50_v34 = vperm.slane %v48_v33, 0  ;;  %v51_v35 = vperm.slane %v48_v33, 1 }
  0x16   :  { %64 = vmatpush.msra.mxu0 %v26_v20  ;;  %84 = vmatpush.msra.mxu1 %v27_v21 }
  0x18   :  { %65 = vmatpush.msra.mxu0 %v24_v22  ;;  %85 = vmatpush.msra.mxu1 %v25_v23 }
  0x1a   :  { %66 = vmatpush.msra.mxu0 %v22_v24  ;;  %86 = vmatpush.msra.mxu1 %v23_v25 }
  0x1c   :  { %67 = vmatpush.msra.mxu0 %v20_v26  ;;  %87 = vmatpush.msra.mxu1 %v21_v27 }
  0x1e   :  { %68 = vmatpush.msra.mxu0 %v18_v28  ;;  %88 = vmatpush.msra.mxu1 %v19_v29 }
  0x20   :  { %69 = vmatpush.msra.mxu0 %v16_v30  ;;  %89 = vmatpush.msra.mxu1 %v17_v31 }
  0x21   :  { %70 = vmatmul.f32.vlgmr.msra.gmra.mxu0 %v15_v32  ;;  %90 = vmatmul.f32.vlgmr.msra.gmra.mxu1 %v15_v32 }
  0x9e   :  { %v71_v36 = vpop.f32.mrf.mxu0  ;;  %v91_v37 = vpop.f32.mrf.mxu1 }
  0x9f   :  { %v72_v38 = vadd.f32 %v71_v36, %v50_v34  ;;  %v92_v39 = vadd.f32 %v91_v37, %v51_v35 }
  0xa1   :  { %94 = vst [vmem:[#allocation2] sm:$0xff] %v72_v38 }
  0xa2   :  { %95 = vst [vmem:[#allocation2 + $0x8] sm:$0xff] %v92_v39 }
  0xa3   :  { %106 = dma.vmem_to_hbm [thread:$0]  %s102_s27, 256, %s104_s29, [#allocation3]  }
  0xa4   :  { %137 = dma.done.wait [#allocation3], 256  }
  0xa5   :  { %138 = vsyncadd [#allocation3], 4294967040 }
  0xa6   :  { %111 = vsyncpa [#allocation3], 1 }

// kernel: lstm_model_forward.3
= control target key start
LH: loop header
LB: loop body
LE: loop exit
PB: predicated region body
PF: predicated region fallthrough
CT: control target
= control target key end

     0   :  { %s671_s1 = inlined_call_operand.vmem [shape: f32[128,512], index: 1, kind: input, shape index: {}]   ;;  %s672_s0 = inlined_call_operand.vmem [shape: f32[64,128], index: 0, kind: input, shape index: {}]   ;;  %s673_s2 = inlined_call_operand.vmem [shape: f32[1,512], index: 2, kind: input, shape index: {}]   ;;  %s674_s3 = inlined_call_operand.vmem [shape: f32[64,512], index: 3, kind: output, shape index: {}]  }
   0x1   :  { %v84_v0 = vld [vmem:[%s671_s1 + $0x1f0] sm:$0xff]  ;;  %v85_v1 = vld [vmem:[%s671_s1 + $0x1f8] sm:$0xff]  ;;  %v82_v6 = vld [vmem:[%s671_s1 + $0x1e0] sm:$0xff] }
   0x2   :  { %v80_v2 = vld [vmem:[%s671_s1 + $0x1d0] sm:$0xff]  ;;  %178 = vmatpush.msra.mxu2 %v84_v0  ;;  %219 = vmatpush.msra.mxu3 %v85_v1  ;;  %v81_v3 = vld [vmem:[%s671_s1 + $0x1d8] sm:$0xff]  ;;  %v83_v7 = vld [vmem:[%s671_s1 + $0x1e8] sm:$0xff] }
   0x3   :  { %v76_v4 = vld [vmem:[%s671_s1 + $0x1b0] sm:$0xff]  ;;  %v77_v5 = vld [vmem:[%s671_s1 + $0x1b8] sm:$0xff]  ;;  %v78_v8 = vld [vmem:[%s671_s1 + $0x1c0] sm:$0xff]  ;;  %96 = vmatpush.msra.mxu0 %v82_v6  ;;  %137 = vmatpush.msra.mxu1 %v83_v7 }
   0x4   :  { %179 = vmatpush.msra.mxu2 %v80_v2  ;;  %220 = vmatpush.msra.mxu3 %v81_v3  ;;  %v79_v9 = vld [vmem:[%s671_s1 + $0x1c8] sm:$0xff]  ;;  %v72_v10 = vld [vmem:[%s671_s1 + $0x190] sm:$0xff]  ;;  %v73_v11 = vld [vmem:[%s671_s1 + $0x198] sm:$0xff] }
   0x5   :  { %v74_v12 = vld [vmem:[%s671_s1 + $0x1a0] sm:$0xff]  ;;  %v75_v13 = vld [vmem:[%s671_s1 + $0x1a8] sm:$0xff]  ;;  %97 = vmatpush.msra.mxu0 %v78_v8  ;;  %138 = vmatpush.msra.mxu1 %v79_v9  ;;  %v68_v14 = vld [vmem:[%s671_s1 + $0x170] sm:$0xff] }
   0x6   :  { %180 = vmatpush.msra.mxu2 %v76_v4  ;;  %221 = vmatpush.msra.mxu3 %v77_v5  ;;  %v69_v15 = vld [vmem:[%s671_s1 + $0x178] sm:$0xff]  ;;  %v70_v16 = vld [vmem:[%s671_s1 + $0x180] sm:$0xff]  ;;  %v71_v17 = vld [vmem:[%s671_s1 + $0x188] sm:$0xff] }
   0x7   :  { %98 = vmatpush.msra.mxu0 %v74_v12  ;;  %139 = vmatpush.msra.mxu1 %v75_v13  ;;  %v64_v18 = vld [vmem:[%s671_s1 + $0x150] sm:$0xff]  ;;  %v65_v19 = vld [vmem:[%s671_s1 + $0x158] sm:$0xff]  ;;  %v66_v20 = vld [vmem:[%s671_s1 + $0x160] sm:$0xff] }
   0x8   :  { %181 = vmatpush.msra.mxu2 %v72_v10  ;;  %222 = vmatpush.msra.mxu3 %v73_v11  ;;  %v67_v21 = vld [vmem:[%s671_s1 + $0x168] sm:$0xff]  ;;  %v60_v22 = vld [vmem:[%s671_s1 + $0x130] sm:$0xff]  ;;  %v61_v23 = vld [vmem:[%s671_s1 + $0x138] sm:$0xff] }
   0x9   :  { %99 = vmatpush.msra.mxu0 %v70_v16  ;;  %140 = vmatpush.msra.mxu1 %v71_v17  ;;  %v62_v24 = vld [vmem:[%s671_s1 + $0x140] sm:$0xff]  ;;  %v63_v25 = vld [vmem:[%s671_s1 + $0x148] sm:$0xff]  ;;  %v56_v26 = vld [vmem:[%s671_s1 + $0x110] sm:$0xff] }
   0xa   :  { %182 = vmatpush.msra.mxu2 %v68_v14  ;;  %223 = vmatpush.msra.mxu3 %v69_v15  ;;  %v57_v27 = vld [vmem:[%s671_s1 + $0x118] sm:$0xff]  ;;  %v58_v28 = vld [vmem:[%s671_s1 + $0x120] sm:$0xff]  ;;  %v59_v29 = vld [vmem:[%s671_s1 + $0x128] sm:$0xff] }
   0xb   :  { %100 = vmatpush.msra.mxu0 %v66_v20  ;;  %141 = vmatpush.msra.mxu1 %v67_v21  ;;  %v52_v30 = vld [vmem:[%s671_s1 + $0xf0] sm:$0xff]  ;;  %v53_v31 = vld [vmem:[%s671_s1 + $0xf8] sm:$0xff]  ;;  %v54_v32 = vld [vmem:[%s671_s1 + $0x100] sm:$0xff] }
   0xc   :  { %183 = vmatpush.msra.mxu2 %v64_v18  ;;  %224 = vmatpush.msra.mxu3 %v65_v19  ;;  %v55_v33 = vld [vmem:[%s671_s1 + $0x108] sm:$0xff]  ;;  %v48_v34 = vld [vmem:[%s671_s1 + $0xd0] sm:$0xff]  ;;  %v49_v35 = vld [vmem:[%s671_s1 + $0xd8] sm:$0xff] }
   0xd   :  { %101 = vmatpush.msra.mxu0 %v62_v24  ;;  %142 = vmatpush.msra.mxu1 %v63_v25  ;;  %v50_v36 = vld [vmem:[%s671_s1 + $0xe0] sm:$0xff]  ;;  %v51_v37 = vld [vmem:[%s671_s1 + $0xe8] sm:$0xff]  ;;  %v44_v38 = vld [vmem:[%s671_s1 + $0xb0] sm:$0xff] }
   0xe   :  { %184 = vmatpush.msra.mxu2 %v60_v22  ;;  %225 = vmatpush.msra.mxu3 %v61_v23  ;;  %v45_v39 = vld [vmem:[%s671_s1 + $0xb8] sm:$0xff]  ;;  %v46_v40 = vld [vmem:[%s671_s1 + $0xc0] sm:$0xff]  ;;  %v47_v41 = vld [vmem:[%s671_s1 + $0xc8] sm:$0xff] }
   0xf   :  { %102 = vmatpush.msra.mxu0 %v58_v28  ;;  %143 = vmatpush.msra.mxu1 %v59_v29  ;;  %v40_v42 = vld [vmem:[%s671_s1 + $0x90] sm:$0xff]  ;;  %v41_v43 = vld [vmem:[%s671_s1 + $0x98] sm:$0xff]  ;;  %v42_v44 = vld [vmem:[%s671_s1 + $0xa0] sm:$0xff] }
  0x10   :  { %185 = vmatpush.msra.mxu2 %v56_v26  ;;  %226 = vmatpush.msra.mxu3 %v57_v27  ;;  %v43_v45 = vld [vmem:[%s671_s1 + $0xa8] sm:$0xff]  ;;  %v36_v46 = vld [vmem:[%s671_s1 + $0x70] sm:$0xff]  ;;  %v37_v47 = vld [vmem:[%s671_s1 + $0x78] sm:$0xff] }
  0x11   :  { %103 = vmatpush.msra.mxu0 %v54_v32  ;;  %144 = vmatpush.msra.mxu1 %v55_v33  ;;  %v38_v48 = vld [vmem:[%s671_s1 + $0x80] sm:$0xff]  ;;  %v39_v49 = vld [vmem:[%s671_s1 + $0x88] sm:$0xff]  ;;  %v32_v50 = vld [vmem:[%s671_s1 + $0x50] sm:$0xff] }
  0x12   :  { %186 = vmatpush.msra.mxu2 %v52_v30  ;;  %227 = vmatpush.msra.mxu3 %v53_v31  ;;  %v33_v51 = vld [vmem:[%s671_s1 + $0x58] sm:$0xff]  ;;  %v34_v52 = vld [vmem:[%s671_s1 + $0x60] sm:$0xff]  ;;  %v35_v53 = vld [vmem:[%s671_s1 + $0x68] sm:$0xff] }
  0x13   :  { %104 = vmatpush.msra.mxu0 %v50_v36  ;;  %145 = vmatpush.msra.mxu1 %v51_v37  ;;  %v28_v54 = vld [vmem:[%s671_s1 + $0x30] sm:$0xff]  ;;  %v29_v55 = vld [vmem:[%s671_s1 + $0x38] sm:$0xff]  ;;  %v30_v56 = vld [vmem:[%s671_s1 + $0x40] sm:$0xff] }
  0x14   :  { %187 = vmatpush.msra.mxu2 %v48_v34  ;;  %228 = vmatpush.msra.mxu3 %v49_v35  ;;  %v31_v57 = vld [vmem:[%s671_s1 + $0x48] sm:$0xff]  ;;  %v24_v58 = vld [vmem:[%s671_s1 + $0x10] sm:$0xff]  ;;  %v25_v59 = vld [vmem:[%s671_s1 + $0x18] sm:$0xff] }
  0x15   :  { %105 = vmatpush.msra.mxu0 %v46_v40  ;;  %146 = vmatpush.msra.mxu1 %v47_v41  ;;  %v14_v60 = vld [vmem:[%s672_s0] sm:$0xff]  ;;  %v27_v62 = vld [vmem:[%s671_s1 + $0x28] sm:$0xff]  ;;  %v16_v2 = vld [vmem:[%s672_s0 + $0x10] sm:$0xff] }
  0x16   :  { %188 = vmatpush.msra.mxu2 %v44_v38  ;;  %229 = vmatpush.msra.mxu3 %v45_v39  ;;  %v26_v61 = vld [vmem:[%s671_s1 + $0x20] sm:$0xff]  ;;  %v23_v0 = vld [vmem:[%s671_s1 + $0x8] sm:$0xff]  ;;  %v17_v3 = vld [vmem:[%s672_s0 + $0x18] sm:$0xff] }
  0x17   :  { %106 = vmatpush.msra.mxu0 %v42_v44  ;;  %147 = vmatpush.msra.mxu1 %v43_v45  ;;  %v22_v63 = vld [vmem:[%s671_s1] sm:$0xff]  ;;  %v15_v1 = vld [vmem:[%s672_s0 + $0x8] sm:$0xff]  ;;  %v20_v6 = vld [vmem:[%s672_s0 + $0x30] sm:$0xff] }
  0x18   :  { %189 = vmatpush.msra.mxu2 %v40_v42  ;;  %230 = vmatpush.msra.mxu3 %v41_v43  ;;  %v18_v4 = vld [vmem:[%s672_s0 + $0x20] sm:$0xff]  ;;  %v19_v5 = vld [vmem:[%s672_s0 + $0x28] sm:$0xff]  ;;  %v21_v7 = vld [vmem:[%s672_s0 + $0x38] sm:$0xff] }
  0x19   :  { %107 = vmatpush.msra.mxu0 %v38_v48  ;;  %148 = vmatpush.msra.mxu1 %v39_v49  ;;  %v86_v8 = vld [vmem:[%s673_s2] sm:$0xf] }
  0x1a   :  { %190 = vmatpush.msra.mxu2 %v36_v46  ;;  %231 = vmatpush.msra.mxu3 %v37_v47  ;;  %v535_v9 = vperm.slane %v86_v8, 0  ;;  %v537_v10 = vperm.slane %v86_v8, 1  ;;  %v539_v11 = vperm.slane %v86_v8, 2  ;;  %v541_v12 = vperm.slane %v86_v8, 3 }
  0x1b   :  { %108 = vmatpush.msra.mxu0 %v34_v52  ;;  %149 = vmatpush.msra.mxu1 %v35_v53 }
  0x1c   :  { %191 = vmatpush.msra.mxu2 %v32_v50  ;;  %232 = vmatpush.msra.mxu3 %v33_v51 }
  0x1d   :  { %109 = vmatpush.msra.mxu0 %v30_v56  ;;  %150 = vmatpush.msra.mxu1 %v31_v57 }
  0x1e   :  { %192 = vmatpush.msra.mxu2 %v28_v54  ;;  %233 = vmatpush.msra.mxu3 %v29_v55 }
  0x1f   :  { %110 = vmatpush.msra.mxu0 %v26_v61  ;;  %151 = vmatpush.msra.mxu1 %v27_v62 }
  0x20   :  { %193 = vmatpush.msra.mxu2 %v24_v58  ;;  %234 = vmatpush.msra.mxu3 %v25_v59 }
  0x21   :  { %194 = vmatmul.f32.vlgmr.msra.gmra.mxu2 %v14_v60  ;;  %235 = vmatmul.f32.vlgmr.msra.gmra.mxu3 %v14_v60 }
  0x22   :  { %111 = vmatpush.msra.mxu0 %v22_v63  ;;  %152 = vmatpush.msra.mxu1 %v23_v0 }
  0x23   :  { %112 = vmatmul.f32.vlgmr.msra.gmra.mxu0 %v14_v60  ;;  %153 = vmatmul.f32.vlgmr.msra.gmra.mxu1 %v14_v60 }
  0x29   :  { %197 = vmatmul.f32.gmra.mxu2 %v15_v1  ;;  %238 = vmatmul.f32.gmra.mxu3 %v15_v1 }
  0x2b   :  { %115 = vmatmul.f32.gmra.mxu0 %v15_v1  ;;  %156 = vmatmul.f32.gmra.mxu1 %v15_v1 }
  0x31   :  { %200 = vmatmul.f32.gmra.mxu2 %v16_v2  ;;  %241 = vmatmul.f32.gmra.mxu3 %v16_v2 }
  0x33   :  { %118 = vmatmul.f32.gmra.mxu0 %v16_v2  ;;  %159 = vmatmul.f32.gmra.mxu1 %v16_v2 }
  0x39   :  { %203 = vmatmul.f32.gmra.mxu2 %v17_v3  ;;  %244 = vmatmul.f32.gmra.mxu3 %v17_v3 }
  0x3b   :  { %121 = vmatmul.f32.gmra.mxu0 %v17_v3  ;;  %162 = vmatmul.f32.gmra.mxu1 %v17_v3 }
  0x41   :  { %206 = vmatmul.f32.gmra.mxu2 %v18_v4  ;;  %247 = vmatmul.f32.gmra.mxu3 %v18_v4 }
  0x43   :  { %124 = vmatmul.f32.gmra.mxu0 %v18_v4  ;;  %165 = vmatmul.f32.gmra.mxu1 %v18_v4 }
  0x49   :  { %209 = vmatmul.f32.gmra.mxu2 %v19_v5  ;;  %250 = vmatmul.f32.gmra.mxu3 %v19_v5 }
  0x4b   :  { %127 = vmatmul.f32.gmra.mxu0 %v19_v5  ;;  %168 = vmatmul.f32.gmra.mxu1 %v19_v5 }
  0x51   :  { %212 = vmatmul.f32.gmra.mxu2 %v20_v6  ;;  %253 = vmatmul.f32.gmra.mxu3 %v20_v6 }
  0x53   :  { %130 = vmatmul.f32.gmra.mxu0 %v20_v6  ;;  %171 = vmatmul.f32.gmra.mxu1 %v20_v6 }
  0x59   :  { %215 = vmatmul.f32.gmra.mxu2 %v21_v7  ;;  %256 = vmatmul.f32.gmra.mxu3 %v21_v7 }
  0x5b   :  { %133 = vmatmul.f32.gmra.mxu0 %v21_v7  ;;  %174 = vmatmul.f32.gmra.mxu1 %v21_v7 }
  0xa0   :  { %v113_v13 = vpop.f32.mrf.mxu0  ;;  %v154_v14 = vpop.f32.mrf.mxu1 }
  0xa1   :  { %v114_v15 = vadd.f32 %v113_v13, %v535_v9  ;;  %v155_v16 = vadd.f32 %v154_v14, %v537_v10 }
  0xa3   :  { %260 = vst [vmem:[%s674_s3] sm:$0xff] %v114_v15 }
  0xa4   :  { %v195_v17 = vpop.f32.mrf.mxu2  ;;  %v236_v18 = vpop.f32.mrf.mxu3  ;;  %261 = vst [vmem:[%s674_s3 + $0x8] sm:$0xff] %v155_v16 }
  0xa5   :  { %v196_v19 = vadd.f32 %v195_v17, %v539_v11  ;;  %v237_v20 = vadd.f32 %v236_v18, %v541_v12 }
  0xa7   :  { %262 = vst [vmem:[%s674_s3 + $0x10] sm:$0xff] %v196_v19 }
  0xa8   :  { %263 = vst [vmem:[%s674_s3 + $0x18] sm:$0xff] %v237_v20  ;;  %v116_v21 = vpop.f32.mrf.mxu0  ;;  %v157_v22 = vpop.f32.mrf.mxu1 }
  0xa9   :  { %v117_v23 = vadd.f32 %v116_v21, %v535_v9  ;;  %v158_v24 = vadd.f32 %v157_v22, %v537_v10 }
  0xab   :  { %264 = vst [vmem:[%s674_s3 + $0x20] sm:$0xff] %v117_v23 }
  0xac   :  { %v198_v25 = vpop.f32.mrf.mxu2  ;;  %v239_v26 = vpop.f32.mrf.mxu3  ;;  %265 = vst [vmem:[%s674_s3 + $0x28] sm:$0xff] %v158_v24 }
  0xad   :  { %v199_v27 = vadd.f32 %v198_v25, %v539_v11  ;;  %v240_v28 = vadd.f32 %v239_v26, %v541_v12 }
  0xaf   :  { %266 = vst [vmem:[%s674_s3 + $0x30] sm:$0xff] %v199_v27 }
  0xb0   :  { %267 = vst [vmem:[%s674_s3 + $0x38] sm:$0xff] %v240_v28  ;;  %v119_v29 = vpop.f32.mrf.mxu0  ;;  %v160_v30 = vpop.f32.mrf.mxu1 }
  0xb1   :  { %v120_v31 = vadd.f32 %v119_v29, %v535_v9  ;;  %v161_v32 = vadd.f32 %v160_v30, %v537_v10 }
  0xb3   :  { %268 = vst [vmem:[%s674_s3 + $0x40] sm:$0xff] %v120_v31 }
  0xb4   :  { %v201_v33 = vpop.f32.mrf.mxu2  ;;  %v242_v34 = vpop.f32.mrf.mxu3  ;;  %269 = vst [vmem:[%s674_s3 + $0x48] sm:$0xff] %v161_v32 }
  0xb5   :  { %v202_v35 = vadd.f32 %v201_v33, %v539_v11  ;;  %v243_v36 = vadd.f32 %v242_v34, %v541_v12 }
  0xb7   :  { %270 = vst [vmem:[%s674_s3 + $0x50] sm:$0xff] %v202_v35 }
  0xb8   :  { %271 = vst [vmem:[%s674_s3 + $0x58] sm:$0xff] %v243_v36  ;;  %v122_v37 = vpop.f32.mrf.mxu0  ;;  %v163_v38 = vpop.f32.mrf.mxu1 }
  0xb9   :  { %v123_v39 = vadd.f32 %v122_v37, %v535_v9  ;;  %v164_v40 = vadd.f32 %v163_v38, %v537_v10 }
  0xbb   :  { %272 = vst [vmem:[%s674_s3 + $0x60] sm:$0xff] %v123_v39 }
  0xbc   :  { %v204_v41 = vpop.f32.mrf.mxu2  ;;  %v245_v42 = vpop.f32.mrf.mxu3  ;;  %273 = vst [vmem:[%s674_s3 + $0x68] sm:$0xff] %v164_v40 }
  0xbd   :  { %v205_v43 = vadd.f32 %v204_v41, %v539_v11  ;;  %v246_v44 = vadd.f32 %v245_v42, %v541_v12 }
  0xbf   :  { %274 = vst [vmem:[%s674_s3 + $0x70] sm:$0xff] %v205_v43 }
  0xc0   :  { %275 = vst [vmem:[%s674_s3 + $0x78] sm:$0xff] %v246_v44  ;;  %v125_v45 = vpop.f32.mrf.mxu0  ;;  %v166_v46 = vpop.f32.mrf.mxu1 }
  0xc1   :  { %v126_v47 = vadd.f32 %v125_v45, %v535_v9  ;;  %v167_v48 = vadd.f32 %v166_v46, %v537_v10 }
  0xc3   :  { %276 = vst [vmem:[%s674_s3 + $0x80] sm:$0xff] %v126_v47 }
  0xc4   :  { %v207_v49 = vpop.f32.mrf.mxu2  ;;  %v248_v50 = vpop.f32.mrf.mxu3  ;;  %277 = vst [vmem:[%s674_s3 + $0x88] sm:$0xff] %v167_v48 }
  0xc5   :  { %v208_v51 = vadd.f32 %v207_v49, %v539_v11  ;;  %v249_v52 = vadd.f32 %v248_v50, %v541_v12 }
  0xc7   :  { %278 = vst [vmem:[%s674_s3 + $0x90] sm:$0xff] %v208_v51 }
  0xc8   :  { %279 = vst [vmem:[%s674_s3 + $0x98] sm:$0xff] %v249_v52  ;;  %v128_v53 = vpop.f32.mrf.mxu0  ;;  %v169_v54 = vpop.f32.mrf.mxu1 }
  0xc9   :  { %v129_v55 = vadd.f32 %v128_v53, %v535_v9  ;;  %v170_v56 = vadd.f32 %v169_v54, %v537_v10 }
  0xcb   :  { %280 = vst [vmem:[%s674_s3 + $0xa0] sm:$0xff] %v129_v55 }
  0xcc   :  { %v210_v57 = vpop.f32.mrf.mxu2  ;;  %v251_v58 = vpop.f32.mrf.mxu3  ;;  %281 = vst [vmem:[%s674_s3 + $0xa8] sm:$0xff] %v170_v56 }
  0xcd   :  { %v211_v59 = vadd.f32 %v210_v57, %v539_v11  ;;  %v252_v60 = vadd.f32 %v251_v58, %v541_v12 }
  0xcf   :  { %282 = vst [vmem:[%s674_s3 + $0xb0] sm:$0xff] %v211_v59 }
  0xd0   :  { %283 = vst [vmem:[%s674_s3 + $0xb8] sm:$0xff] %v252_v60  ;;  %v131_v61 = vpop.f32.mrf.mxu0  ;;  %v172_v62 = vpop.f32.mrf.mxu1 }
  0xd1   :  { %v132_v63 = vadd.f32 %v131_v61, %v535_v9  ;;  %v173_v0 = vadd.f32 %v172_v62, %v537_v10 }
  0xd3   :  { %284 = vst [vmem:[%s674_s3 + $0xc0] sm:$0xff] %v132_v63 }
  0xd4   :  { %v213_v1 = vpop.f32.mrf.mxu2  ;;  %v254_v2 = vpop.f32.mrf.mxu3  ;;  %285 = vst [vmem:[%s674_s3 + $0xc8] sm:$0xff] %v173_v0 }
  0xd5   :  { %v214_v3 = vadd.f32 %v213_v1, %v539_v11  ;;  %v255_v4 = vadd.f32 %v254_v2, %v541_v12 }
  0xd7   :  { %286 = vst [vmem:[%s674_s3 + $0xd0] sm:$0xff] %v214_v3 }
  0xd8   :  { %287 = vst [vmem:[%s674_s3 + $0xd8] sm:$0xff] %v255_v4  ;;  %v134_v5 = vpop.f32.mrf.mxu0  ;;  %v175_v6 = vpop.f32.mrf.mxu1 }
  0xd9   :  { %v135_v7 = vadd.f32 %v134_v5, %v535_v9  ;;  %v176_v8 = vadd.f32 %v175_v6, %v537_v10 }
  0xdb   :  { %288 = vst [vmem:[%s674_s3 + $0xe0] sm:$0xff] %v135_v7 }
  0xdc   :  { %v216_v13 = vpop.f32.mrf.mxu2  ;;  %v257_v14 = vpop.f32.mrf.mxu3  ;;  %289 = vst [vmem:[%s674_s3 + $0xe8] sm:$0xff] %v176_v8 }
  0xdd   :  { %v217_v15 = vadd.f32 %v216_v13, %v539_v11  ;;  %v258_v16 = vadd.f32 %v257_v14, %v541_v12 }
  0xdf   :  { %290 = vst [vmem:[%s674_s3 + $0xf0] sm:$0xff] %v217_v15 }
  0xe0   :  { %291 = vst [vmem:[%s674_s3 + $0xf8] sm:$0xff] %v258_v16 }

// kernel: lstm_model_forward.4
= control target key start
LH: loop header
LB: loop body
LE: loop exit
PB: predicated region body
PF: predicated region fallthrough
CT: control target
= control target key end

     0   :  { %7 = vsyncpa [#allocation5], 0  ;;  %s1599_s12 = smov [#allocation4]   ;;  %s1600_s14 = smov 512   ;;  %s2516_s0 = inlined_call_operand.vmem [shape: f32[8,8,512], index: 0, kind: input, shape index: {}]   ;;  %s2517_s1 = inlined_call_operand.hbm [shape: f32[128,512], index: 1, kind: input, shape index: {}]   ;;  %s2518_s2 = inlined_call_operand.vmem [shape: f32[8,128], index: 2, kind: output, shape index: {}]  }
   0x1   :  { %s14_s11 = sshll.u32 %s2517_s1, 4  ;;  %s16_s13 = sshll.u32 %s1599_s12, 4  ;;  %s15_s11 = int_to_ptr.hbm [resolvable:$true] %s14_s11  ;;  %s17_s13 = int_to_ptr.vmem [resolvable:$true] %s16_s13 }
   0x2   :  { %s1601_s15 = smov 32  }
   0x3   :  { %22 = dma.hbm_to_vmem [thread:$0]  %s15_s11, 8192, %s17_s13, [#allocation5], %s1600_s14, %s1600_s14, %s1601_s15  }
   0x4   :  { %1597 = dma.done.wait [#allocation5], 8192  }
   0x5   :  { %1598 = vsyncadd [#allocation5], 4294959104  ;;  %v1621_v0 = vld [vmem:[#allocation4 + $0x1e0] sm:$0xff]  ;;  %v1623_v1 = vld [vmem:[#allocation4 + $0x1e8] sm:$0xff]  ;;  %v1602_v60 = vmov 0.0  }
   0x6   :  { %2625 = vst [vmem:[#allocation7_spill] sm:$0xff] %v1621_v0  ;;  %v1625_v2 = vld [vmem:[#allocation4 + $0x1f8] sm:$0xff]  ;;  %103 = vmatpush.msra.mxu0 %v1621_v0  ;;  %123 = vmatpush.msra.mxu1 %v1623_v1  ;;  %v1629_v3 = vld [vmem:[#allocation4 + $0x1c0] sm:$0xff]  ;;  %v1631_v4 = vld [vmem:[#allocation4 + $0x1c8] sm:$0xff] }
   0x7   :  { %v1633_v5 = vld [vmem:[#allocation4 + $0x1d8] sm:$0xff]  ;;  %163 = vmatpush.msra.mxu3 %v1625_v2  ;;  %v1636_v6 = vld [vmem:[#allocation4 + $0x1a0] sm:$0xff]  ;;  %v1638_v7 = vld [vmem:[#allocation4 + $0x1a8] sm:$0xff] }
   0x8   :  { %104 = vmatpush.msra.mxu0 %v1629_v3  ;;  %124 = vmatpush.msra.mxu1 %v1631_v4  ;;  %v1642_v8 = vld [vmem:[#allocation4 + $0x1b8] sm:$0xff]  ;;  %v1645_v9 = vld [vmem:[#allocation4 + $0x180] sm:$0xff]  ;;  %v1647_v10 = vld [vmem:[#allocation4 + $0x188] sm:$0xff] }
   0x9   :  { %164 = vmatpush.msra.mxu3 %v1633_v5  ;;  %v1651_v11 = vld [vmem:[#allocation4 + $0x198] sm:$0xff]  ;;  %v1654_v12 = vld [vmem:[#allocation4 + $0x160] sm:$0xff]  ;;  %v1656_v13 = vld [vmem:[#allocation4 + $0x168] sm:$0xff] }
   0xa   :  { %105 = vmatpush.msra.mxu0 %v1636_v6  ;;  %125 = vmatpush.msra.mxu1 %v1638_v7  ;;  %v1660_v14 = vld [vmem:[#allocation4 + $0x178] sm:$0xff]  ;;  %v1663_v15 = vld [vmem:[#allocation4 + $0x140] sm:$0xff]  ;;  %v1665_v16 = vld [vmem:[#allocation4 + $0x148] sm:$0xff] }
   0xb   :  { %165 = vmatpush.msra.mxu3 %v1642_v8  ;;  %v1667_v17 = vld [vmem:[#allocation4 + $0x1f0] sm:$0xff]  ;;  %v1671_v18 = vld [vmem:[#allocation4 + $0x158] sm:$0xff]  ;;  %v1676_v20 = vld [vmem:[#allocation4 + $0x120] sm:$0xff] }
   0xc   :  { %106 = vmatpush.msra.mxu0 %v1645_v9  ;;  %126 = vmatpush.msra.mxu1 %v1647_v10  ;;  %v1673_v19 = vld [vmem:[#allocation4 + $0x1d0] sm:$0xff]  ;;  %v1678_v21 = vld [vmem:[#allocation4 + $0x128] sm:$0xff]  ;;  %v1683_v22 = vld [vmem:[#allocation4 + $0x138] sm:$0xff] }
   0xd   :  { %166 = vmatpush.msra.mxu3 %v1651_v11  ;;  %143 = vmatpush.msra.mxu2 %v1667_v17  ;;  %v1685_v23 = vld [vmem:[#allocation4 + $0x1b0] sm:$0xff]  ;;  %v1688_v24 = vld [vmem:[#allocation4 + $0x100] sm:$0xff]  ;;  %v1690_v25 = vld [vmem:[#allocation4 + $0x108] sm:$0xff] }
   0xe   :  { %107 = vmatpush.msra.mxu0 %v1654_v12  ;;  %127 = vmatpush.msra.mxu1 %v1656_v13  ;;  %v1695_v26 = vld [vmem:[#allocation4 + $0x118] sm:$0xff]  ;;  %v1697_v27 = vld [vmem:[#allocation4 + $0x190] sm:$0xff]  ;;  %v1700_v28 = vld [vmem:[#allocation4 + $0xe0] sm:$0xff] }
   0xf   :  { %167 = vmatpush.msra.mxu3 %v1660_v14  ;;  %144 = vmatpush.msra.mxu2 %v1673_v19  ;;  %v1702_v29 = vld [vmem:[#allocation4 + $0xe8] sm:$0xff]  ;;  %v1707_v30 = vld [vmem:[#allocation4 + $0xf8] sm:$0xff]  ;;  %v1709_v31 = vld [vmem:[#allocation4 + $0x170] sm:$0xff] }
  0x10   :  { %108 = vmatpush.msra.mxu0 %v1663_v15  ;;  %128 = vmatpush.msra.mxu1 %v1665_v16  ;;  %v1712_v32 = vld [vmem:[#allocation4 + $0xc0] sm:$0xff]  ;;  %v1714_v33 = vld [vmem:[#allocation4 + $0xc8] sm:$0xff]  ;;  %v1719_v34 = vld [vmem:[#allocation4 + $0xd8] sm:$0xff] }
  0x11   :  { %168 = vmatpush.msra.mxu3 %v1671_v18  ;;  %145 = vmatpush.msra.mxu2 %v1685_v23  ;;  %2626 = vst [vmem:[#allocation8_spill] sm:$0xff] %v1719_v34  ;;  %v1721_v35 = vld [vmem:[#allocation4 + $0x150] sm:$0xff]  ;;  %v1724_v36 = vld [vmem:[#allocation4 + $0xa0] sm:$0xff]  ;;  %v1726_v37 = vld [vmem:[#allocation4 + $0xa8] sm:$0xff] }
  0x12   :  { %109 = vmatpush.msra.mxu0 %v1676_v20  ;;  %129 = vmatpush.msra.mxu1 %v1678_v21  ;;  %2627 = vst [vmem:[#allocation9_spill] sm:$0xff] %v1724_v36  ;;  %v1731_v38 = vld [vmem:[#allocation4 + $0xb8] sm:$0xff]  ;;  %v1733_v39 = vld [vmem:[#allocation4 + $0x130] sm:$0xff]  ;;  %v1736_v40 = vld [vmem:[#allocation4 + $0x80] sm:$0xff] }
  0x13   :  { %169 = vmatpush.msra.mxu3 %v1683_v22  ;;  %146 = vmatpush.msra.mxu2 %v1697_v27  ;;  %2628 = vst [vmem:[#allocation10_spill] sm:$0xff] %v1726_v37  ;;  %v1738_v41 = vld [vmem:[#allocation4 + $0x88] sm:$0xff]  ;;  %v1743_v42 = vld [vmem:[#allocation4 + $0x98] sm:$0xff]  ;;  %v1745_v43 = vld [vmem:[#allocation4 + $0x110] sm:$0xff] }
  0x14   :  { %110 = vmatpush.msra.mxu0 %v1688_v24  ;;  %130 = vmatpush.msra.mxu1 %v1690_v25  ;;  %2629 = vst [vmem:[#allocation11_spill] sm:$0xff] %v1731_v38  ;;  %v1748_v44 = vld [vmem:[#allocation4 + $0x60] sm:$0xff]  ;;  %v1750_v45 = vld [vmem:[#allocation4 + $0x68] sm:$0xff]  ;;  %v1755_v46 = vld [vmem:[#allocation4 + $0x78] sm:$0xff] }
  0x15   :  { %170 = vmatpush.msra.mxu3 %v1695_v26  ;;  %147 = vmatpush.msra.mxu2 %v1709_v31  ;;  %2630 = vst [vmem:[#allocation12_spill] sm:$0xff] %v1736_v40  ;;  %v1757_v47 = vld [vmem:[#allocation4 + $0xf0] sm:$0xff]  ;;  %v1760_v48 = vld [vmem:[#allocation4 + $0x40] sm:$0xff]  ;;  %v1762_v49 = vld [vmem:[#allocation4 + $0x48] sm:$0xff] }
  0x16   :  { %111 = vmatpush.msra.mxu0 %v1700_v28  ;;  %131 = vmatpush.msra.mxu1 %v1702_v29  ;;  %2631 = vst [vmem:[#allocation13_spill] sm:$0xff] %v1738_v41  ;;  %v1767_v50 = vld [vmem:[#allocation4 + $0x58] sm:$0xff]  ;;  %v1769_v51 = vld [vmem:[#allocation4 + $0xd0] sm:$0xff]  ;;  %v1772_v52 = vld [vmem:[#allocation4 + $0x20] sm:$0xff] }
  0x17   :  { %171 = vmatpush.msra.mxu3 %v1707_v30  ;;  %148 = vmatpush.msra.mxu2 %v1721_v35  ;;  %2632 = vst [vmem:[#allocation14_spill] sm:$0xff] %v1743_v42  ;;  %v1774_v53 = vld [vmem:[#allocation4 + $0x28] sm:$0xff]  ;;  %v1779_v54 = vld [vmem:[#allocation4 + $0x38] sm:$0xff]  ;;  %v1781_v55 = vld [vmem:[#allocation4 + $0xb0] sm:$0xff] }
  0x18   :  { %112 = vmatpush.msra.mxu0 %v1712_v32  ;;  %132 = vmatpush.msra.mxu1 %v1714_v33  ;;  %2633 = vst [vmem:[#allocation15_spill] sm:$0xff] %v1748_v44  ;;  %v1784_v56 = vld [vmem:[#allocation4] sm:$0xff]  ;;  %v1786_v57 = vld [vmem:[#allocation4 + $0x8] sm:$0xff]  ;;  %v1791_v58 = vld [vmem:[#allocation4 + $0x18] sm:$0xff] }
  0x19   :  { %172 = vmatpush.msra.mxu3 %v1719_v34  ;;  %2634 = vst [vmem:[#allocation16_spill] sm:$0xff] %v1750_v45  ;;  %149 = vmatpush.msra.mxu2 %v1733_v39  ;;  %v1797_v59 = vld [vmem:[#allocation4 + $0x90] sm:$0xff] }
  0x1a   :  { %113 = vmatpush.msra.mxu0 %v1724_v36  ;;  %133 = vmatpush.msra.mxu1 %v1726_v37  ;;  %2635 = vst [vmem:[#allocation17_spill] sm:$0xff] %v1755_v46  ;;  %v1800_v61 = vld [vmem:[#allocation4 + $0x70] sm:$0xff] }
  0x1b   :  { %173 = vmatpush.msra.mxu3 %v1731_v38  ;;  %2636 = vst [vmem:[#allocation18_spill] sm:$0xff] %v1760_v48  ;;  %150 = vmatpush.msra.mxu2 %v1745_v43  ;;  %v1804_v62 = vld [vmem:[#allocation4 + $0x50] sm:$0xff] }
  0x1c   :  { %114 = vmatpush.msra.mxu0 %v1736_v40  ;;  %134 = vmatpush.msra.mxu1 %v1738_v41  ;;  %2637 = vst [vmem:[#allocation19_spill] sm:$0xff] %v1762_v49  ;;  %v1810_v63 = vld [vmem:[#allocation4 + $0x30] sm:$0xff] }
  0x1d   :  { %174 = vmatpush.msra.mxu3 %v1743_v42  ;;  %2638 = vst [vmem:[#allocation20_spill] sm:$0xff] %v1767_v50  ;;  %151 = vmatpush.msra.mxu2 %v1757_v47 }
  0x1e   :  { %115 = vmatpush.msra.mxu0 %v1748_v44  ;;  %135 = vmatpush.msra.mxu1 %v1750_v45  ;;  %2639 = vst [vmem:[#allocation21_spill] sm:$0xff] %v1769_v51 }
  0x1f   :  { %175 = vmatpush.msra.mxu3 %v1755_v46  ;;  %2640 = vst [vmem:[#allocation22_spill] sm:$0xff] %v1772_v52  ;;  %152 = vmatpush.msra.mxu2 %v1769_v51 }
  0x20   :  { %2641 = vst [vmem:[#allocation23_spill] sm:$0xff] %v1774_v53  ;;  %116 = vmatpush.msra.mxu0 %v1760_v48  ;;  %136 = vmatpush.msra.mxu1 %v1762_v49 }
  0x21   :  { %2642 = vst [vmem:[#allocation24_spill] sm:$0xff] %v1779_v54  ;;  %176 = vmatpush.msra.mxu3 %v1767_v50  ;;  %153 = vmatpush.msra.mxu2 %v1781_v55 }
  0x22   :  { %2643 = vst [vmem:[#allocation25_spill] sm:$0xff] %v1781_v55  ;;  %117 = vmatpush.msra.mxu0 %v1772_v52  ;;  %137 = vmatpush.msra.mxu1 %v1774_v53 }
  0x23   :  { %2644 = vst [vmem:[#allocation26_spill] sm:$0xff] %v1784_v56  ;;  %177 = vmatpush.msra.mxu3 %v1779_v54  ;;  %154 = vmatpush.msra.mxu2 %v1797_v59 }
  0x24   :  { %2645 = vst [vmem:[#allocation27_spill] sm:$0xff] %v1786_v57  ;;  %118 = vmatpush.msra.mxu0 %v1784_v56  ;;  %138 = vmatpush.msra.mxu1 %v1786_v57 }
  0x25   :  { %2646 = vst [vmem:[#allocation28_spill] sm:$0xff] %v1791_v58  ;;  %178 = vmatpush.msra.mxu3 %v1791_v58  ;;  %119 = vmatmul.f32.vlgmr.msra.gmra.mxu0 %v1602_v60 }
  0x26   :  { %2647 = vst [vmem:[#allocation29_spill] sm:$0xff] %v1797_v59  ;;  %139 = vmatmul.f32.vlgmr.msra.gmra.mxu1 %v1602_v60  ;;  %179 = vmatmul.f32.vlgmr.msra.gmra.mxu3 %v1602_v60 }
  0x27   :  { %2648 = vst [vmem:[#allocation30_spill] sm:$0xff] %v1800_v61  ;;  %255 = vmatpush.msrb.mxu0 %v1621_v0  ;;  %275 = vmatpush.msrb.mxu1 %v1623_v1  ;;  %v1816_v0 = vld [vmem:[#allocation4 + $0x10] sm:$0xff] }
  0x28   :  { %2649 = vst [vmem:[#allocation31_spill] sm:$0xff] %v1804_v62  ;;  %315 = vmatpush.msrb.mxu3 %v1625_v2  ;;  %155 = vmatpush.msra.mxu2 %v1800_v61 }
  0x29   :  { %256 = vmatpush.msrb.mxu0 %v1629_v3  ;;  %2650 = vst [vmem:[#allocation32_spill] sm:$0xff] %v1810_v63  ;;  %276 = vmatpush.msrb.mxu1 %v1631_v4 }
  0x2a   :  { %316 = vmatpush.msrb.mxu3 %v1633_v5  ;;  %156 = vmatpush.msra.mxu2 %v1804_v62  ;;  %2651 = vst [vmem:[#allocation33_spill] sm:$0xff] %v1816_v0 }
  0x2b   :  { %257 = vmatpush.msrb.mxu0 %v1636_v6  ;;  %277 = vmatpush.msrb.mxu1 %v1638_v7 }
  0x2c   :  { %317 = vmatpush.msrb.mxu3 %v1642_v8  ;;  %157 = vmatpush.msra.mxu2 %v1810_v63 }
  0x2d   :  { %258 = vmatpush.msrb.mxu0 %v1645_v9  ;;  %278 = vmatpush.msrb.mxu1 %v1647_v10 }
  0x2e   :  { %318 = vmatpush.msrb.mxu3 %v1651_v11  ;;  %158 = vmatpush.msra.mxu2 %v1816_v0 }
  0x2f   :  { %259 = vmatpush.msrb.mxu0 %v1654_v12  ;;  %159 = vmatmul.f32.vlgmr.msra.gmra.mxu2 %v1602_v60  ;;  %v2652_v60 = vld [vmem:[#allocation7_spill] sm:$0xff] }
  0x30   :  { %279 = vmatpush.msrb.mxu1 %v1656_v13  ;;  %295 = vmatpush.msrb.mxu2 %v1667_v17 }
  0x31   :  { %319 = vmatpush.msrb.mxu3 %v1660_v14  ;;  %260 = vmatpush.msrb.mxu0 %v1663_v15 }
  0x32   :  { %280 = vmatpush.msrb.mxu1 %v1665_v16  ;;  %296 = vmatpush.msrb.mxu2 %v1673_v19 }
  0x33   :  { %320 = vmatpush.msrb.mxu3 %v1671_v18  ;;  %261 = vmatpush.msrb.mxu0 %v1676_v20 }
  0x34   :  { %281 = vmatpush.msrb.mxu1 %v1678_v21  ;;  %297 = vmatpush.msrb.mxu2 %v1685_v23 }
  0x35   :  { %321 = vmatpush.msrb.mxu3 %v1683_v22  ;;  %262 = vmatpush.msrb.mxu0 %v1688_v24 }
  0x36   :  { %282 = vmatpush.msrb.mxu1 %v1690_v25  ;;  %298 = vmatpush.msrb.mxu2 %v1697_v27 }
  0x37   :  { %322 = vmatpush.msrb.mxu3 %v1695_v26  ;;  %263 = vmatpush.msrb.mxu0 %v1700_v28 }
  0x38   :  { %283 = vmatpush.msrb.mxu1 %v1702_v29  ;;  %299 = vmatpush.msrb.mxu2 %v1709_v31 }
  0x39   :  { %323 = vmatpush.msrb.mxu3 %v1707_v30  ;;  %264 = vmatpush.msrb.mxu0 %v1712_v32 }
  0x3a   :  { %284 = vmatpush.msrb.mxu1 %v1714_v33  ;;  %300 = vmatpush.msrb.mxu2 %v1721_v35 }
  0x3b   :  { %324 = vmatpush.msrb.mxu3 %v1719_v34  ;;  %265 = vmatpush.msrb.mxu0 %v1724_v36 }
  0x3c   :  { %285 = vmatpush.msrb.mxu1 %v1726_v37  ;;  %301 = vmatpush.msrb.mxu2 %v1733_v39 }
  0x3d   :  { %325 = vmatpush.msrb.mxu3 %v1731_v38  ;;  %266 = vmatpush.msrb.mxu0 %v1736_v40 }
  0x3e   :  { %286 = vmatpush.msrb.mxu1 %v1738_v41  ;;  %302 = vmatpush.msrb.mxu2 %v1745_v43 }
  0x3f   :  { %326 = vmatpush.msrb.mxu3 %v1743_v42  ;;  %267 = vmatpush.msrb.mxu0 %v1748_v44 }
  0x40   :  { %287 = vmatpush.msrb.mxu1 %v1750_v45  ;;  %303 = vmatpush.msrb.mxu2 %v1757_v47 }
  0x41   :  { %327 = vmatpush.msrb.mxu3 %v1755_v46  ;;  %268 = vmatpush.msrb.mxu0 %v1760_v48 }
  0x42   :  { %288 = vmatpush.msrb.mxu1 %v1762_v49  ;;  %304 = vmatpush.msrb.mxu2 %v1769_v51 }
  0x43   :  { %328 = vmatpush.msrb.mxu3 %v1767_v50  ;;  %269 = vmatpush.msrb.mxu0 %v1772_v52 }
  0x44   :  { %289 = vmatpush.msrb.mxu1 %v1774_v53  ;;  %305 = vmatpush.msrb.mxu2 %v1781_v55 }
  0x45   :  { %329 = vmatpush.msrb.mxu3 %v1779_v54  ;;  %270 = vmatpush.msrb.mxu0 %v1784_v56 }
  0x46   :  { %290 = vmatpush.msrb.mxu1 %v1786_v57  ;;  %306 = vmatpush.msrb.mxu2 %v1797_v59 }
  0x47   :  { %330 = vmatpush.msrb.mxu3 %v1791_v58  ;;  %407 = vmatpush.msra.mxu0 %v2652_v60 }
  0x48   :  { %427 = vmatpush.msra.mxu1 %v1623_v1  ;;  %307 = vmatpush.msrb.mxu2 %v1800_v61 }
  0x49   :  { %467 = vmatpush.msra.mxu3 %v1625_v2  ;;  %408 = vmatpush.msra.mxu0 %v1629_v3 }
  0x4a   :  { %428 = vmatpush.msra.mxu1 %v1631_v4  ;;  %308 = vmatpush.msrb.mxu2 %v1804_v62 }
  0x4b   :  { %468 = vmatpush.msra.mxu3 %v1633_v5  ;;  %409 = vmatpush.msra.mxu0 %v1636_v6 }
  0x4c   :  { %429 = vmatpush.msra.mxu1 %v1638_v7  ;;  %309 = vmatpush.msrb.mxu2 %v1810_v63 }
  0x4d   :  { %469 = vmatpush.msra.mxu3 %v1642_v8  ;;  %410 = vmatpush.msra.mxu0 %v1645_v9 }
  0x4e   :  { %430 = vmatpush.msra.mxu1 %v1647_v10  ;;  %310 = vmatpush.msrb.mxu2 %v1816_v0 }
  0x4f   :  { %470 = vmatpush.msra.mxu3 %v1651_v11  ;;  %411 = vmatpush.msra.mxu0 %v1654_v12 }
  0x50   :  { %447 = vmatpush.msra.mxu2 %v1667_v17  ;;  %431 = vmatpush.msra.mxu1 %v1656_v13 }
  0x51   :  { %471 = vmatpush.msra.mxu3 %v1660_v14  ;;  %412 = vmatpush.msra.mxu0 %v1663_v15 }
  0x52   :  { %448 = vmatpush.msra.mxu2 %v1673_v19  ;;  %432 = vmatpush.msra.mxu1 %v1665_v16 }
  0x53   :  { %472 = vmatpush.msra.mxu3 %v1671_v18  ;;  %413 = vmatpush.msra.mxu0 %v1676_v20 }
  0x54   :  { %449 = vmatpush.msra.mxu2 %v1685_v23  ;;  %433 = vmatpush.msra.mxu1 %v1678_v21 }
  0x55   :  { %473 = vmatpush.msra.mxu3 %v1683_v22  ;;  %414 = vmatpush.msra.mxu0 %v1688_v24 }
  0x56   :  { %450 = vmatpush.msra.mxu2 %v1697_v27  ;;  %434 = vmatpush.msra.mxu1 %v1690_v25 }
  0x57   :  { %474 = vmatpush.msra.mxu3 %v1695_v26  ;;  %415 = vmatpush.msra.mxu0 %v1700_v28 }
  0x58   :  { %451 = vmatpush.msra.mxu2 %v1709_v31  ;;  %435 = vmatpush.msra.mxu1 %v1702_v29 }
  0x59   :  { %475 = vmatpush.msra.mxu3 %v1707_v30  ;;  %416 = vmatpush.msra.mxu0 %v1712_v32 }
  0x5a   :  { %452 = vmatpush.msra.mxu2 %v1721_v35  ;;  %436 = vmatpush.msra.mxu1 %v1714_v33 }
  0x5b   :  { %476 = vmatpush.msra.mxu3 %v1719_v34  ;;  %417 = vmatpush.msra.mxu0 %v1724_v36 }
  0x5c   :  { %453 = vmatpush.msra.mxu2 %v1733_v39  ;;  %437 = vmatpush.msra.mxu1 %v1726_v37 }
  0x5d   :  { %477 = vmatpush.msra.mxu3 %v1731_v38  ;;  %418 = vmatpush.msra.mxu0 %v1736_v40 }
  0x5e   :  { %454 = vmatpush.msra.mxu2 %v1745_v43  ;;  %438 = vmatpush.msra.mxu1 %v1738_v41 }
  0x5f   :  { %478 = vmatpush.msra.mxu3 %v1743_v42  ;;  %419 = vmatpush.msra.mxu0 %v1748_v44 }
  0x60   :  { %455 = vmatpush.msra.mxu2 %v1757_v47  ;;  %439 = vmatpush.msra.mxu1 %v1750_v45 }
  0x61   :  { %479 = vmatpush.msra.mxu3 %v1755_v46  ;;  %420 = vmatpush.msra.mxu0 %v1760_v48 }
  0x62   :  { %456 = vmatpush.msra.mxu2 %v1769_v51  ;;  %440 = vmatpush.msra.mxu1 %v1762_v49 }
  0x63   :  { %480 = vmatpush.msra.mxu3 %v1767_v50  ;;  %421 = vmatpush.msra.mxu0 %v1772_v52 }
  0x64   :  { %457 = vmatpush.msra.mxu2 %v1781_v55  ;;  %441 = vmatpush.msra.mxu1 %v1774_v53 }
  0x65   :  { %481 = vmatpush.msra.mxu3 %v1779_v54  ;;  %422 = vmatpush.msra.mxu0 %v1784_v56  ;;  %v99_v54 = vld [vmem:[%s2516_s0] sm:$0xff]  ;;  %v100_v56 = vld [vmem:[%s2516_s0 + $0x8] sm:$0xff] }
  0x66   :  { %458 = vmatpush.msra.mxu2 %v1797_v59  ;;  %442 = vmatpush.msra.mxu1 %v1786_v57 }
  0x67   :  { %482 = vmatpush.msra.mxu3 %v1791_v58 }
  0x68   :  { %459 = vmatpush.msra.mxu2 %v1800_v61 }
  0x6a   :  { %460 = vmatpush.msra.mxu2 %v1804_v62 }
  0x6c   :  { %461 = vmatpush.msra.mxu2 %v1810_v63  ;;  %v102_v63 = vld [vmem:[%s2516_s0 + $0x18] sm:$0xff] }
  0x6e   :  { %462 = vmatpush.msra.mxu2 %v1816_v0 }
  0xa2   :  { %v120_v53 = vpop.f32.mrf.mxu0 }
  0xa3   :  { %v183_v57 = vadd.f32 %v120_v53, %v99_v54  ;;  %v140_v52 = vpop.f32.mrf.mxu1 }
  0xa4   :  { %v184_v58 = vadd.f32 %v140_v52, %v100_v56  ;;  %v101_v52 = vld [vmem:[%s2516_s0 + $0x10] sm:$0xff] }
  0xa5   :  { %v1325_v50 = vmul.f32 -1.442695, %v183_v57 }
  0xa6   :  { %v1326_v49 = vmul.f32 -1.442695, %v184_v58 }
  0xa7   :  { %1381 = vpow2.f32 %v1325_v50 }
  0xa8   :  { %1383 = vpow2.f32 %v1326_v49 }
  0xa9   :  { %v180_v0 = vpop.f32.mrf.mxu3 }
  0xaa   :  { %v186_v62 = vadd.f32 %v180_v0, %v102_v63 }
  0xac   :  { %v1327_v48 = vmul.f32 -1.442695, %v186_v62 }
  0xad   :  { %v1382_v46 = vpop.eup %1381 }
  0xae   :  { %v1384_v61 = vpop.eup %1383  ;;  %v190_v45 = vadd.f32 1.0, %v1382_v46  ;;  %1385 = vpow2.f32 %v1327_v48 }
  0xaf   :  { %v209_v44 = vadd.f32 1.0, %v1384_v61 }
  0xb0   :  { %1387 = vrcp.f32 %v190_v45  ;;  %v202_v48 = vand.u32 2147483648, %v190_v45  ;;  %v200_v42 = vand.u32 2147483647, %v190_v45  ;;  %vm196_vm2 = vweird.f32 %v190_v45 }
  0xb1   :  { %1389 = vrcp.f32 %v209_v44  ;;  %v221_v61 = vand.u32 2147483648, %v209_v44  ;;  %v219_v41 = vand.u32 2147483647, %v209_v44  ;;  %vm215_vm3 = vweird.f32 %v209_v44 }
  0xb2   :  { %v160_v50 = vpop.f32.mrf.mxu2  ;;  %vm201_vm5 = vcmp.eq.f32.partialorder %v200_v42, 8.507059e+37 }
  0xb3   :  { %v185_v54 = vadd.f32 %v160_v50, %v101_v52  ;;  %vm220_vm7 = vcmp.eq.f32.partialorder %v219_v41, 8.507059e+37 }
  0xb4   :  { %v1386_v53 = vpop.eup %1385 }
  0xb5   :  { %v229_v56 = vadd.f32 1.0, %v1386_v53  ;;  %v203_v53 = vor.u32 1.1754944e-38, %v202_v48  ;;  %v2660_v48 = vld [vmem:[#allocation13_spill] sm:$0xff] }
  0xb6   :  { %v1388_v57 = vpop.eup %1387 }
  0xb7   :  { %v1390_v49 = vpop.eup %1389  ;;  %v192_v58 = vmul.f32 %v1388_v57, %v190_v45  ;;  %1391 = vrcp.f32 %v229_v56  ;;  %vm197_vm0 = vweird.f32 %v1388_v57  ;;  %vm235_vm9 = vweird.f32 %v229_v56 }
  0xb8   :  { %v211_v0 = vmul.f32 %v1390_v49, %v209_v44  ;;  %1393 = vtanh.f32 %v185_v54  ;;  %vm216_vm1 = vweird.f32 %v1390_v49  ;;  %vm198_vm4 = vmor %vm196_vm2, %vm197_vm0  ;;  %v222_v54 = vor.u32 1.1754944e-38, %v221_v61  ;;  %v2661_v61 = vld [vmem:[#allocation29_spill] sm:$0xff] }
  0xb9   :  { %v193_v62 = vsub.f32 1.0, %v192_v58  ;;  %vm217_vm6 = vmor %vm215_vm3, %vm216_vm1  ;;  %v241_v44 = vand.u32 2147483648, %v229_v56 }
  0xba   :  { %v212_v46 = vsub.f32 1.0, %v211_v0 }
  0xbb   :  { %v194_v63 = vmul.f32 %v1388_v57, %v193_v62  ;;  %v242_v42 = vor.u32 1.1754944e-38, %v241_v44  ;;  %v2671_v44 = vld [vmem:[#allocation22_spill] sm:$0xff] }
  0xbc   :  { %v213_v59 = vmul.f32 %v1390_v49, %v212_v46 }
  0xbd   :  { %v1392_v40 = vpop.eup %1391  ;;  %v195_v38 = vadd.f32 %v1388_v57, %v194_v63 }
  0xbe   :  { %v1394_v52 = vpop.eup %1393  ;;  %v231_v50 = vmul.f32 %v1392_v40, %v229_v56  ;;  %v214_v55 = vadd.f32 %v1390_v49, %v213_v59  ;;  %vm236_vm8 = vweird.f32 %v1392_v40  ;;  %v239_v59 = vand.u32 2147483647, %v229_v56  ;;  %v2658_v56 = vld [vmem:[#allocation11_spill] sm:$0xff] }
  0xbf   :  { %v199_v58 = vsel %vm198_vm4, %v1388_v57, %v195_v38  ;;  %vm237_vm10 = vmor %vm235_vm9, %vm236_vm8 }
  0xc0   :  { %v232_v0 = vsub.f32 1.0, %v231_v50  ;;  %v204_v62 = vsel %vm201_vm5, %v203_v53, %v199_v58  ;;  %v218_v37 = vsel %vm217_vm6, %v1390_v49, %v214_v55  ;;  %vm240_vm11 = vcmp.eq.f32.partialorder %v239_v59, 8.507059e+37  ;;  %v2659_v49 = vld [vmem:[#allocation12_spill] sm:$0xff]  ;;  %v2663_v50 = vld [vmem:[#allocation15_spill] sm:$0xff]  ;;  %v2666_v58 = vld [vmem:[#allocation17_spill] sm:$0xff] }
  0xc1   :  { %v223_v46 = vsel %vm220_vm7, %v222_v54, %v218_v37  ;;  %v246_v36 = vmul.f32 %v1394_v52, %v204_v62  ;;  %v2655_v37 = vld [vmem:[#allocation9_spill] sm:$0xff]  ;;  %v2662_v52 = vld [vmem:[#allocation14_spill] sm:$0xff]  ;;  %v2664_v53 = vld [vmem:[#allocation16_spill] sm:$0xff] }
  0xc2   :  { %v245_v34 = vmul.f32 0.0, %v223_v46  ;;  %v233_v51 = vmul.f32 %v1392_v40, %v232_v0  ;;  %v2665_v54 = vld [vmem:[#allocation30_spill] sm:$0xff]  ;;  %v2668_v62 = vld [vmem:[#allocation19_spill] sm:$0xff] }
  0xc3   :  { %v2667_v0 = vld [vmem:[#allocation18_spill] sm:$0xff]  ;;  %v2669_v46 = vld [vmem:[#allocation31_spill] sm:$0xff] }
  0xc4   :  { %v1953_v63 = vadd.f32 %v246_v36, %v245_v34  ;;  %v234_v45 = vadd.f32 %v1392_v40, %v233_v51  ;;  %v2653_v34 = vld [vmem:[#allocation21_spill] sm:$0xff]  ;;  %v2654_v36 = vld [vmem:[#allocation8_spill] sm:$0xff]  ;;  %v2672_v59 = vld [vmem:[#allocation23_spill] sm:$0xff] }
  0xc5   :  { %v2657_v51 = vld [vmem:[#allocation25_spill] sm:$0xff] }
  0xc6   :  { %1395 = vtanh.f32 %v1953_v63  ;;  %v238_v38 = vsel %vm237_vm10, %v1392_v40, %v234_v45  ;;  %v2656_v40 = vld [vmem:[#allocation10_spill] sm:$0xff]  ;;  %v2670_v45 = vld [vmem:[#allocation20_spill] sm:$0xff] }
  0xc7   :  { %v243_v55 = vsel %vm240_vm11, %v242_v42, %v238_v38  ;;  %v2673_v38 = vld [vmem:[#allocation32_spill] sm:$0xff] }
  0xc8   :  { %v2674_v42 = vld [vmem:[#allocation24_spill] sm:$0xff] }
  0xcc   :  { %v1396_v57 = vpop.eup %1395 }
  0xcd   :  { %v249_v41 = vmul.f32 %v1396_v57, %v243_v55  ;;  %v2675_v57 = vld [vmem:[#allocation26_spill] sm:$0xff]  ;;  %v2676_v55 = vld [vmem:[#allocation27_spill] sm:$0xff] }
  0xcf   :  { %271 = vmatmul.f32.vlgmr.msrb.gmra.mxu0 %v249_v41  ;;  %291 = vmatmul.f32.vlgmr.msrb.gmra.mxu1 %v249_v41 }
  0xd0   :  { %311 = vmatmul.f32.vlgmr.msrb.gmra.mxu2 %v249_v41  ;;  %331 = vmatmul.f32.vlgmr.msrb.gmra.mxu3 %v249_v41  ;;  %v2677_v41 = vld [vmem:[#allocation33_spill] sm:$0xff] }
  0xd1   :  { %559 = vmatpush.msrb.mxu0 %v2652_v60  ;;  %579 = vmatpush.msrb.mxu1 %v1623_v1 }
  0xd2   :  { %599 = vmatpush.msrb.mxu2 %v1667_v17  ;;  %619 = vmatpush.msrb.mxu3 %v1625_v2 }
  0xd3   :  { %560 = vmatpush.msrb.mxu0 %v1629_v3  ;;  %580 = vmatpush.msrb.mxu1 %v1631_v4 }
  0xd4   :  { %600 = vmatpush.msrb.mxu2 %v1673_v19  ;;  %620 = vmatpush.msrb.mxu3 %v1633_v5 }
  0xd5   :  { %561 = vmatpush.msrb.mxu0 %v1636_v6  ;;  %581 = vmatpush.msrb.mxu1 %v1638_v7 }
  0xd6   :  { %601 = vmatpush.msrb.mxu2 %v1685_v23  ;;  %621 = vmatpush.msrb.mxu3 %v1642_v8 }
  0xd7   :  { %562 = vmatpush.msrb.mxu0 %v1645_v9  ;;  %582 = vmatpush.msrb.mxu1 %v1647_v10 }
  0xd8   :  { %602 = vmatpush.msrb.mxu2 %v1697_v27  ;;  %622 = vmatpush.msrb.mxu3 %v1651_v11 }
  0xd9   :  { %563 = vmatpush.msrb.mxu0 %v1654_v12  ;;  %583 = vmatpush.msrb.mxu1 %v1656_v13 }
  0xda   :  { %603 = vmatpush.msrb.mxu2 %v1709_v31  ;;  %623 = vmatpush.msrb.mxu3 %v1660_v14 }
  0xdb   :  { %564 = vmatpush.msrb.mxu0 %v1663_v15  ;;  %584 = vmatpush.msrb.mxu1 %v1665_v16 }
  0xdc   :  { %604 = vmatpush.msrb.mxu2 %v1721_v35  ;;  %624 = vmatpush.msrb.mxu3 %v1671_v18 }
  0xdd   :  { %565 = vmatpush.msrb.mxu0 %v1676_v20  ;;  %585 = vmatpush.msrb.mxu1 %v1678_v21 }
  0xde   :  { %605 = vmatpush.msrb.mxu2 %v1733_v39  ;;  %625 = vmatpush.msrb.mxu3 %v1683_v22 }
  0xdf   :  { %566 = vmatpush.msrb.mxu0 %v1688_v24  ;;  %586 = vmatpush.msrb.mxu1 %v1690_v25 }
  0xe0   :  { %606 = vmatpush.msrb.mxu2 %v1745_v43  ;;  %626 = vmatpush.msrb.mxu3 %v1695_v26 }
  0xe1   :  { %567 = vmatpush.msrb.mxu0 %v1700_v28  ;;  %587 = vmatpush.msrb.mxu1 %v1702_v29 }
  0xe2   :  { %607 = vmatpush.msrb.mxu2 %v1757_v47  ;;  %627 = vmatpush.msrb.mxu3 %v1707_v30 }
  0xe3   :  { %568 = vmatpush.msrb.mxu0 %v1712_v32  ;;  %588 = vmatpush.msrb.mxu1 %v1714_v33 }
  0xe4   :  { %608 = vmatpush.msrb.mxu2 %v2653_v34  ;;  %628 = vmatpush.msrb.mxu3 %v2654_v36 }
  0xe5   :  { %569 = vmatpush.msrb.mxu0 %v2655_v37  ;;  %589 = vmatpush.msrb.mxu1 %v2656_v40 }
  0xe6   :  { %609 = vmatpush.msrb.mxu2 %v2657_v51  ;;  %629 = vmatpush.msrb.mxu3 %v2658_v56 }
  0xe7   :  { %570 = vmatpush.msrb.mxu0 %v2659_v49  ;;  %590 = vmatpush.msrb.mxu1 %v2660_v48 }
  0xe8   :  { %610 = vmatpush.msrb.mxu2 %v2661_v61  ;;  %630 = vmatpush.msrb.mxu3 %v2662_v52 }
  0xe9   :  { %571 = vmatpush.msrb.mxu0 %v2663_v50  ;;  %591 = vmatpush.msrb.mxu1 %v2664_v53 }
  0xea   :  { %611 = vmatpush.msrb.mxu2 %v2665_v54  ;;  %631 = vmatpush.msrb.mxu3 %v2666_v58 }
  0xeb   :  { %572 = vmatpush.msrb.mxu0 %v2667_v0  ;;  %592 = vmatpush.msrb.mxu1 %v2668_v62  ;;  %v2678_v0 = vld [vmem:[#allocation28_spill] sm:$0xff] }
  0xec   :  { %612 = vmatpush.msrb.mxu2 %v2669_v46  ;;  %632 = vmatpush.msrb.mxu3 %v2670_v45  ;;  %v1328_v45 = vld [vmem:[%s2516_s0 + $0x20] sm:$0xff] }
  0xed   :  { %573 = vmatpush.msrb.mxu0 %v2671_v44  ;;  %593 = vmatpush.msrb.mxu1 %v2672_v59  ;;  %v1329_v59 = vld [vmem:[%s2516_s0 + $0x28] sm:$0xff] }
  0xee   :  { %613 = vmatpush.msrb.mxu2 %v2673_v38  ;;  %633 = vmatpush.msrb.mxu3 %v2674_v42 }
  0xef   :  { %574 = vmatpush.msrb.mxu0 %v2675_v57  ;;  %594 = vmatpush.msrb.mxu1 %v2676_v55 }
  0xf0   :  { %614 = vmatpush.msrb.mxu2 %v2677_v41  ;;  %634 = vmatpush.msrb.mxu3 %v2678_v0  ;;  %v1331_v41 = vld [vmem:[%s2516_s0 + $0x38] sm:$0xff] }
 0x14c   :  { %v272_v44 = vpop.f32.mrf.mxu0  ;;  %v292_v38 = vpop.f32.mrf.mxu1 }
 0x14d   :  { %v335_v46 = vadd.f32 %v1328_v45, %v272_v44  ;;  %v336_v42 = vadd.f32 %v1329_v59, %v292_v38 }
 0x14f   :  { %v1332_v62 = vmul.f32 -1.442695, %v335_v46  ;;  %v1333_v57 = vmul.f32 -1.442695, %v336_v42  ;;  %v1330_v46 = vld [vmem:[%s2516_s0 + $0x30] sm:$0xff] }
 0x151   :  { %1397 = vpow2.f32 %v1332_v62 }
 0x152   :  { %1399 = vpow2.f32 %v1333_v57 }
 0x153   :  { %v332_v0 = vpop.f32.mrf.mxu3  ;;  %v312_v62 = vpop.f32.mrf.mxu2 }
 0x154   :  { %v338_v55 = vadd.f32 %v1331_v41, %v332_v0  ;;  %v337_v38 = vadd.f32 %v1330_v46, %v312_v62 }
 0x156   :  { %v1334_v58 = vmul.f32 -1.442695, %v338_v55 }
 0x157   :  { %v1398_v54 = vpop.eup %1397 }
 0x158   :  { %v1400_v53 = vpop.eup %1399  ;;  %v342_v50 = vadd.f32 1.0, %v1398_v54  ;;  %1401 = vpow2.f32 %v1334_v58 }
 0x159   :  { %v361_v52 = vadd.f32 1.0, %v1400_v53 }
 0x15a   :  { %1403 = vrcp.f32 %v342_v50  ;;  %v354_v54 = vand.u32 2147483648, %v342_v50  ;;  %v352_v61 = vand.u32 2147483647, %v342_v50  ;;  %vm348_vm14 = vweird.f32 %v342_v50 }
 0x15b   :  { %1405 = vrcp.f32 %v361_v52  ;;  %v373_v53 = vand.u32 2147483648, %v361_v52  ;;  %v371_v49 = vand.u32 2147483647, %v361_v52  ;;  %vm367_vm15 = vweird.f32 %v361_v52 }
 0x15c   :  { %v355_v46 = vor.u32 1.1754944e-38, %v354_v54  ;;  %vm353_vm2 = vcmp.eq.f32.partialorder %v352_v61, 8.507059e+37 }
 0x15d   :  { %vm372_vm3 = vcmp.eq.f32.partialorder %v371_v49, 8.507059e+37 }
 0x15e   :  { %v1402_v45 = vpop.eup %1401 }
 0x15f   :  { %v381_v44 = vadd.f32 1.0, %v1402_v45 }
 0x160   :  { %v1404_v59 = vpop.eup %1403 }
 0x161   :  { %v1406_v42 = vpop.eup %1405  ;;  %v344_v57 = vmul.f32 %v1404_v59, %v342_v50  ;;  %1407 = vrcp.f32 %v381_v44  ;;  %vm349_vm12 = vweird.f32 %v1404_v59  ;;  %vm387_vm5 = vweird.f32 %v381_v44 }
 0x162   :  { %v363_v0 = vmul.f32 %v1406_v42, %v361_v52  ;;  %1409 = vtanh.f32 %v337_v38  ;;  %vm368_vm13 = vweird.f32 %v1406_v42  ;;  %vm350_vm0 = vmor %vm348_vm14, %vm349_vm12 }
 0x163   :  { %v345_v55 = vsub.f32 1.0, %v344_v57  ;;  %vm369_vm1 = vmor %vm367_vm15, %vm368_vm13  ;;  %v374_v57 = vor.u32 1.1754944e-38, %v373_v53 }
 0x164   :  { %v364_v41 = vsub.f32 1.0, %v363_v0 }
 0x165   :  { %v346_v58 = vmul.f32 %v1404_v59, %v345_v55 }
 0x166   :  { %v365_v48 = vmul.f32 %v1406_v42, %v364_v41 }
 0x167   :  { %v1408_v56 = vpop.eup %1407  ;;  %v347_v51 = vadd.f32 %v1404_v59, %v346_v58 }
 0x168   :  { %v366_v62 = vadd.f32 %v1406_v42, %v365_v48  ;;  %v383_v45 = vmul.f32 %v1408_v56, %v381_v44  ;;  %v1410_v38 = vpop.eup %1409  ;;  %vm388_vm4 = vweird.f32 %v1408_v56  ;;  %v393_v48 = vand.u32 2147483648, %v381_v44 }
 0x169   :  { %v351_v0 = vsel %vm350_vm0, %v1404_v59, %v347_v51  ;;  %v391_v51 = vand.u32 2147483647, %v381_v44  ;;  %vm389_vm6 = vmor %vm387_vm5, %vm388_vm4 }
 0x16a   :  { %v356_v40 = vsel %vm353_vm2, %v355_v46, %v351_v0  ;;  %v370_v55 = vsel %vm369_vm1, %v1406_v42, %v366_v62  ;;  %v384_v37 = vsub.f32 1.0, %v383_v45  ;;  %v394_v59 = vor.u32 1.1754944e-38, %v393_v48 }
 0x16b   :  { %v375_v41 = vsel %vm372_vm3, %v374_v57, %v370_v55  ;;  %v398_v36 = vmul.f32 %v1410_v38, %v356_v40  ;;  %vm392_vm7 = vcmp.eq.f32.partialorder %v391_v51, 8.507059e+37  ;;  %v1337_v40 = vld [vmem:[%s2516_s0 + $0x50] sm:$0xff] }
 0x16c   :  { %v397_v34 = vmul.f32 %v375_v41, %v1953_v63  ;;  %v385_v58 = vmul.f32 %v1408_v56, %v384_v37 }
 0x16e   :  { %v2033_v50 = vadd.f32 %v398_v36, %v397_v34  ;;  %v386_v52 = vadd.f32 %v1408_v56, %v385_v58 }
 0x170   :  { %1411 = vtanh.f32 %v2033_v50  ;;  %v390_v61 = vsel %vm389_vm6, %v1408_v56, %v386_v52 }
 0x171   :  { %v395_v42 = vsel %vm392_vm7, %v394_v59, %v390_v61 }
 0x176   :  { %v1412_v49 = vpop.eup %1411 }
 0x177   :  { %v401_v54 = vmul.f32 %v1412_v49, %v395_v42 }
 0x179   :  { %423 = vmatmul.f32.vlgmr.msra.gmra.mxu0 %v401_v54  ;;  %443 = vmatmul.f32.vlgmr.msra.gmra.mxu1 %v401_v54 }
 0x17a   :  { %463 = vmatmul.f32.vlgmr.msra.gmra.mxu2 %v401_v54  ;;  %483 = vmatmul.f32.vlgmr.msra.gmra.mxu3 %v401_v54 }
 0x17b   :  { %711 = vmatpush.msra.mxu0 %v2652_v60  ;;  %731 = vmatpush.msra.mxu1 %v1623_v1  ;;  %v2679_v1 = vld [vmem:[#allocation21_spill] sm:$0xff] }
 0x17c   :  { %751 = vmatpush.msra.mxu2 %v1667_v17  ;;  %771 = vmatpush.msra.mxu3 %v1625_v2  ;;  %v2680_v2 = vld [vmem:[#allocation8_spill] sm:$0xff]  ;;  %v2695_v17 = vld [vmem:[#allocation31_spill] sm:$0xff] }
 0x17d   :  { %712 = vmatpush.msra.mxu0 %v1629_v3  ;;  %732 = vmatpush.msra.mxu1 %v1631_v4  ;;  %v2681_v3 = vld [vmem:[#allocation9_spill] sm:$0xff]  ;;  %v2682_v4 = vld [vmem:[#allocation10_spill] sm:$0xff] }
 0x17e   :  { %752 = vmatpush.msra.mxu2 %v1673_v19  ;;  %772 = vmatpush.msra.mxu3 %v1633_v5  ;;  %v2683_v5 = vld [vmem:[#allocation25_spill] sm:$0xff]  ;;  %v2697_v19 = vld [vmem:[#allocation22_spill] sm:$0xff] }
 0x17f   :  { %713 = vmatpush.msra.mxu0 %v1636_v6  ;;  %733 = vmatpush.msra.mxu1 %v1638_v7  ;;  %v2684_v6 = vld [vmem:[#allocation11_spill] sm:$0xff]  ;;  %v2685_v7 = vld [vmem:[#allocation12_spill] sm:$0xff] }
 0x180   :  { %753 = vmatpush.msra.mxu2 %v1685_v23  ;;  %773 = vmatpush.msra.mxu3 %v1642_v8  ;;  %v2686_v8 = vld [vmem:[#allocation13_spill] sm:$0xff]  ;;  %v2701_v23 = vld [vmem:[#allocation26_spill] sm:$0xff] }
 0x181   :  { %714 = vmatpush.msra.mxu0 %v1645_v9  ;;  %734 = vmatpush.msra.mxu1 %v1647_v10  ;;  %v2687_v9 = vld [vmem:[#allocation29_spill] sm:$0xff]  ;;  %v2688_v10 = vld [vmem:[#allocation14_spill] sm:$0xff] }
 0x182   :  { %754 = vmatpush.msra.mxu2 %v1697_v27  ;;  %774 = vmatpush.msra.mxu3 %v1651_v11  ;;  %v2689_v11 = vld [vmem:[#allocation15_spill] sm:$0xff] }
 0x183   :  { %715 = vmatpush.msra.mxu0 %v1654_v12  ;;  %735 = vmatpush.msra.mxu1 %v1656_v13  ;;  %v2690_v12 = vld [vmem:[#allocation16_spill] sm:$0xff]  ;;  %v2691_v13 = vld [vmem:[#allocation30_spill] sm:$0xff]  ;;  %v1335_v27 = vld [vmem:[%s2516_s0 + $0x40] sm:$0xff] }
 0x184   :  { %755 = vmatpush.msra.mxu2 %v1709_v31  ;;  %775 = vmatpush.msra.mxu3 %v1660_v14  ;;  %v2692_v14 = vld [vmem:[#allocation17_spill] sm:$0xff] }
 0x185   :  { %716 = vmatpush.msra.mxu0 %v1663_v15  ;;  %736 = vmatpush.msra.mxu1 %v1665_v16  ;;  %v2693_v15 = vld [vmem:[#allocation18_spill] sm:$0xff]  ;;  %v2694_v16 = vld [vmem:[#allocation19_spill] sm:$0xff] }
 0x186   :  { %756 = vmatpush.msra.mxu2 %v1721_v35  ;;  %776 = vmatpush.msra.mxu3 %v1671_v18  ;;  %v2696_v18 = vld [vmem:[#allocation20_spill] sm:$0xff] }
 0x187   :  { %717 = vmatpush.msra.mxu0 %v1676_v20  ;;  %737 = vmatpush.msra.mxu1 %v1678_v21  ;;  %v2698_v20 = vld [vmem:[#allocation23_spill] sm:$0xff]  ;;  %v2699_v21 = vld [vmem:[#allocation32_spill] sm:$0xff] }
 0x188   :  { %757 = vmatpush.msra.mxu2 %v1733_v39  ;;  %777 = vmatpush.msra.mxu3 %v1683_v22  ;;  %v2700_v22 = vld [vmem:[#allocation24_spill] sm:$0xff]  ;;  %v1338_v39 = vld [vmem:[%s2516_s0 + $0x58] sm:$0xff] }
 0x189   :  { %718 = vmatpush.msra.mxu0 %v1688_v24  ;;  %738 = vmatpush.msra.mxu1 %v1690_v25  ;;  %v2702_v24 = vld [vmem:[#allocation27_spill] sm:$0xff]  ;;  %v2703_v25 = vld [vmem:[#allocation33_spill] sm:$0xff] }
 0x18a   :  { %758 = vmatpush.msra.mxu2 %v1745_v43  ;;  %778 = vmatpush.msra.mxu3 %v1695_v26  ;;  %v2704_v26 = vld [vmem:[#allocation28_spill] sm:$0xff] }
 0x18b   :  { %719 = vmatpush.msra.mxu0 %v1700_v28  ;;  %739 = vmatpush.msra.mxu1 %v1702_v29  ;;  %v1336_v28 = vld [vmem:[%s2516_s0 + $0x48] sm:$0xff] }
 0x18c   :  { %759 = vmatpush.msra.mxu2 %v1757_v47  ;;  %779 = vmatpush.msra.mxu3 %v1707_v30 }
 0x18d   :  { %720 = vmatpush.msra.mxu0 %v1712_v32  ;;  %740 = vmatpush.msra.mxu1 %v1714_v33 }
 0x18e   :  { %760 = vmatpush.msra.mxu2 %v2679_v1  ;;  %780 = vmatpush.msra.mxu3 %v2680_v2 }
 0x18f   :  { %721 = vmatpush.msra.mxu0 %v2681_v3  ;;  %741 = vmatpush.msra.mxu1 %v2682_v4 }
 0x190   :  { %761 = vmatpush.msra.mxu2 %v2683_v5  ;;  %781 = vmatpush.msra.mxu3 %v2684_v6 }
 0x191   :  { %722 = vmatpush.msra.mxu0 %v2685_v7  ;;  %742 = vmatpush.msra.mxu1 %v2686_v8 }
 0x192   :  { %762 = vmatpush.msra.mxu2 %v2687_v9  ;;  %782 = vmatpush.msra.mxu3 %v2688_v10 }
 0x193   :  { %723 = vmatpush.msra.mxu0 %v2689_v11  ;;  %743 = vmatpush.msra.mxu1 %v2690_v12 }
 0x194   :  { %763 = vmatpush.msra.mxu2 %v2691_v13  ;;  %783 = vmatpush.msra.mxu3 %v2692_v14 }
 0x195   :  { %724 = vmatpush.msra.mxu0 %v2693_v15  ;;  %744 = vmatpush.msra.mxu1 %v2694_v16 }
 0x196   :  { %764 = vmatpush.msra.mxu2 %v2695_v17  ;;  %784 = vmatpush.msra.mxu3 %v2696_v18 }
 0x197   :  { %725 = vmatpush.msra.mxu0 %v2697_v19  ;;  %745 = vmatpush.msra.mxu1 %v2698_v20 }
 0x198   :  { %765 = vmatpush.msra.mxu2 %v2699_v21  ;;  %785 = vmatpush.msra.mxu3 %v2700_v22  ;;  %v2119_v21 = vld [vmem:[#allocation4 + $0x1e8] sm:$0xff]  ;;  %v2122_v22 = vld [vmem:[#allocation4 + $0x1f0] sm:$0xff] }
 0x199   :  { %726 = vmatpush.msra.mxu0 %v2701_v23  ;;  %746 = vmatpush.msra.mxu1 %v2702_v24  ;;  %v2125_v23 = vld [vmem:[#allocation4 + $0x1f8] sm:$0xff]  ;;  %v2128_v24 = vld [vmem:[#allocation4 + $0x1c0] sm:$0xff] }
 0x19a   :  { %766 = vmatpush.msra.mxu2 %v2703_v25  ;;  %786 = vmatpush.msra.mxu3 %v2704_v26  ;;  %v2131_v25 = vld [vmem:[#allocation4 + $0x1c8] sm:$0xff]  ;;  %v2134_v26 = vld [vmem:[#allocation4 + $0x1d0] sm:$0xff] }
 0x1f6   :  { %v424_v29 = vpop.f32.mrf.mxu0  ;;  %v444_v30 = vpop.f32.mrf.mxu1 }
 0x1f7   :  { %v487_v31 = vadd.f32 %v1335_v27, %v424_v29  ;;  %v488_v32 = vadd.f32 %v1336_v28, %v444_v30  ;;  %v2137_v27 = vld [vmem:[#allocation4 + $0x1d8] sm:$0xff]  ;;  %v2140_v28 = vld [vmem:[#allocation4 + $0x1a0] sm:$0xff]  ;;  %v2143_v29 = vld [vmem:[#allocation4 + $0x1a8] sm:$0xff] }
 0x1f8   :  { %v2146_v30 = vld [vmem:[#allocation4 + $0x1b0] sm:$0xff] }
 0x1f9   :  { %v1339_v33 = vmul.f32 -1.442695, %v487_v31  ;;  %v1340_v35 = vmul.f32 -1.442695, %v488_v32  ;;  %v2149_v31 = vld [vmem:[#allocation4 + $0x1b8] sm:$0xff]  ;;  %v2152_v32 = vld [vmem:[#allocation4 + $0x180] sm:$0xff] }
 0x1fb   :  { %1413 = vpow2.f32 %v1339_v33  ;;  %v2155_v33 = vld [vmem:[#allocation4 + $0x188] sm:$0xff] }
 0x1fc   :  { %1415 = vpow2.f32 %v1340_v35  ;;  %v2158_v35 = vld [vmem:[#allocation4 + $0x190] sm:$0xff] }
 0x1fd   :  { %v484_v43 = vpop.f32.mrf.mxu3  ;;  %v464_v56 = vpop.f32.mrf.mxu2 }
 0x1fe   :  { %v490_v47 = vadd.f32 %v1338_v39, %v484_v43  ;;  %v489_v62 = vadd.f32 %v1337_v40, %v464_v56  ;;  %v2161_v39 = vld [vmem:[#allocation4 + $0x198] sm:$0xff]  ;;  %v2164_v43 = vld [vmem:[#allocation4 + $0x160] sm:$0xff] }
 0x1ff   :  { %v2185_v40 = vld [vmem:[#allocation4 + $0x158] sm:$0xff]  ;;  %v2188_v56 = vld [vmem:[#allocation4 + $0x120] sm:$0xff] }
 0x200   :  { %v1341_v60 = vmul.f32 -1.442695, %v490_v47  ;;  %v2167_v47 = vld [vmem:[#allocation4 + $0x168] sm:$0xff] }
 0x201   :  { %v1414_v63 = vpop.eup %1413 }
 0x202   :  { %v1416_v34 = vpop.eup %1415  ;;  %v494_v36 = vadd.f32 1.0, %v1414_v63  ;;  %1417 = vpow2.f32 %v1341_v60  ;;  %v2170_v60 = vld [vmem:[#allocation4 + $0x170] sm:$0xff]  ;;  %v2173_v63 = vld [vmem:[#allocation4 + $0x178] sm:$0xff] }
 0x203   :  { %v513_v37 = vadd.f32 1.0, %v1416_v34  ;;  %v2176_v34 = vld [vmem:[#allocation4 + $0x140] sm:$0xff] }
 0x204   :  { %1419 = vrcp.f32 %v494_v36  ;;  %v506_v41 = vand.u32 2147483648, %v494_v36  ;;  %v504_v48 = vand.u32 2147483647, %v494_v36  ;;  %vm500_vm10 = vweird.f32 %v494_v36 }
 0x205   :  { %1421 = vrcp.f32 %v513_v37  ;;  %v525_v58 = vand.u32 2147483648, %v513_v37  ;;  %v523_v61 = vand.u32 2147483647, %v513_v37  ;;  %vm519_vm11 = vweird.f32 %v513_v37 }
 0x206   :  { %v507_v42 = vor.u32 1.1754944e-38, %v506_v41  ;;  %vm505_vm14 = vcmp.eq.f32.partialorder %v504_v48, 8.507059e+37  ;;  %v2218_v41 = vld [vmem:[#allocation4 + $0xf0] sm:$0xff]  ;;  %v2227_v48 = vld [vmem:[#allocation4 + $0xc8] sm:$0xff] }
 0x207   :  { %v526_v2 = vor.u32 1.1754944e-38, %v525_v58  ;;  %vm524_vm15 = vcmp.eq.f32.partialorder %v523_v61, 8.507059e+37  ;;  %v2221_v58 = vld [vmem:[#allocation4 + $0xf8] sm:$0xff] }
 0x208   :  { %v1418_v44 = vpop.eup %1417  ;;  %v2233_v61 = vld [vmem:[#allocation4 + $0xd8] sm:$0xff] }
 0x209   :  { %v533_v53 = vadd.f32 1.0, %v1418_v44  ;;  %v2191_v44 = vld [vmem:[#allocation4 + $0x128] sm:$0xff]  ;;  %2706 = vst [vmem:[#allocation21_spill] sm:$0xff] %v2233_v61 }
 0x20a   :  { %v1420_v46 = vpop.eup %1419 }
 0x20b   :  { %v1422_v45 = vpop.eup %1421  ;;  %v496_v57 = vmul.f32 %v1420_v46, %v494_v36  ;;  %1423 = vrcp.f32 %v533_v53  ;;  %vm501_vm8 = vweird.f32 %v1420_v46  ;;  %v545_v14 = vand.u32 2147483648, %v533_v53  ;;  %v2179_v36 = vld [vmem:[#allocation4 + $0x148] sm:$0xff] }
 0x20c   :  { %v515_v0 = vmul.f32 %v1422_v45, %v513_v37  ;;  %1425 = vtanh.f32 %v489_v62  ;;  %vm520_vm9 = vweird.f32 %v1422_v45  ;;  %vm502_vm12 = vmor %vm500_vm10, %vm501_vm8  ;;  %vm539_vm1 = vweird.f32 %v533_v53  ;;  %v2182_v37 = vld [vmem:[#allocation4 + $0x150] sm:$0xff]  ;;  %v2200_v62 = vld [vmem:[#allocation4 + $0x100] sm:$0xff] }
 0x20d   :  { %v497_v38 = vsub.f32 1.0, %v496_v57  ;;  %vm521_vm13 = vmor %vm519_vm11, %vm520_vm9  ;;  %v543_v15 = vand.u32 2147483647, %v533_v53  ;;  %v546_v17 = vor.u32 1.1754944e-38, %v545_v14  ;;  %v2206_v57 = vld [vmem:[#allocation4 + $0x110] sm:$0xff]  ;;  %v2284_v14 = vld [vmem:[#allocation4 + $0x20] sm:$0xff] }
 0x20e   :  { %v516_v55 = vsub.f32 1.0, %v515_v0  ;;  %v2209_v0 = vld [vmem:[#allocation4 + $0x118] sm:$0xff]  ;;  %2723 = vst [vmem:[#allocation20_spill] sm:$0xff] %v2284_v14 }
 0x20f   :  { %v498_v52 = vmul.f32 %v1420_v46, %v497_v38  ;;  %vm544_vm3 = vcmp.eq.f32.partialorder %v543_v15, 8.507059e+37  ;;  %v2212_v38 = vld [vmem:[#allocation4 + $0xe0] sm:$0xff]  ;;  %v2287_v15 = vld [vmem:[#allocation4 + $0x28] sm:$0xff] }
 0x210   :  { %v517_v51 = vmul.f32 %v1422_v45, %v516_v55  ;;  %v2215_v55 = vld [vmem:[#allocation4 + $0xe8] sm:$0xff]  ;;  %2724 = vst [vmem:[#allocation22_spill] sm:$0xff] %v2287_v15 }
 0x211   :  { %v1424_v59 = vpop.eup %1423  ;;  %v499_v49 = vadd.f32 %v1420_v46, %v498_v52  ;;  %v2224_v52 = vld [vmem:[#allocation4 + $0xc0] sm:$0xff] }
 0x212   :  { %v518_v54 = vadd.f32 %v1422_v45, %v517_v51  ;;  %v535_v1 = vmul.f32 %v1424_v59, %v533_v53  ;;  %v1426_v4 = vpop.eup %1425  ;;  %vm540_vm0 = vweird.f32 %v1424_v59  ;;  %v2194_v53 = vld [vmem:[#allocation4 + $0x130] sm:$0xff] }
 0x213   :  { %v503_v3 = vsel %vm502_vm12, %v1420_v46, %v499_v49  ;;  %vm541_vm2 = vmor %vm539_vm1, %vm540_vm0  ;;  %v2197_v46 = vld [vmem:[#allocation4 + $0x138] sm:$0xff]  ;;  %v2230_v51 = vld [vmem:[#allocation4 + $0xd0] sm:$0xff] }
 0x214   :  { %v508_v5 = vsel %vm505_vm14, %v507_v42, %v503_v3  ;;  %v522_v6 = vsel %vm521_vm13, %v1422_v45, %v518_v54  ;;  %v536_v7 = vsub.f32 1.0, %v535_v1  ;;  %v2203_v45 = vld [vmem:[#allocation4 + $0x108] sm:$0xff]  ;;  %2705 = vst [vmem:[#allocation7_spill] sm:$0xff] %v2230_v51  ;;  %v2242_v42 = vld [vmem:[#allocation4 + $0xb0] sm:$0xff]  ;;  %v2245_v54 = vld [vmem:[#allocation4 + $0xb8] sm:$0xff] }
 0x215   :  { %v527_v8 = vsel %vm524_vm15, %v526_v2, %v522_v6  ;;  %v550_v9 = vmul.f32 %v1426_v4, %v508_v5  ;;  %v2239_v49 = vld [vmem:[#allocation4 + $0xa8] sm:$0xff]  ;;  %2709 = vst [vmem:[#allocation10_spill] sm:$0xff] %v2242_v42  ;;  %v2248_v1 = vld [vmem:[#allocation4 + $0x80] sm:$0xff]  ;;  %v2254_v3 = vld [vmem:[#allocation4 + $0x90] sm:$0xff] }
 0x216   :  { %v549_v10 = vmul.f32 %v527_v8, %v2033_v50  ;;  %v537_v11 = vmul.f32 %v1424_v59, %v536_v7  ;;  %v2116_v50 = vld [vmem:[#allocation4 + $0x1e0] sm:$0xff]  ;;  %2708 = vst [vmem:[#allocation9_spill] sm:$0xff] %v2239_v49  ;;  %v2251_v2 = vld [vmem:[#allocation4 + $0x88] sm:$0xff]  ;;  %v2257_v4 = vld [vmem:[#allocation4 + $0x98] sm:$0xff] }
 0x217   :  { %2710 = vst [vmem:[#allocation25_spill] sm:$0xff] %v2245_v54  ;;  %v2260_v5 = vld [vmem:[#allocation4 + $0x60] sm:$0xff]  ;;  %v2263_v6 = vld [vmem:[#allocation4 + $0x68] sm:$0xff]  ;;  %v2266_v7 = vld [vmem:[#allocation4 + $0x70] sm:$0xff] }
 0x218   :  { %v2113_v12 = vadd.f32 %v550_v9, %v549_v10  ;;  %v538_v13 = vadd.f32 %v1424_v59, %v537_v11  ;;  %2711 = vst [vmem:[#allocation11_spill] sm:$0xff] %v2248_v1  ;;  %v2269_v8 = vld [vmem:[#allocation4 + $0x78] sm:$0xff]  ;;  %v2272_v9 = vld [vmem:[#allocation4 + $0x40] sm:$0xff]  ;;  %v2275_v10 = vld [vmem:[#allocation4 + $0x48] sm:$0xff] }
 0x219   :  { %2712 = vst [vmem:[#allocation12_spill] sm:$0xff] %v2251_v2  ;;  %v2278_v11 = vld [vmem:[#allocation4 + $0x50] sm:$0xff] }
 0x21a   :  { %1427 = vtanh.f32 %v2113_v12  ;;  %v542_v16 = vsel %vm541_vm2, %v1424_v59, %v538_v13  ;;  %v2236_v59 = vld [vmem:[#allocation4 + $0xa0] sm:$0xff]  ;;  %2713 = vst [vmem:[#allocation13_spill] sm:$0xff] %v2254_v3  ;;  %v2281_v13 = vld [vmem:[#allocation4 + $0x58] sm:$0xff] }
 0x21b   :  { %v547_v19 = vsel %vm544_vm3, %v546_v17, %v542_v16  ;;  %2707 = vst [vmem:[#allocation8_spill] sm:$0xff] %v2236_v59  ;;  %v2290_v16 = vld [vmem:[#allocation4 + $0x30] sm:$0xff]  ;;  %v2293_v17 = vld [vmem:[#allocation4 + $0x38] sm:$0xff] }
 0x21c   :  { %2714 = vst [vmem:[#allocation29_spill] sm:$0xff] %v2257_v4 }
 0x21d   :  { %2715 = vst [vmem:[#allocation14_spill] sm:$0xff] %v2260_v5 }
 0x21e   :  { %2716 = vst [vmem:[#allocation15_spill] sm:$0xff] %v2263_v6 }
 0x21f   :  { %2717 = vst [vmem:[#allocation16_spill] sm:$0xff] %v2266_v7 }
 0x220   :  { %v1428_v18 = vpop.eup %1427  ;;  %2718 = vst [vmem:[#allocation30_spill] sm:$0xff] %v2269_v8 }
 0x221   :  { %v553_v20 = vmul.f32 %v1428_v18, %v547_v19  ;;  %2719 = vst [vmem:[#allocation17_spill] sm:$0xff] %v2272_v9  ;;  %v2296_v18 = vld [vmem:[#allocation4] sm:$0xff]  ;;  %v2299_v19 = vld [vmem:[#allocation4 + $0x8] sm:$0xff] }
 0x222   :  { %2720 = vst [vmem:[#allocation18_spill] sm:$0xff] %v2275_v10 }
 0x223   :  { %575 = vmatmul.f32.vlgmr.msrb.gmra.mxu0 %v553_v20  ;;  %595 = vmatmul.f32.vlgmr.msrb.gmra.mxu1 %v553_v20  ;;  %2721 = vst [vmem:[#allocation19_spill] sm:$0xff] %v2278_v11 }
 0x224   :  { %615 = vmatmul.f32.vlgmr.msrb.gmra.mxu2 %v553_v20  ;;  %635 = vmatmul.f32.vlgmr.msrb.gmra.mxu3 %v553_v20  ;;  %2722 = vst [vmem:[#allocation31_spill] sm:$0xff] %v2281_v13  ;;  %v2302_v20 = vld [vmem:[#allocation4 + $0x10] sm:$0xff] }
 0x225   :  { %863 = vmatpush.msrb.mxu0 %v2116_v50  ;;  %883 = vmatpush.msrb.mxu1 %v2119_v21  ;;  %2725 = vst [vmem:[#allocation23_spill] sm:$0xff] %v2290_v16 }
 0x226   :  { %903 = vmatpush.msrb.mxu2 %v2122_v22  ;;  %923 = vmatpush.msrb.mxu3 %v2125_v23  ;;  %2726 = vst [vmem:[#allocation32_spill] sm:$0xff] %v2293_v17 }
 0x227   :  { %864 = vmatpush.msrb.mxu0 %v2128_v24  ;;  %884 = vmatpush.msrb.mxu1 %v2131_v25  ;;  %2727 = vst [vmem:[#allocation24_spill] sm:$0xff] %v2296_v18 }
 0x228   :  { %904 = vmatpush.msrb.mxu2 %v2134_v26  ;;  %924 = vmatpush.msrb.mxu3 %v2137_v27  ;;  %2728 = vst [vmem:[#allocation26_spill] sm:$0xff] %v2299_v19 }
 0x229   :  { %865 = vmatpush.msrb.mxu0 %v2140_v28  ;;  %885 = vmatpush.msrb.mxu1 %v2143_v29  ;;  %2729 = vst [vmem:[#allocation27_spill] sm:$0xff] %v2302_v20 }
 0x22a   :  { %905 = vmatpush.msrb.mxu2 %v2146_v30  ;;  %925 = vmatpush.msrb.mxu3 %v2149_v31 }
 0x22b   :  { %866 = vmatpush.msrb.mxu0 %v2152_v32  ;;  %886 = vmatpush.msrb.mxu1 %v2155_v33 }
 0x22c   :  { %906 = vmatpush.msrb.mxu2 %v2158_v35  ;;  %926 = vmatpush.msrb.mxu3 %v2161_v39 }
 0x22d   :  { %867 = vmatpush.msrb.mxu0 %v2164_v43  ;;  %887 = vmatpush.msrb.mxu1 %v2167_v47 }
 0x22e   :  { %907 = vmatpush.msrb.mxu2 %v2170_v60  ;;  %927 = vmatpush.msrb.mxu3 %v2173_v63 }
 0x22f   :  { %868 = vmatpush.msrb.mxu0 %v2176_v34  ;;  %888 = vmatpush.msrb.mxu1 %v2179_v36 }
 0x230   :  { %908 = vmatpush.msrb.mxu2 %v2182_v37  ;;  %928 = vmatpush.msrb.mxu3 %v2185_v40 }
 0x231   :  { %869 = vmatpush.msrb.mxu0 %v2188_v56  ;;  %889 = vmatpush.msrb.mxu1 %v2191_v44 }
 0x232   :  { %909 = vmatpush.msrb.mxu2 %v2194_v53  ;;  %929 = vmatpush.msrb.mxu3 %v2197_v46 }
 0x233   :  { %870 = vmatpush.msrb.mxu0 %v2200_v62  ;;  %890 = vmatpush.msrb.mxu1 %v2203_v45 }
 0x234   :  { %910 = vmatpush.msrb.mxu2 %v2206_v57  ;;  %930 = vmatpush.msrb.mxu3 %v2209_v0 }
 0x235   :  { %871 = vmatpush.msrb.mxu0 %v2212_v38  ;;  %891 = vmatpush.msrb.mxu1 %v2215_v55 }
 0x236   :  { %911 = vmatpush.msrb.mxu2 %v2218_v41  ;;  %931 = vmatpush.msrb.mxu3 %v2221_v58 }
 0x237   :  { %872 = vmatpush.msrb.mxu0 %v2224_v52  ;;  %892 = vmatpush.msrb.mxu1 %v2227_v48 }
 0x238   :  { %912 = vmatpush.msrb.mxu2 %v2230_v51  ;;  %932 = vmatpush.msrb.mxu3 %v2233_v61 }
 0x239   :  { %873 = vmatpush.msrb.mxu0 %v2236_v59  ;;  %893 = vmatpush.msrb.mxu1 %v2239_v49 }
 0x23a   :  { %913 = vmatpush.msrb.mxu2 %v2242_v42  ;;  %933 = vmatpush.msrb.mxu3 %v2245_v54 }
 0x23b   :  { %874 = vmatpush.msrb.mxu0 %v2248_v1  ;;  %894 = vmatpush.msrb.mxu1 %v2251_v2 }
 0x23c   :  { %914 = vmatpush.msrb.mxu2 %v2254_v3  ;;  %934 = vmatpush.msrb.mxu3 %v2257_v4 }
 0x23d   :  { %875 = vmatpush.msrb.mxu0 %v2260_v5  ;;  %895 = vmatpush.msrb.mxu1 %v2263_v6 }
 0x23e   :  { %915 = vmatpush.msrb.mxu2 %v2266_v7  ;;  %935 = vmatpush.msrb.mxu3 %v2269_v8 }
 0x23f   :  { %876 = vmatpush.msrb.mxu0 %v2272_v9  ;;  %896 = vmatpush.msrb.mxu1 %v2275_v10 }
 0x240   :  { %916 = vmatpush.msrb.mxu2 %v2278_v11  ;;  %936 = vmatpush.msrb.mxu3 %v2281_v13 }
 0x241   :  { %877 = vmatpush.msrb.mxu0 %v2284_v14  ;;  %897 = vmatpush.msrb.mxu1 %v2287_v15  ;;  %v2305_v15 = vld [vmem:[#allocation4 + $0x18] sm:$0xff] }
 0x242   :  { %917 = vmatpush.msrb.mxu2 %v2290_v16  ;;  %937 = vmatpush.msrb.mxu3 %v2293_v17  ;;  %2730 = vst [vmem:[#allocation33_spill] sm:$0xff] %v2305_v15  ;;  %v1342_v17 = vld [vmem:[%s2516_s0 + $0x60] sm:$0xff] }
 0x243   :  { %878 = vmatpush.msrb.mxu0 %v2296_v18  ;;  %898 = vmatpush.msrb.mxu1 %v2299_v19  ;;  %v1343_v18 = vld [vmem:[%s2516_s0 + $0x68] sm:$0xff] }
 0x244   :  { %918 = vmatpush.msrb.mxu2 %v2302_v20  ;;  %938 = vmatpush.msrb.mxu3 %v2305_v15  ;;  %v1345_v20 = vld [vmem:[%s2516_s0 + $0x78] sm:$0xff] }
 0x2a0   :  { %v576_v16 = vpop.f32.mrf.mxu0  ;;  %v596_v14 = vpop.f32.mrf.mxu1 }
 0x2a1   :  { %v639_v13 = vadd.f32 %v1342_v17, %v576_v16  ;;  %v640_v19 = vadd.f32 %v1343_v18, %v596_v14 }
 0x2a3   :  { %v1346_v11 = vmul.f32 -1.442695, %v639_v13  ;;  %v1347_v10 = vmul.f32 -1.442695, %v640_v19  ;;  %v1344_v13 = vld [vmem:[%s2516_s0 + $0x70] sm:$0xff] }
 0x2a5   :  { %1429 = vpow2.f32 %v1346_v11 }
 0x2a6   :  { %1431 = vpow2.f32 %v1347_v10 }
 0x2a7   :  { %v636_v15 = vpop.f32.mrf.mxu3  ;;  %v616_v11 = vpop.f32.mrf.mxu2 }
 0x2a8   :  { %v642_v9 = vadd.f32 %v1345_v20, %v636_v15  ;;  %v641_v18 = vadd.f32 %v1344_v13, %v616_v11 }
 0x2aa   :  { %v1348_v8 = vmul.f32 -1.442695, %v642_v9 }
 0x2ab   :  { %v1430_v7 = vpop.eup %1429 }
 0x2ac   :  { %v1432_v6 = vpop.eup %1431  ;;  %v646_v5 = vadd.f32 1.0, %v1430_v7  ;;  %1433 = vpow2.f32 %v1348_v8 }
 0x2ad   :  { %v665_v4 = vadd.f32 1.0, %v1432_v6 }
 0x2ae   :  { %1435 = vrcp.f32 %v646_v5  ;;  %v658_v7 = vand.u32 2147483648, %v646_v5  ;;  %v656_v3 = vand.u32 2147483647, %v646_v5  ;;  %vm652_vm6 = vweird.f32 %v646_v5 }
 0x2af   :  { %1437 = vrcp.f32 %v665_v4  ;;  %v677_v6 = vand.u32 2147483648, %v665_v4  ;;  %v675_v1 = vand.u32 2147483647, %v665_v4  ;;  %vm671_vm7 = vweird.f32 %v665_v4 }
 0x2b0   :  { %v659_v13 = vor.u32 1.1754944e-38, %v658_v7  ;;  %vm657_vm10 = vcmp.eq.f32.partialorder %v656_v3, 8.507059e+37 }
 0x2b1   :  { %vm676_vm11 = vcmp.eq.f32.partialorder %v675_v1, 8.507059e+37 }
 0x2b2   :  { %v1434_v14 = vpop.eup %1433 }
 0x2b3   :  { %v685_v16 = vadd.f32 1.0, %v1434_v14 }
 0x2b4   :  { %v1436_v17 = vpop.eup %1435 }
 0x2b5   :  { %v1438_v10 = vpop.eup %1437  ;;  %v648_v19 = vmul.f32 %v1436_v17, %v646_v5  ;;  %1439 = vrcp.f32 %v685_v16  ;;  %vm653_vm4 = vweird.f32 %v1436_v17  ;;  %vm691_vm13 = vweird.f32 %v685_v16 }
 0x2b6   :  { %v667_v9 = vmul.f32 %v1438_v10, %v665_v4  ;;  %1441 = vtanh.f32 %v641_v18  ;;  %vm672_vm5 = vweird.f32 %v1438_v10  ;;  %vm654_vm8 = vmor %vm652_vm6, %vm653_vm4 }
 0x2b7   :  { %v649_v15 = vsub.f32 1.0, %v648_v19  ;;  %vm673_vm9 = vmor %vm671_vm7, %vm672_vm5  ;;  %v678_v19 = vor.u32 1.1754944e-38, %v677_v6  ;;  %v2738_v6 = vld [vmem:[#allocation12_spill] sm:$0xff] }
 0x2b8   :  { %v668_v20 = vsub.f32 1.0, %v667_v9 }
 0x2b9   :  { %v650_v8 = vmul.f32 %v1436_v17, %v649_v15 }
 0x2ba   :  { %v669_v2 = vmul.f32 %v1438_v10, %v668_v20 }
 0x2bb   :  { %v1440_v54 = vpop.eup %1439  ;;  %v651_v42 = vadd.f32 %v1436_v17, %v650_v8 }
 0x2bc   :  { %v670_v11 = vadd.f32 %v1438_v10, %v669_v2  ;;  %v687_v14 = vmul.f32 %v1440_v54, %v685_v16  ;;  %v1442_v18 = vpop.eup %1441  ;;  %vm692_vm12 = vweird.f32 %v1440_v54  ;;  %v697_v2 = vand.u32 2147483648, %v685_v16 }
 0x2bd   :  { %v655_v9 = vsel %vm654_vm8, %v1436_v17, %v651_v42  ;;  %v695_v42 = vand.u32 2147483647, %v685_v16  ;;  %vm693_vm14 = vmor %vm691_vm13, %vm692_vm12  ;;  %v2737_v16 = vld [vmem:[#allocation11_spill] sm:$0xff] }
 0x2be   :  { %v660_v49 = vsel %vm657_vm10, %v659_v13, %v655_v9  ;;  %v674_v15 = vsel %vm673_vm9, %v1438_v10, %v670_v11  ;;  %v688_v59 = vsub.f32 1.0, %v687_v14  ;;  %v698_v17 = vor.u32 1.1754944e-38, %v697_v2  ;;  %v2739_v13 = vld [vmem:[#allocation13_spill] sm:$0xff]  ;;  %v2741_v14 = vld [vmem:[#allocation14_spill] sm:$0xff]  ;;  %v2743_v9 = vld [vmem:[#allocation16_spill] sm:$0xff] }
 0x2bf   :  { %v679_v20 = vsel %vm676_vm11, %v678_v19, %v674_v15  ;;  %v702_v61 = vmul.f32 %v1442_v18, %v660_v49  ;;  %vm696_vm15 = vcmp.eq.f32.partialorder %v695_v42, 8.507059e+37  ;;  %v2735_v49 = vld [vmem:[#allocation10_spill] sm:$0xff]  ;;  %v2740_v11 = vld [vmem:[#allocation29_spill] sm:$0xff]  ;;  %v2742_v19 = vld [vmem:[#allocation15_spill] sm:$0xff] }
 0x2c0   :  { %v701_v51 = vmul.f32 %v679_v20, %v2113_v12  ;;  %v689_v8 = vmul.f32 %v1440_v54, %v688_v59  ;;  %v2731_v12 = vld [vmem:[#allocation7_spill] sm:$0xff]  ;;  %v2734_v59 = vld [vmem:[#allocation9_spill] sm:$0xff]  ;;  %v2744_v18 = vld [vmem:[#allocation30_spill] sm:$0xff] }
 0x2c1   :  { %v2745_v15 = vld [vmem:[#allocation17_spill] sm:$0xff]  ;;  %v2746_v20 = vld [vmem:[#allocation18_spill] sm:$0xff]  ;;  %v2749_v2 = vld [vmem:[#allocation20_spill] sm:$0xff] }
 0x2c2   :  { %v2321_v5 = vadd.f32 %v702_v61, %v701_v51  ;;  %v690_v4 = vadd.f32 %v1440_v54, %v689_v8  ;;  %v2732_v51 = vld [vmem:[#allocation21_spill] sm:$0xff]  ;;  %v2733_v61 = vld [vmem:[#allocation8_spill] sm:$0xff]  ;;  %v2747_v8 = vld [vmem:[#allocation19_spill] sm:$0xff] }
 0x2c3   :  { %v2750_v42 = vld [vmem:[#allocation22_spill] sm:$0xff] }
 0x2c4   :  { %1443 = vtanh.f32 %v2321_v5  ;;  %v694_v3 = vsel %vm693_vm14, %v1440_v54, %v690_v4  ;;  %v2736_v54 = vld [vmem:[#allocation25_spill] sm:$0xff]  ;;  %v2748_v4 = vld [vmem:[#allocation31_spill] sm:$0xff] }
 0x2c5   :  { %v699_v10 = vsel %vm696_vm15, %v698_v17, %v694_v3  ;;  %v2751_v3 = vld [vmem:[#allocation23_spill] sm:$0xff]  ;;  %v2752_v17 = vld [vmem:[#allocation32_spill] sm:$0xff] }
 0x2ca   :  { %v1444_v1 = vpop.eup %1443 }
 0x2cb   :  { %v705_v7 = vmul.f32 %v1444_v1, %v699_v10  ;;  %v2753_v1 = vld [vmem:[#allocation24_spill] sm:$0xff]  ;;  %v2754_v10 = vld [vmem:[#allocation26_spill] sm:$0xff] }
 0x2cd   :  { %727 = vmatmul.f32.vlgmr.msra.gmra.mxu0 %v705_v7  ;;  %747 = vmatmul.f32.vlgmr.msra.gmra.mxu1 %v705_v7 }
 0x2ce   :  { %767 = vmatmul.f32.vlgmr.msra.gmra.mxu2 %v705_v7  ;;  %787 = vmatmul.f32.vlgmr.msra.gmra.mxu3 %v705_v7  ;;  %v2755_v7 = vld [vmem:[#allocation27_spill] sm:$0xff] }
 0x2cf   :  { %1015 = vmatpush.msra.mxu0 %v2116_v50  ;;  %1035 = vmatpush.msra.mxu1 %v2119_v21 }
 0x2d0   :  { %1055 = vmatpush.msra.mxu2 %v2122_v22  ;;  %1075 = vmatpush.msra.mxu3 %v2125_v23 }
 0x2d1   :  { %1016 = vmatpush.msra.mxu0 %v2128_v24  ;;  %1036 = vmatpush.msra.mxu1 %v2131_v25 }
 0x2d2   :  { %1056 = vmatpush.msra.mxu2 %v2134_v26  ;;  %1076 = vmatpush.msra.mxu3 %v2137_v27 }
 0x2d3   :  { %1017 = vmatpush.msra.mxu0 %v2140_v28  ;;  %1037 = vmatpush.msra.mxu1 %v2143_v29 }
 0x2d4   :  { %1057 = vmatpush.msra.mxu2 %v2146_v30  ;;  %1077 = vmatpush.msra.mxu3 %v2149_v31 }
 0x2d5   :  { %1018 = vmatpush.msra.mxu0 %v2152_v32  ;;  %1038 = vmatpush.msra.mxu1 %v2155_v33 }
 0x2d6   :  { %1058 = vmatpush.msra.mxu2 %v2158_v35  ;;  %1078 = vmatpush.msra.mxu3 %v2161_v39 }
 0x2d7   :  { %1019 = vmatpush.msra.mxu0 %v2164_v43  ;;  %1039 = vmatpush.msra.mxu1 %v2167_v47 }
 0x2d8   :  { %1059 = vmatpush.msra.mxu2 %v2170_v60  ;;  %1079 = vmatpush.msra.mxu3 %v2173_v63 }
 0x2d9   :  { %1020 = vmatpush.msra.mxu0 %v2176_v34  ;;  %1040 = vmatpush.msra.mxu1 %v2179_v36 }
 0x2da   :  { %1060 = vmatpush.msra.mxu2 %v2182_v37  ;;  %1080 = vmatpush.msra.mxu3 %v2185_v40 }
 0x2db   :  { %1021 = vmatpush.msra.mxu0 %v2188_v56  ;;  %1041 = vmatpush.msra.mxu1 %v2191_v44 }
 0x2dc   :  { %1061 = vmatpush.msra.mxu2 %v2194_v53  ;;  %1081 = vmatpush.msra.mxu3 %v2197_v46 }
 0x2dd   :  { %1022 = vmatpush.msra.mxu0 %v2200_v62  ;;  %1042 = vmatpush.msra.mxu1 %v2203_v45 }
 0x2de   :  { %1062 = vmatpush.msra.mxu2 %v2206_v57  ;;  %1082 = vmatpush.msra.mxu3 %v2209_v0 }
 0x2df   :  { %1023 = vmatpush.msra.mxu0 %v2212_v38  ;;  %1043 = vmatpush.msra.mxu1 %v2215_v55 }
 0x2e0   :  { %1063 = vmatpush.msra.mxu2 %v2218_v41  ;;  %1083 = vmatpush.msra.mxu3 %v2221_v58 }
 0x2e1   :  { %1024 = vmatpush.msra.mxu0 %v2224_v52  ;;  %1044 = vmatpush.msra.mxu1 %v2227_v48 }
 0x2e2   :  { %1064 = vmatpush.msra.mxu2 %v2731_v12  ;;  %1084 = vmatpush.msra.mxu3 %v2732_v51 }
 0x2e3   :  { %1025 = vmatpush.msra.mxu0 %v2733_v61  ;;  %1045 = vmatpush.msra.mxu1 %v2734_v59 }
 0x2e4   :  { %1065 = vmatpush.msra.mxu2 %v2735_v49  ;;  %1085 = vmatpush.msra.mxu3 %v2736_v54 }
 0x2e5   :  { %1026 = vmatpush.msra.mxu0 %v2737_v16  ;;  %1046 = vmatpush.msra.mxu1 %v2738_v6 }
 0x2e6   :  { %1066 = vmatpush.msra.mxu2 %v2739_v13  ;;  %1086 = vmatpush.msra.mxu3 %v2740_v11 }
 0x2e7   :  { %1027 = vmatpush.msra.mxu0 %v2741_v14  ;;  %1047 = vmatpush.msra.mxu1 %v2742_v19 }
 0x2e8   :  { %1067 = vmatpush.msra.mxu2 %v2743_v9  ;;  %1087 = vmatpush.msra.mxu3 %v2744_v18 }
 0x2e9   :  { %1028 = vmatpush.msra.mxu0 %v2745_v15  ;;  %1048 = vmatpush.msra.mxu1 %v2746_v20  ;;  %v2756_v15 = vld [vmem:[#allocation33_spill] sm:$0xff] }
 0x2ea   :  { %1068 = vmatpush.msra.mxu2 %v2747_v8  ;;  %1088 = vmatpush.msra.mxu3 %v2748_v4  ;;  %v1349_v4 = vld [vmem:[%s2516_s0 + $0x80] sm:$0xff] }
 0x2eb   :  { %1029 = vmatpush.msra.mxu0 %v2749_v2  ;;  %1049 = vmatpush.msra.mxu1 %v2750_v42  ;;  %v1350_v42 = vld [vmem:[%s2516_s0 + $0x88] sm:$0xff] }
 0x2ec   :  { %1069 = vmatpush.msra.mxu2 %v2751_v3  ;;  %1089 = vmatpush.msra.mxu3 %v2752_v17 }
 0x2ed   :  { %1030 = vmatpush.msra.mxu0 %v2753_v1  ;;  %1050 = vmatpush.msra.mxu1 %v2754_v10 }
 0x2ee   :  { %1070 = vmatpush.msra.mxu2 %v2755_v7  ;;  %1090 = vmatpush.msra.mxu3 %v2756_v15  ;;  %v1352_v7 = vld [vmem:[%s2516_s0 + $0x98] sm:$0xff] }
 0x34a   :  { %v728_v2 = vpop.f32.mrf.mxu0  ;;  %v748_v3 = vpop.f32.mrf.mxu1 }
 0x34b   :  { %v791_v8 = vadd.f32 %v1349_v4, %v728_v2  ;;  %v792_v17 = vadd.f32 %v1350_v42, %v748_v3 }
 0x34d   :  { %v1353_v20 = vmul.f32 -1.442695, %v791_v8  ;;  %v1354_v1 = vmul.f32 -1.442695, %v792_v17  ;;  %v1351_v8 = vld [vmem:[%s2516_s0 + $0x90] sm:$0xff] }
 0x34f   :  { %1445 = vpow2.f32 %v1353_v20 }
 0x350   :  { %1447 = vpow2.f32 %v1354_v1 }
 0x351   :  { %v788_v15 = vpop.f32.mrf.mxu3  ;;  %v768_v20 = vpop.f32.mrf.mxu2 }
 0x352   :  { %v794_v10 = vadd.f32 %v1352_v7, %v788_v15  ;;  %v793_v3 = vadd.f32 %v1351_v8, %v768_v20 }
 0x354   :  { %v1355_v18 = vmul.f32 -1.442695, %v794_v10 }
 0x355   :  { %v1446_v9 = vpop.eup %1445 }
 0x356   :  { %v1448_v19 = vpop.eup %1447  ;;  %v798_v14 = vadd.f32 1.0, %v1446_v9  ;;  %1449 = vpow2.f32 %v1355_v18 }
 0x357   :  { %v817_v11 = vadd.f32 1.0, %v1448_v19 }
 0x358   :  { %1451 = vrcp.f32 %v798_v14  ;;  %v810_v9 = vand.u32 2147483648, %v798_v14  ;;  %v808_v13 = vand.u32 2147483647, %v798_v14  ;;  %vm804_vm2 = vweird.f32 %v798_v14 }
 0x359   :  { %1453 = vrcp.f32 %v817_v11  ;;  %v829_v19 = vand.u32 2147483648, %v817_v11  ;;  %v827_v16 = vand.u32 2147483647, %v817_v11  ;;  %vm823_vm3 = vweird.f32 %v817_v11 }
 0x35a   :  { %v811_v8 = vor.u32 1.1754944e-38, %v810_v9  ;;  %vm809_vm6 = vcmp.eq.f32.partialorder %v808_v13, 8.507059e+37 }
 0x35b   :  { %vm828_vm7 = vcmp.eq.f32.partialorder %v827_v16, 8.507059e+37 }
 0x35c   :  { %v1450_v4 = vpop.eup %1449 }
 0x35d   :  { %v837_v2 = vadd.f32 1.0, %v1450_v4 }
 0x35e   :  { %v1452_v42 = vpop.eup %1451 }
 0x35f   :  { %v1454_v17 = vpop.eup %1453  ;;  %v800_v1 = vmul.f32 %v1452_v42, %v798_v14  ;;  %1455 = vrcp.f32 %v837_v2  ;;  %vm805_vm0 = vweird.f32 %v1452_v42  ;;  %vm843_vm9 = vweird.f32 %v837_v2 }
 0x360   :  { %v819_v15 = vmul.f32 %v1454_v17, %v817_v11  ;;  %1457 = vtanh.f32 %v793_v3  ;;  %vm824_vm1 = vweird.f32 %v1454_v17  ;;  %vm806_vm4 = vmor %vm804_vm2, %vm805_vm0 }
 0x361   :  { %v801_v10 = vsub.f32 1.0, %v800_v1  ;;  %vm825_vm5 = vmor %vm823_vm3, %vm824_vm1  ;;  %v830_v1 = vor.u32 1.1754944e-38, %v829_v19 }
 0x362   :  { %v820_v7 = vsub.f32 1.0, %v819_v15 }
 0x363   :  { %v802_v18 = vmul.f32 %v1452_v42, %v801_v10 }
 0x364   :  { %v821_v6 = vmul.f32 %v1454_v17, %v820_v7 }
 0x365   :  { %v1456_v54 = vpop.eup %1455  ;;  %v803_v49 = vadd.f32 %v1452_v42, %v802_v18 }
 0x366   :  { %v822_v20 = vadd.f32 %v1454_v17, %v821_v6  ;;  %v839_v4 = vmul.f32 %v1456_v54, %v837_v2  ;;  %v1458_v3 = vpop.eup %1457  ;;  %vm844_vm8 = vweird.f32 %v1456_v54  ;;  %v849_v6 = vand.u32 2147483648, %v837_v2 }
 0x367   :  { %v807_v15 = vsel %vm806_vm4, %v1452_v42, %v803_v49  ;;  %v847_v49 = vand.u32 2147483647, %v837_v2  ;;  %vm845_vm10 = vmor %vm843_vm9, %vm844_vm8 }
 0x368   :  { %v812_v59 = vsel %vm809_vm6, %v811_v8, %v807_v15  ;;  %v826_v10 = vsel %vm825_vm5, %v1454_v17, %v822_v20  ;;  %v840_v61 = vsub.f32 1.0, %v839_v4  ;;  %v850_v42 = vor.u32 1.1754944e-38, %v849_v6 }
 0x369   :  { %v831_v7 = vsel %vm828_vm7, %v830_v1, %v826_v10  ;;  %v854_v51 = vmul.f32 %v1458_v3, %v812_v59  ;;  %vm848_vm11 = vcmp.eq.f32.partialorder %v847_v49, 8.507059e+37  ;;  %v1358_v59 = vld [vmem:[%s2516_s0 + $0xb0] sm:$0xff] }
 0x36a   :  { %v853_v12 = vmul.f32 %v831_v7, %v2321_v5  ;;  %v841_v18 = vmul.f32 %v1456_v54, %v840_v61 }
 0x36c   :  { %v2401_v14 = vadd.f32 %v854_v51, %v853_v12  ;;  %v842_v11 = vadd.f32 %v1456_v54, %v841_v18 }
 0x36e   :  { %1459 = vtanh.f32 %v2401_v14  ;;  %v846_v13 = vsel %vm845_vm10, %v1456_v54, %v842_v11 }
 0x36f   :  { %v851_v17 = vsel %vm848_vm11, %v850_v42, %v846_v13 }
 0x374   :  { %v1460_v16 = vpop.eup %1459 }
 0x375   :  { %v857_v9 = vmul.f32 %v1460_v16, %v851_v17 }
 0x377   :  { %879 = vmatmul.f32.vlgmr.msrb.gmra.mxu0 %v857_v9  ;;  %899 = vmatmul.f32.vlgmr.msrb.gmra.mxu1 %v857_v9 }
 0x378   :  { %919 = vmatmul.f32.vlgmr.msrb.gmra.mxu2 %v857_v9  ;;  %939 = vmatmul.f32.vlgmr.msrb.gmra.mxu3 %v857_v9 }
 0x379   :  { %1167 = vmatpush.msrb.mxu0 %v2116_v50  ;;  %1187 = vmatpush.msrb.mxu1 %v2119_v21  ;;  %v2757_v50 = vld [vmem:[#allocation7_spill] sm:$0xff]  ;;  %v2758_v21 = vld [vmem:[#allocation21_spill] sm:$0xff] }
 0x37a   :  { %1207 = vmatpush.msrb.mxu2 %v2122_v22  ;;  %1227 = vmatpush.msrb.mxu3 %v2125_v23  ;;  %v2759_v22 = vld [vmem:[#allocation8_spill] sm:$0xff]  ;;  %v2760_v23 = vld [vmem:[#allocation9_spill] sm:$0xff] }
 0x37b   :  { %1168 = vmatpush.msrb.mxu0 %v2128_v24  ;;  %1188 = vmatpush.msrb.mxu1 %v2131_v25  ;;  %v2761_v24 = vld [vmem:[#allocation10_spill] sm:$0xff]  ;;  %v2762_v25 = vld [vmem:[#allocation25_spill] sm:$0xff] }
 0x37c   :  { %1208 = vmatpush.msrb.mxu2 %v2134_v26  ;;  %1228 = vmatpush.msrb.mxu3 %v2137_v27  ;;  %v2763_v26 = vld [vmem:[#allocation11_spill] sm:$0xff]  ;;  %v2764_v27 = vld [vmem:[#allocation12_spill] sm:$0xff] }
 0x37d   :  { %1169 = vmatpush.msrb.mxu0 %v2140_v28  ;;  %1189 = vmatpush.msrb.mxu1 %v2143_v29  ;;  %v2765_v28 = vld [vmem:[#allocation13_spill] sm:$0xff] }
 0x37e   :  { %1209 = vmatpush.msrb.mxu2 %v2146_v30  ;;  %1229 = vmatpush.msrb.mxu3 %v2149_v31  ;;  %v2766_v29 = vld [vmem:[#allocation29_spill] sm:$0xff]  ;;  %v2767_v30 = vld [vmem:[#allocation14_spill] sm:$0xff]  ;;  %v2768_v31 = vld [vmem:[#allocation15_spill] sm:$0xff] }
 0x37f   :  { %1170 = vmatpush.msrb.mxu0 %v2152_v32  ;;  %1190 = vmatpush.msrb.mxu1 %v2155_v33  ;;  %v2769_v32 = vld [vmem:[#allocation16_spill] sm:$0xff]  ;;  %v2770_v33 = vld [vmem:[#allocation30_spill] sm:$0xff] }
 0x380   :  { %1210 = vmatpush.msrb.mxu2 %v2158_v35  ;;  %1230 = vmatpush.msrb.mxu3 %v2161_v39  ;;  %v2771_v35 = vld [vmem:[#allocation17_spill] sm:$0xff]  ;;  %v2772_v39 = vld [vmem:[#allocation18_spill] sm:$0xff] }
 0x381   :  { %1171 = vmatpush.msrb.mxu0 %v2164_v43  ;;  %1191 = vmatpush.msrb.mxu1 %v2167_v47  ;;  %v2773_v43 = vld [vmem:[#allocation19_spill] sm:$0xff] }
 0x382   :  { %1211 = vmatpush.msrb.mxu2 %v2170_v60  ;;  %1231 = vmatpush.msrb.mxu3 %v2173_v63  ;;  %v2774_v47 = vld [vmem:[#allocation31_spill] sm:$0xff]  ;;  %v2775_v60 = vld [vmem:[#allocation20_spill] sm:$0xff]  ;;  %v2776_v63 = vld [vmem:[#allocation22_spill] sm:$0xff] }
 0x383   :  { %1172 = vmatpush.msrb.mxu0 %v2176_v34  ;;  %1192 = vmatpush.msrb.mxu1 %v2179_v36  ;;  %v2777_v34 = vld [vmem:[#allocation23_spill] sm:$0xff]  ;;  %v2778_v36 = vld [vmem:[#allocation32_spill] sm:$0xff] }
 0x384   :  { %1212 = vmatpush.msrb.mxu2 %v2182_v37  ;;  %1232 = vmatpush.msrb.mxu3 %v2185_v40  ;;  %v2779_v37 = vld [vmem:[#allocation24_spill] sm:$0xff]  ;;  %v2780_v40 = vld [vmem:[#allocation26_spill] sm:$0xff] }
 0x385   :  { %1173 = vmatpush.msrb.mxu0 %v2188_v56  ;;  %1193 = vmatpush.msrb.mxu1 %v2191_v44  ;;  %v2781_v56 = vld [vmem:[#allocation27_spill] sm:$0xff]  ;;  %v2782_v44 = vld [vmem:[#allocation33_spill] sm:$0xff] }
 0x386   :  { %1213 = vmatpush.msrb.mxu2 %v2194_v53  ;;  %1233 = vmatpush.msrb.mxu3 %v2197_v46  ;;  %v1356_v53 = vld [vmem:[%s2516_s0 + $0xa0] sm:$0xff]  ;;  %v1357_v46 = vld [vmem:[%s2516_s0 + $0xa8] sm:$0xff] }
 0x387   :  { %1174 = vmatpush.msrb.mxu0 %v2200_v62  ;;  %1194 = vmatpush.msrb.mxu1 %v2203_v45 }
 0x388   :  { %1214 = vmatpush.msrb.mxu2 %v2206_v57  ;;  %1234 = vmatpush.msrb.mxu3 %v2209_v0 }
 0x389   :  { %1175 = vmatpush.msrb.mxu0 %v2212_v38  ;;  %1195 = vmatpush.msrb.mxu1 %v2215_v55 }
 0x38a   :  { %1215 = vmatpush.msrb.mxu2 %v2218_v41  ;;  %1235 = vmatpush.msrb.mxu3 %v2221_v58  ;;  %v1359_v41 = vld [vmem:[%s2516_s0 + $0xb8] sm:$0xff] }
 0x38b   :  { %1176 = vmatpush.msrb.mxu0 %v2224_v52  ;;  %1196 = vmatpush.msrb.mxu1 %v2227_v48 }
 0x38c   :  { %1216 = vmatpush.msrb.mxu2 %v2757_v50  ;;  %1236 = vmatpush.msrb.mxu3 %v2758_v21 }
 0x38d   :  { %1177 = vmatpush.msrb.mxu0 %v2759_v22  ;;  %1197 = vmatpush.msrb.mxu1 %v2760_v23 }
 0x38e   :  { %1217 = vmatpush.msrb.mxu2 %v2761_v24  ;;  %1237 = vmatpush.msrb.mxu3 %v2762_v25 }
 0x38f   :  { %1178 = vmatpush.msrb.mxu0 %v2763_v26  ;;  %1198 = vmatpush.msrb.mxu1 %v2764_v27 }
 0x390   :  { %1218 = vmatpush.msrb.mxu2 %v2765_v28  ;;  %1238 = vmatpush.msrb.mxu3 %v2766_v29 }
 0x391   :  { %1179 = vmatpush.msrb.mxu0 %v2767_v30  ;;  %1199 = vmatpush.msrb.mxu1 %v2768_v31 }
 0x392   :  { %1219 = vmatpush.msrb.mxu2 %v2769_v32  ;;  %1239 = vmatpush.msrb.mxu3 %v2770_v33 }
 0x393   :  { %1180 = vmatpush.msrb.mxu0 %v2771_v35  ;;  %1200 = vmatpush.msrb.mxu1 %v2772_v39 }
 0x394   :  { %1220 = vmatpush.msrb.mxu2 %v2773_v43  ;;  %1240 = vmatpush.msrb.mxu3 %v2774_v47 }
 0x395   :  { %1181 = vmatpush.msrb.mxu0 %v2775_v60  ;;  %1201 = vmatpush.msrb.mxu1 %v2776_v63 }
 0x396   :  { %1221 = vmatpush.msrb.mxu2 %v2777_v34  ;;  %1241 = vmatpush.msrb.mxu3 %v2778_v36  ;;  %v1364_v34 = vld [vmem:[%s2516_s0 + $0xc8] sm:$0xff] }
 0x397   :  { %1182 = vmatpush.msrb.mxu0 %v2779_v37  ;;  %1202 = vmatpush.msrb.mxu1 %v2780_v40 }
 0x398   :  { %1222 = vmatpush.msrb.mxu2 %v2781_v56  ;;  %1242 = vmatpush.msrb.mxu3 %v2782_v44 }
 0x3f4   :  { %v880_v62 = vpop.f32.mrf.mxu0  ;;  %v900_v45 = vpop.f32.mrf.mxu1 }
 0x3f5   :  { %v943_v57 = vadd.f32 %v1356_v53, %v880_v62  ;;  %v944_v0 = vadd.f32 %v1357_v46, %v900_v45  ;;  %v1366_v46 = vld [vmem:[%s2516_s0 + $0xd8] sm:$0xff] }
 0x3f7   :  { %v1360_v38 = vmul.f32 -1.442695, %v943_v57  ;;  %v1361_v55 = vmul.f32 -1.442695, %v944_v0 }
 0x3f9   :  { %1461 = vpow2.f32 %v1360_v38 }
 0x3fa   :  { %1463 = vpow2.f32 %v1361_v55 }
 0x3fb   :  { %v940_v58 = vpop.f32.mrf.mxu3  ;;  %v920_v54 = vpop.f32.mrf.mxu2 }
 0x3fc   :  { %v946_v52 = vadd.f32 %v1359_v41, %v940_v58  ;;  %v945_v20 = vadd.f32 %v1358_v59, %v920_v54  ;;  %v1365_v58 = vld [vmem:[%s2516_s0 + $0xd0] sm:$0xff] }
 0x3fe   :  { %v1362_v48 = vmul.f32 -1.442695, %v946_v52 }
 0x3ff   :  { %v1462_v5 = vpop.eup %1461 }
 0x400   :  { %v1464_v12 = vpop.eup %1463  ;;  %v950_v51 = vadd.f32 1.0, %v1462_v5  ;;  %1465 = vpow2.f32 %v1362_v48 }
 0x401   :  { %v969_v61 = vadd.f32 1.0, %v1464_v12 }
 0x402   :  { %1467 = vrcp.f32 %v950_v51  ;;  %v962_v7 = vand.u32 2147483648, %v950_v51  ;;  %v960_v6 = vand.u32 2147483647, %v950_v51  ;;  %vm956_vm14 = vweird.f32 %v950_v51 }
 0x403   :  { %1469 = vrcp.f32 %v969_v61  ;;  %v981_v18 = vand.u32 2147483648, %v969_v61  ;;  %v979_v13 = vand.u32 2147483647, %v969_v61  ;;  %vm975_vm15 = vweird.f32 %v969_v61 }
 0x404   :  { %v963_v17 = vor.u32 1.1754944e-38, %v962_v7  ;;  %vm961_vm2 = vcmp.eq.f32.partialorder %v960_v6, 8.507059e+37 }
 0x405   :  { %v982_v21 = vor.u32 1.1754944e-38, %v981_v18  ;;  %vm980_vm3 = vcmp.eq.f32.partialorder %v979_v13, 8.507059e+37 }
 0x406   :  { %v1466_v2 = vpop.eup %1465 }
 0x407   :  { %v989_v19 = vadd.f32 1.0, %v1466_v2 }
 0x408   :  { %v1468_v8 = vpop.eup %1467 }
 0x409   :  { %v1470_v4 = vpop.eup %1469  ;;  %v952_v1 = vmul.f32 %v1468_v8, %v950_v51  ;;  %1471 = vrcp.f32 %v989_v19  ;;  %vm957_vm12 = vweird.f32 %v1468_v8  ;;  %v1001_v33 = vand.u32 2147483648, %v989_v19 }
 0x40a   :  { %v971_v15 = vmul.f32 %v1470_v4, %v969_v61  ;;  %1473 = vtanh.f32 %v945_v20  ;;  %vm976_vm13 = vweird.f32 %v1470_v4  ;;  %vm958_vm0 = vmor %vm956_vm14, %vm957_vm12  ;;  %vm995_vm5 = vweird.f32 %v989_v19 }
 0x40b   :  { %v953_v3 = vsub.f32 1.0, %v952_v1  ;;  %vm977_vm1 = vmor %vm975_vm15, %vm976_vm13  ;;  %v999_v35 = vand.u32 2147483647, %v989_v19  ;;  %v1002_v43 = vor.u32 1.1754944e-38, %v1001_v33 }
 0x40c   :  { %v972_v10 = vsub.f32 1.0, %v971_v15 }
 0x40d   :  { %v954_v11 = vmul.f32 %v1468_v8, %v953_v3  ;;  %vm1000_vm7 = vcmp.eq.f32.partialorder %v999_v35, 8.507059e+37  ;;  %v1371_v35 = vld [vmem:[%s2516_s0 + $0xe8] sm:$0xff] }
 0x40e   :  { %v973_v49 = vmul.f32 %v1470_v4, %v972_v10 }
 0x40f   :  { %v1472_v42 = vpop.eup %1471  ;;  %v955_v16 = vadd.f32 %v1468_v8, %v954_v11 }
 0x410   :  { %v974_v9 = vadd.f32 %v1470_v4, %v973_v49  ;;  %v991_v50 = vmul.f32 %v1472_v42, %v989_v19  ;;  %v1474_v23 = vpop.eup %1473  ;;  %vm996_vm4 = vweird.f32 %v1472_v42 }
 0x411   :  { %v959_v22 = vsel %vm958_vm0, %v1468_v8, %v955_v16  ;;  %vm997_vm6 = vmor %vm995_vm5, %vm996_vm4 }
 0x412   :  { %v964_v24 = vsel %vm961_vm2, %v963_v17, %v959_v22  ;;  %v978_v25 = vsel %vm977_vm1, %v1470_v4, %v974_v9  ;;  %v992_v26 = vsub.f32 1.0, %v991_v50 }
 0x413   :  { %v983_v27 = vsel %vm980_vm3, %v982_v21, %v978_v25  ;;  %v1006_v28 = vmul.f32 %v1474_v23, %v964_v24 }
 0x414   :  { %v1005_v29 = vmul.f32 %v983_v27, %v2401_v14  ;;  %v993_v30 = vmul.f32 %v1472_v42, %v992_v26  ;;  %v1363_v14 = vld [vmem:[%s2516_s0 + $0xc0] sm:$0xff] }
 0x416   :  { %v2481_v31 = vadd.f32 %v1006_v28, %v1005_v29  ;;  %v994_v32 = vadd.f32 %v1472_v42, %v993_v30 }
 0x418   :  { %1475 = vtanh.f32 %v2481_v31  ;;  %v998_v39 = vsel %vm997_vm6, %v1472_v42, %v994_v32 }
 0x419   :  { %v1003_v60 = vsel %vm1000_vm7, %v1002_v43, %v998_v39 }
 0x41e   :  { %v1476_v47 = vpop.eup %1475 }
 0x41f   :  { %v1009_v63 = vmul.f32 %v1476_v47, %v1003_v60 }
 0x421   :  { %1031 = vmatmul.f32.vlgmr.msra.gmra.mxu0 %v1009_v63  ;;  %1051 = vmatmul.f32.vlgmr.msra.gmra.mxu1 %v1009_v63 }
 0x422   :  { %1071 = vmatmul.f32.vlgmr.msra.gmra.mxu2 %v1009_v63  ;;  %1091 = vmatmul.f32.vlgmr.msra.gmra.mxu3 %v1009_v63 }
 0x49e   :  { %v1032_v36 = vpop.f32.mrf.mxu0  ;;  %v1052_v37 = vpop.f32.mrf.mxu1 }
 0x49f   :  { %v1095_v40 = vadd.f32 %v1363_v14, %v1032_v36  ;;  %v1096_v56 = vadd.f32 %v1364_v34, %v1052_v37  ;;  %v1373_v34 = vld [vmem:[%s2516_s0 + $0xf8] sm:$0xff] }
 0x4a1   :  { %v1367_v44 = vmul.f32 -1.442695, %v1095_v40  ;;  %v1368_v53 = vmul.f32 -1.442695, %v1096_v56 }
 0x4a3   :  { %1477 = vpow2.f32 %v1367_v44 }
 0x4a4   :  { %1479 = vpow2.f32 %v1368_v53 }
 0x4a5   :  { %v1092_v62 = vpop.f32.mrf.mxu3  ;;  %v1072_v52 = vpop.f32.mrf.mxu2 }
 0x4a6   :  { %v1098_v45 = vadd.f32 %v1366_v46, %v1092_v62  ;;  %v1097_v51 = vadd.f32 %v1365_v58, %v1072_v52  ;;  %v1372_v62 = vld [vmem:[%s2516_s0 + $0xf0] sm:$0xff] }
 0x4a8   :  { %v1369_v57 = vmul.f32 -1.442695, %v1098_v45 }
 0x4a9   :  { %v1478_v0 = vpop.eup %1477 }
 0x4aa   :  { %v1480_v38 = vpop.eup %1479  ;;  %v1102_v55 = vadd.f32 1.0, %v1478_v0  ;;  %1481 = vpow2.f32 %v1369_v57 }
 0x4ab   :  { %v1121_v41 = vadd.f32 1.0, %v1480_v38 }
 0x4ac   :  { %1483 = vrcp.f32 %v1102_v55  ;;  %v1114_v8 = vand.u32 2147483648, %v1102_v55  ;;  %v1112_v1 = vand.u32 2147483647, %v1102_v55  ;;  %vm1108_vm10 = vweird.f32 %v1102_v55 }
 0x4ad   :  { %1485 = vrcp.f32 %v1121_v41  ;;  %v1133_v20 = vand.u32 2147483648, %v1121_v41  ;;  %v1131_v3 = vand.u32 2147483647, %v1121_v41  ;;  %vm1127_vm11 = vweird.f32 %v1121_v41 }
 0x4ae   :  { %v1115_v18 = vor.u32 1.1754944e-38, %v1114_v8  ;;  %vm1113_vm14 = vcmp.eq.f32.partialorder %v1112_v1, 8.507059e+37 }
 0x4af   :  { %v1134_v49 = vor.u32 1.1754944e-38, %v1133_v20  ;;  %vm1132_vm15 = vcmp.eq.f32.partialorder %v1131_v3, 8.507059e+37 }
 0x4b0   :  { %v1482_v48 = vpop.eup %1481 }
 0x4b1   :  { %v1141_v5 = vadd.f32 1.0, %v1482_v48 }
 0x4b2   :  { %v1484_v12 = vpop.eup %1483 }
 0x4b3   :  { %v1486_v61 = vpop.eup %1485  ;;  %v1104_v59 = vmul.f32 %v1484_v12, %v1102_v55  ;;  %1487 = vrcp.f32 %v1141_v5  ;;  %vm1109_vm8 = vweird.f32 %v1484_v12  ;;  %v1153_v26 = vand.u32 2147483648, %v1141_v5 }
 0x4b4   :  { %v1123_v54 = vmul.f32 %v1486_v61, %v1121_v41  ;;  %1489 = vtanh.f32 %v1097_v51  ;;  %vm1128_vm9 = vweird.f32 %v1486_v61  ;;  %vm1110_vm12 = vmor %vm1108_vm10, %vm1109_vm8  ;;  %vm1147_vm1 = vweird.f32 %v1141_v5 }
 0x4b5   :  { %v1105_v2 = vsub.f32 1.0, %v1104_v59  ;;  %vm1129_vm13 = vmor %vm1127_vm11, %vm1128_vm9  ;;  %v1151_v27 = vand.u32 2147483647, %v1141_v5  ;;  %v1154_v29 = vor.u32 1.1754944e-38, %v1153_v26 }
 0x4b6   :  { %v1124_v19 = vsub.f32 1.0, %v1123_v54 }
 0x4b7   :  { %v1106_v4 = vmul.f32 %v1484_v12, %v1105_v2  ;;  %vm1152_vm3 = vcmp.eq.f32.partialorder %v1151_v27, 8.507059e+37 }
 0x4b8   :  { %v1125_v15 = vmul.f32 %v1486_v61, %v1124_v19 }
 0x4b9   :  { %v1488_v10 = vpop.eup %1487  ;;  %v1107_v7 = vadd.f32 %v1484_v12, %v1106_v4 }
 0x4ba   :  { %v1126_v11 = vadd.f32 %v1486_v61, %v1125_v15  ;;  %v1143_v6 = vmul.f32 %v1488_v10, %v1141_v5  ;;  %v1490_v42 = vpop.eup %1489  ;;  %vm1148_vm0 = vweird.f32 %v1488_v10 }
 0x4bb   :  { %v1111_v13 = vsel %vm1110_vm12, %v1484_v12, %v1107_v7  ;;  %vm1149_vm2 = vmor %vm1147_vm1, %vm1148_vm0 }
 0x4bc   :  { %v1116_v16 = vsel %vm1113_vm14, %v1115_v18, %v1111_v13  ;;  %v1130_v17 = vsel %vm1129_vm13, %v1486_v61, %v1126_v11  ;;  %v1144_v9 = vsub.f32 1.0, %v1143_v6 }
 0x4bd   :  { %v1135_v50 = vsel %vm1132_vm15, %v1134_v49, %v1130_v17  ;;  %v1158_v21 = vmul.f32 %v1490_v42, %v1116_v16 }
 0x4be   :  { %v1157_v22 = vmul.f32 %v1135_v50, %v2481_v31  ;;  %v1145_v23 = vmul.f32 %v1488_v10, %v1144_v9  ;;  %v1370_v31 = vld [vmem:[%s2516_s0 + $0xe0] sm:$0xff] }
 0x4c0   :  { %v2497_v24 = vadd.f32 %v1158_v21, %v1157_v22  ;;  %v1146_v25 = vadd.f32 %v1488_v10, %v1145_v23 }
 0x4c2   :  { %1491 = vtanh.f32 %v2497_v24  ;;  %v1150_v28 = vsel %vm1149_vm2, %v1488_v10, %v1146_v25 }
 0x4c3   :  { %v1155_v32 = vsel %vm1152_vm3, %v1154_v29, %v1150_v28 }
 0x4c8   :  { %v1492_v30 = vpop.eup %1491 }
 0x4c9   :  { %v1161_v33 = vmul.f32 %v1492_v30, %v1155_v32 }
 0x4cb   :  { %1183 = vmatmul.f32.vlgmr.msrb.gmra.mxu0 %v1161_v33  ;;  %1203 = vmatmul.f32.vlgmr.msrb.gmra.mxu1 %v1161_v33 }
 0x4cc   :  { %1223 = vmatmul.f32.vlgmr.msrb.gmra.mxu2 %v1161_v33  ;;  %1243 = vmatmul.f32.vlgmr.msrb.gmra.mxu3 %v1161_v33 }
 0x548   :  { %v1184_v39 = vpop.f32.mrf.mxu0  ;;  %v1204_v43 = vpop.f32.mrf.mxu1 }
 0x549   :  { %v1247_v47 = vadd.f32 %v1370_v31, %v1184_v39  ;;  %v1248_v60 = vadd.f32 %v1371_v35, %v1204_v43 }
 0x54b   :  { %v1374_v63 = vmul.f32 -1.442695, %v1247_v47  ;;  %v1375_v14 = vmul.f32 -1.442695, %v1248_v60 }
 0x54d   :  { %1493 = vpow2.f32 %v1374_v63 }
 0x54e   :  { %1495 = vpow2.f32 %v1375_v14 }
 0x54f   :  { %v1244_v36 = vpop.f32.mrf.mxu3  ;;  %v1224_v45 = vpop.f32.mrf.mxu2 }
 0x550   :  { %v1250_v37 = vadd.f32 %v1373_v34, %v1244_v36  ;;  %v1249_v55 = vadd.f32 %v1372_v62, %v1224_v45 }
 0x552   :  { %v1376_v40 = vmul.f32 -1.442695, %v1250_v37 }
 0x553   :  { %v1494_v56 = vpop.eup %1493 }
 0x554   :  { %v1496_v44 = vpop.eup %1495  ;;  %v1254_v53 = vadd.f32 1.0, %v1494_v56  ;;  %1497 = vpow2.f32 %v1376_v40 }
 0x555   :  { %v1273_v46 = vadd.f32 1.0, %v1496_v44 }
 0x556   :  { %1499 = vrcp.f32 %v1254_v53  ;;  %v1266_v12 = vand.u32 2147483648, %v1254_v53  ;;  %v1264_v59 = vand.u32 2147483647, %v1254_v53  ;;  %vm1260_vm6 = vweird.f32 %v1254_v53 }
 0x557   :  { %1501 = vrcp.f32 %v1273_v46  ;;  %v1285_v51 = vand.u32 2147483648, %v1273_v46  ;;  %v1283_v2 = vand.u32 2147483647, %v1273_v46  ;;  %vm1279_vm7 = vweird.f32 %v1273_v46 }
 0x558   :  { %v1267_v20 = vor.u32 1.1754944e-38, %v1266_v12  ;;  %vm1265_vm10 = vcmp.eq.f32.partialorder %v1264_v59, 8.507059e+37 }
 0x559   :  { %v1286_v15 = vor.u32 1.1754944e-38, %v1285_v51  ;;  %vm1284_vm11 = vcmp.eq.f32.partialorder %v1283_v2, 8.507059e+37 }
 0x55a   :  { %v1498_v57 = vpop.eup %1497 }
 0x55b   :  { %v1293_v0 = vadd.f32 1.0, %v1498_v57 }
 0x55c   :  { %v1500_v38 = vpop.eup %1499 }
 0x55d   :  { %v1502_v41 = vpop.eup %1501  ;;  %v1256_v58 = vmul.f32 %v1500_v38, %v1254_v53  ;;  %1503 = vrcp.f32 %v1293_v0  ;;  %vm1261_vm4 = vweird.f32 %v1500_v38  ;;  %v1305_v9 = vand.u32 2147483648, %v1293_v0 }
 0x55e   :  { %v1275_v52 = vmul.f32 %v1502_v41, %v1273_v46  ;;  %1505 = vtanh.f32 %v1249_v55  ;;  %vm1280_vm5 = vweird.f32 %v1502_v41  ;;  %vm1262_vm8 = vmor %vm1260_vm6, %vm1261_vm4  ;;  %vm1299_vm13 = vweird.f32 %v1293_v0 }
 0x55f   :  { %v1257_v48 = vsub.f32 1.0, %v1256_v58  ;;  %vm1281_vm9 = vmor %vm1279_vm7, %vm1280_vm5  ;;  %v1303_v50 = vand.u32 2147483647, %v1293_v0  ;;  %v1306_v22 = vor.u32 1.1754944e-38, %v1305_v9 }
 0x560   :  { %v1276_v5 = vsub.f32 1.0, %v1275_v52 }
 0x561   :  { %v1258_v61 = vmul.f32 %v1500_v38, %v1257_v48  ;;  %vm1304_vm15 = vcmp.eq.f32.partialorder %v1303_v50, 8.507059e+37 }
 0x562   :  { %v1277_v54 = vmul.f32 %v1502_v41, %v1276_v5 }
 0x563   :  { %v1504_v19 = vpop.eup %1503  ;;  %v1259_v8 = vadd.f32 %v1500_v38, %v1258_v61 }
 0x564   :  { %v1278_v4 = vadd.f32 %v1502_v41, %v1277_v54  ;;  %v1295_v1 = vmul.f32 %v1504_v19, %v1293_v0  ;;  %v1506_v10 = vpop.eup %1505  ;;  %vm1300_vm12 = vweird.f32 %v1504_v19 }
 0x565   :  { %v1263_v3 = vsel %vm1262_vm8, %v1500_v38, %v1259_v8  ;;  %vm1301_vm14 = vmor %vm1299_vm13, %vm1300_vm12 }
 0x566   :  { %v1268_v7 = vsel %vm1265_vm10, %v1267_v20, %v1263_v3  ;;  %v1282_v18 = vsel %vm1281_vm9, %v1502_v41, %v1278_v4  ;;  %v1296_v11 = vsub.f32 1.0, %v1295_v1 }
 0x567   :  { %v1287_v6 = vsel %vm1284_vm11, %v1286_v15, %v1282_v18  ;;  %v1310_v49 = vmul.f32 %v1506_v10, %v1268_v7 }
 0x568   :  { %v1309_v13 = vmul.f32 %v1287_v6, %v2497_v24  ;;  %v1297_v42 = vmul.f32 %v1504_v19, %v1296_v11 }
 0x56a   :  { %v1311_v16 = vadd.f32 %v1310_v49, %v1309_v13  ;;  %v1298_v17 = vadd.f32 %v1504_v19, %v1297_v42 }
 0x56c   :  { %1507 = vtanh.f32 %v1311_v16  ;;  %v1302_v21 = vsel %vm1301_vm14, %v1504_v19, %v1298_v17 }
 0x56d   :  { %v1307_v25 = vsel %vm1304_vm15, %v1306_v22, %v1302_v21 }
 0x572   :  { %v1508_v23 = vpop.eup %1507 }
 0x573   :  { %v1313_v26 = vmul.f32 %v1508_v23, %v1307_v25 }
 0x575   :  { %1319 = vst [vmem:[%s2518_s2] sm:$0xff] %v1313_v26 }
 0x576   :  { %1324 = vsyncpa [#allocation5], 1 }

</bundles_post_ra>
